<compile_context>
chip_gen: v7x
topology: tpu7x:2x2x1
jax: 0.10.0
libtpu: 0.0.40
codegen_flags: <defaults>
</compile_context>

<pallas_src>
import functools
import math

import jax
import jax.numpy as jnp
import numpy as np
from jax import lax
from jax.experimental import pallas as pl
from jax.experimental.pallas import tpu as pltpu

EPS = 1e-5


# ----------------------------- in-kernel helpers -----------------------------

def _shifted(x, deltas):
    """Lane-shifted copies of a [C, N] canvas value: out_d[:, p] = x[:, p + d].

    Out-of-range positions read zeros (the slop pad); with the zero ring on the
    canvas this reproduces zero-padding conv semantics for interior outputs.
    """
    c, n = x.shape
    slop = max(abs(d) for d in deltas)
    z = jnp.zeros((c, slop), x.dtype)
    xp = jnp.concatenate([z, x, z], axis=1)
    return [xp[:, slop + d: slop + d + n] for d in deltas]


def _conv3x3(x, wc, w_ref, b_ref):
    """3x3 pad-1 conv on a zero-ringed canvas: one K=9*Cin MXU matmul."""
    deltas = [(i - 1) * wc + (j - 1) for i in range(3) for j in range(3)]
    cols = jnp.concatenate(_shifted(x, deltas), axis=0)          # [9*Cin, N]
    return (jnp.dot(w_ref[...], cols, preferred_element_type=jnp.float32)
            + b_ref[...])


def _pool3x3(x, wc):
    """3x3 max over the canvas (zero ring is valid pad for post-ReLU values)."""
    deltas = [(i - 1) * wc + (j - 1) for i in range(3) for j in range(3)]
    return functools.reduce(jnp.maximum, _shifted(x, deltas))


# ----------------------------- the fused kernel -----------------------------

def _resnet2_kernel(
        x_ph_ref, w_stem_ref, b1_ref, m16_ref, tpool_ref,
        w11_ref, b11_ref, w12_ref, b12_ref, m8_ref, t84_ref,
        w21_ref, b21_ref, w22_ref, b22_ref, wd2_ref, bd2_ref, m4_ref, t42_ref,
        w31_ref, b31_ref, w32_ref, b32_ref, wd3_ref, bd3_ref, m2_ref,
        fcw_ref, fcb_ref,
        out_ref,
        *, wc16, wc8, wc4, wc2, inv_pool):
    """One image of ResNet2; grid axis 0 is the batch (parallel on v7x)."""

    def dot(a, b):
        return jnp.dot(a, b, preferred_element_type=jnp.float32)

    def relu(v):
        return jnp.maximum(v, 0.0)

    # ---- stem: conv1 7x7/2 via 16 (du,dv) offsets of the 2x2-phase image ----
    x_ph = x_ph_ref[0]                                           # [16, wc16^2]
    deltas = [(du - 1) * wc16 + (dv - 1)
              for du in range(4) for dv in range(4)]
    cols = jnp.concatenate(_shifted(x_ph, deltas), axis=0)       # [256, n16]
    y = relu(dot(w_stem_ref[...], cols) + b1_ref[...]) * m16_ref[...]

    # ---- maxpool 3x3/2: full-res max, stride-2 subsample (0/1 matmul) -------
    x1 = dot(_pool3x3(y, wc16), tpool_ref[...])                  # [16, n8]

    # ---- layer1: BasicBlock, stride 1, identity shortcut --------------------
    c = relu(_conv3x3(x1, wc8, w11_ref, b11_ref)) * m8_ref[...]
    c = _conv3x3(c, wc8, w12_ref, b12_ref)
    x2 = relu(c + x1) * m8_ref[...]

    # ---- layer2: BasicBlock, stride 2, 1x1 downsample shortcut --------------
    f = relu(_conv3x3(x2, wc8, w21_ref, b21_ref))
    c = _conv3x3(dot(f, t84_ref[...]), wc4, w22_ref, b22_ref)
    idn = dot(wd2_ref[...], dot(x2, t84_ref[...])) + bd2_ref[...]
    x3 = relu(c + idn) * m4_ref[...]

    # ---- layer3: BasicBlock, stride 2, 1x1 downsample shortcut --------------
    f = relu(_conv3x3(x3, wc4, w31_ref, b31_ref))
    c = _conv3x3(dot(f, t42_ref[...]), wc2, w32_ref, b32_ref)
    idn = dot(wd3_ref[...], dot(x3, t42_ref[...])) + bd3_ref[...]
    z = relu(c + idn) * m2_ref[...]                              # [64, n2]

    # ---- global average pool + fc (single store of this image's logits) -----
    yfc = dot(fcw_ref[...], z)                                   # [nc, n2]
    logits = jnp.sum(yfc, axis=1, keepdims=True) * inv_pool + fcb_ref[...]
    out_ref[...] = logits.reshape(1, logits.shape[0], 1)


# ----------------------------- host-side packing -----------------------------

def _fold3x3(w, s):
    # OIHW -> [Cout, 9*Cin] with K index = (ti*3+tj)*Cin + ci, BN scale folded.
    cout, cin = w.shape[0], w.shape[1]
    wt = jnp.transpose(w, (0, 2, 3, 1)).reshape(cout, 9 * cin)
    return (wt * s[:, None]).astype(jnp.float32)


def _fold1x1(w, s):
    return (w[:, :, 0, 0] * s[:, None]).astype(jnp.float32)


def _fold_stem(w, s):
    # 7x7 conv1 -> [16, 16*16]: K index = (du*4+dv)*16 + (2a+b)*4 + c, where
    # tap (i,j) = (2du+a, 2dv+b); missing taps / padded channel c=3 stay zero.
    w = np.asarray(w, np.float32)
    s = np.asarray(s, np.float32)
    cout = w.shape[0]
    out = np.zeros((cout, 16 * 16), np.float32)
    for du in range(4):
        for dv in range(4):
            for a in range(2):
                for b in range(2):
                    i, j = 2 * du + a, 2 * dv + b
                    if i > 6 or j > 6:
                        continue
                    for c in range(3):
                        out[:, (du * 4 + dv) * 16 + (2 * a + b) * 4 + c] = (
                            w[:, c, i, j] * s)
    return jnp.asarray(out)


def pack_params(params):
    # TODO(synk): only layers=(1,1,1) (one BasicBlock per stage) is packed here.
    for li in (1, 2, 3):
        assert len(params[f"layer{li}"]) == 1
    l1, = params["layer1"]
    l2, = params["layer2"]
    l3, = params["layer3"]
    col = lambda v: jnp.asarray(v, jnp.float32).reshape(-1, 1)
    return dict(
        w_stem=_fold_stem(params["conv1_w"], params["bn1_s"]),
        b1=col(params["bn1_b"]),
        w11=_fold3x3(l1["w1"], l1["s1"]), b11=col(l1["b1"]),
        w12=_fold3x3(l1["w2"], l1["s2"]), b12=col(l1["b2"]),
        w21=_fold3x3(l2["w1"], l2["s1"]), b21=col(l2["b1"]),
        w22=_fold3x3(l2["w2"], l2["s2"]), b22=col(l2["b2"]),
        wd2=_fold1x1(l2["dw"], l2["ds"]), bd2=col(l2["db"]),
        w31=_fold3x3(l3["w1"], l3["s1"]), b31=col(l3["b1"]),
        w32=_fold3x3(l3["w2"], l3["s2"]), b32=col(l3["b2"]),
        wd3=_fold1x1(l3["dw"], l3["ds"]), bd3=col(l3["db"]),
        fcw=jnp.asarray(params["fc_w"], jnp.float32),
        fcb=col(params["fc_b"]),
    )


def _interior_mask(h, wc):
    # [1, wc*wc] lane-dense row: 1 on the h x h interior of the canvas, else 0.
    m = np.zeros((wc, wc), np.float32)
    m[1:h + 1, 1:h + 1] = 1.0
    return jnp.asarray(m.reshape(1, wc * wc))


def _subsample_mat(hd, wcs, wcd):
    # 0/1 [wcs^2, wcd^2] matrix: dest interior (r+1,c+1) <- source (2r+1,2c+1).
    t = np.zeros((wcs * wcs, wcd * wcd), np.float32)
    for r in range(hd):
        for c in range(hd):
            t[(2 * r + 1) * wcs + (2 * c + 1), (r + 1) * wcd + (c + 1)] = 1.0
    return jnp.asarray(t)


def _make_phases(x_nchw):
    # 2x2 phase split of the pad-3 image; per-phase channels padded 3 -> 4 so
    # the in-kernel sublane concat stays 8-aligned.  Output: [B, 16, np*np].
    xp = jnp.pad(x_nchw.astype(jnp.float32), ((0, 0), (0, 0), (3, 3), (3, 3)))
    blocks = []
    for a in range(2):
        for b in range(2):
            ph = xp[:, :, a::2, b::2]
            ph = jnp.pad(ph, ((0, 0), (0, 1), (0, 0), (0, 0)))
            blocks.append(ph)
    phs = jnp.concatenate(blocks, axis=1)
    npg = phs.shape[-1]
    return phs.reshape(phs.shape[0], 16, npg * npg)


# ----------------------------- forward wrapper -----------------------------

def resnet2_forward(x_nchw, packed):
    B, cin, H, W = x_nchw.shape
    assert H == W and H % 2 == 0 and cin == 3, "even square RGB inputs assumed"
    h16 = H // 2                       # conv1 7x7/2 p3
    h8 = (h16 - 1) // 2 + 1            # maxpool 3x3/2 p1
    h4 = (h8 - 1) // 2 + 1             # layer2 stride 2
    h2 = (h4 - 1) // 2 + 1             # layer3 stride 2
    wc16, wc8, wc4, wc2 = h16 + 3, h8 + 2, h4 + 2, h2 + 2
    num_classes = packed["fcw"].shape[0]

    x_ph = _make_phases(x_nchw)
    assert x_ph.shape[-1] == wc16 * wc16

    inputs = [
        x_ph, packed["w_stem"], packed["b1"], _interior_mask(h16, wc16),
        _subsample_mat(h8, wc16, wc8),
        packed["w11"], packed["b11"], packed["w12"], packed["b12"],
        _interior_mask(h8, wc8), _subsample_mat(h4, wc8, wc4),
        packed["w21"], packed["b21"], packed["w22"], packed["b22"],
        packed["wd2"], packed["bd2"], _interior_mask(h4, wc4),
        _subsample_mat(h2, wc4, wc2),
        packed["w31"], packed["b31"], packed["w32"], packed["b32"],
        packed["wd3"], packed["bd3"], _interior_mask(h2, wc2),
        packed["fcw"], packed["fcb"],
    ]

    in_specs = [pl.BlockSpec((1,) + x_ph.shape[1:], lambda b: (b, 0, 0))]
    for a in inputs[1:]:
        in_specs.append(pl.BlockSpec(a.shape, lambda b, _n=a.ndim: (0,) * _n))

    kernel = functools.partial(
        _resnet2_kernel, wc16=wc16, wc8=wc8, wc4=wc4, wc2=wc2,
        inv_pool=1.0 / float(h2 * h2))

    out = pl.pallas_call(
        kernel,
        grid=(B,),
        in_specs=in_specs,
        out_specs=pl.BlockSpec((1, num_classes, 1), lambda b: (b, 0, 0)),
        out_shape=jax.ShapeDtypeStruct((B, num_classes, 1), jnp.float32),
        compiler_params=pltpu.CompilerParams(
            dimension_semantics=("parallel",)),
    )(*inputs)
    return out[:, :, 0]


# ----------------------------- parameter init -----------------------------

def init_params(key, layers=(1, 1, 1), num_classes=8):
    def conv_w(k, cout, cin, ksz):
        n = ksz * ksz * cout
        return (jax.random.normal(k, (cout, cin, ksz, ksz), jnp.float32)
                * math.sqrt(2.0 / n))

    def bn(c):
        # eval-mode BN with fresh stats: scale = 1/sqrt(var+eps), bias = 0
        s = jnp.full((c,), 1.0 / math.sqrt(1.0 + EPS), jnp.float32)
        b = jnp.zeros((c,), jnp.float32)
        return s, b

    keys = iter(jax.random.split(key, 64))
    params = {"conv1_w": conv_w(next(keys), 16, 3, 7)}
    params["bn1_s"], params["bn1_b"] = bn(16)

    inplanes = 16
    for li, (planes, nblocks, stride) in enumerate(
            zip((16, 32, 64), layers, (1, 2, 2)), start=1):
        blocks = []
        for bi in range(nblocks):
            s = stride if bi == 0 else 1
            bp = {"stride": s,
                  "w1": conv_w(next(keys), planes, inplanes, 3),
                  "w2": conv_w(next(keys), planes, planes, 3)}
            bp["s1"], bp["b1"] = bn(planes)
            bp["s2"], bp["b2"] = bn(planes)
            if s != 1 or inplanes != planes:
                bp["dw"] = conv_w(next(keys), planes, inplanes, 1)
                bp["ds"], bp["db"] = bn(planes)
            blocks.append(bp)
            inplanes = planes
        params[f"layer{li}"] = blocks

    bound = 1.0 / math.sqrt(64.0)
    params["fc_w"] = jax.random.uniform(
        next(keys), (num_classes, 64), jnp.float32, -bound, bound)
    params["fc_b"] = jax.random.uniform(
        next(keys), (num_classes,), jnp.float32, -bound, bound)
    return params


# ----------------------------- pure-JAX reference -----------------------------

def _conv_ref(x, w, stride, pad):
    return lax.conv_general_dilated(
        x, w, (stride, stride), ((pad, pad), (pad, pad)),
        dimension_numbers=("NCHW", "OIHW", "NCHW"),
        precision=lax.Precision.HIGHEST)


def _bn_ref(x, s, b):
    return x * s[None, :, None, None] + b[None, :, None, None]


def _block_ref(x, bp):
    s = bp["stride"]
    out = jax.nn.relu(_bn_ref(_conv_ref(x, bp["w1"], s, 1), bp["s1"], bp["b1"]))
    out = _bn_ref(_conv_ref(out, bp["w2"], 1, 1), bp["s2"], bp["b2"])
    if "dw" in bp:
        idn = _bn_ref(_conv_ref(x, bp["dw"], s, 0), bp["ds"], bp["db"])
    else:
        idn = x
    return jax.nn.relu(out + idn)


def resnet2_ref(x, params):
    x = jax.nn.relu(_bn_ref(_conv_ref(x, params["conv1_w"], 2, 3),
                            params["bn1_s"], params["bn1_b"]))
    x = lax.reduce_window(x, -jnp.inf, lax.max, (1, 1, 3, 3), (1, 1, 2, 2),
                          padding=((0, 0), (0, 0), (1, 1), (1, 1)))
    for li in (1, 2, 3):
        for bp in params[f"layer{li}"]:
            x = _block_ref(x, bp)
    pooled = jnp.mean(x, axis=(2, 3))
    return pooled @ params["fc_w"].T + params["fc_b"]


# ----------------------------- main -----------------------------

if __name__ == "__main__":
    key = jax.random.PRNGKey(0)
    pkey, xkey = jax.random.split(key)
    params = init_params(pkey, layers=(1, 1, 1), num_classes=8)

    # small CIFAR-like input, PyTorch NCHW convention
    x = jax.random.normal(xkey, (2, 3, 32, 32), jnp.float32)

    packed = pack_params(params)
    fwd = jax.jit(resnet2_forward)
    out = jax.block_until_ready(fwd(x, packed))

    ref = jax.block_until_ready(resnet2_ref(x, params))
    np.testing.assert_allclose(np.asarray(out), np.asarray(ref),
                               rtol=5e-2, atol=5e-2)
    print("KERNEL_OK")
</pallas_src>

<mosaic_0001>
module attributes {stable_mosaic.version = 11 : i64} {
  func.func @_resnet2_kernel(%arg0: i32, %arg1: memref<1x16x361xf32, #tpu.memory_space<vmem>>, %arg2: memref<16x256xf32, #tpu.memory_space<vmem>>, %arg3: memref<16x1xf32, #tpu.memory_space<vmem>>, %arg4: memref<1x361xf32, #tpu.memory_space<vmem>>, %arg5: memref<361x100xf32, #tpu.memory_space<vmem>>, %arg6: memref<16x144xf32, #tpu.memory_space<vmem>>, %arg7: memref<16x1xf32, #tpu.memory_space<vmem>>, %arg8: memref<16x144xf32, #tpu.memory_space<vmem>>, %arg9: memref<16x1xf32, #tpu.memory_space<vmem>>, %arg10: memref<1x100xf32, #tpu.memory_space<vmem>>, %arg11: memref<100x36xf32, #tpu.memory_space<vmem>>, %arg12: memref<32x144xf32, #tpu.memory_space<vmem>>, %arg13: memref<32x1xf32, #tpu.memory_space<vmem>>, %arg14: memref<32x288xf32, #tpu.memory_space<vmem>>, %arg15: memref<32x1xf32, #tpu.memory_space<vmem>>, %arg16: memref<32x16xf32, #tpu.memory_space<vmem>>, %arg17: memref<32x1xf32, #tpu.memory_space<vmem>>, %arg18: memref<1x36xf32, #tpu.memory_space<vmem>>, %arg19: memref<36x16xf32, #tpu.memory_space<vmem>>, %arg20: memref<64x288xf32, #tpu.memory_space<vmem>>, %arg21: memref<64x1xf32, #tpu.memory_space<vmem>>, %arg22: memref<64x576xf32, #tpu.memory_space<vmem>>, %arg23: memref<64x1xf32, #tpu.memory_space<vmem>>, %arg24: memref<64x32xf32, #tpu.memory_space<vmem>>, %arg25: memref<64x1xf32, #tpu.memory_space<vmem>>, %arg26: memref<1x16xf32, #tpu.memory_space<vmem>>, %arg27: memref<8x64xf32, #tpu.memory_space<vmem>>, %arg28: memref<8x1xf32, #tpu.memory_space<vmem>>, %arg29: memref<1x8x1xf32, #tpu.memory_space<vmem>>) attributes {dimension_semantics = [#tpu.dimension_semantics<parallel>], iteration_bounds = array<i64: 2>, scalar_prefetch = 0 : i64, scratch_operands = 0 : i64, tpu.core_type = #tpu.core_type<tc>, window_params = [{transform_indices = @transform_0, window_bounds = array<i64: 1, 16, 361>}, {pipeline_mode = #tpu.pipeline_mode<synchronous>, transform_indices = @transform_1, window_bounds = array<i64: 16, 256>}, {pipeline_mode = #tpu.pipeline_mode<synchronous>, transform_indices = @transform_2, window_bounds = array<i64: 16, 1>}, {pipeline_mode = #tpu.pipeline_mode<synchronous>, transform_indices = @transform_3, window_bounds = array<i64: 1, 361>}, {pipeline_mode = #tpu.pipeline_mode<synchronous>, transform_indices = @transform_4, window_bounds = array<i64: 361, 100>}, {pipeline_mode = #tpu.pipeline_mode<synchronous>, transform_indices = @transform_5, window_bounds = array<i64: 16, 144>}, {pipeline_mode = #tpu.pipeline_mode<synchronous>, transform_indices = @transform_6, window_bounds = array<i64: 16, 1>}, {pipeline_mode = #tpu.pipeline_mode<synchronous>, transform_indices = @transform_7, window_bounds = array<i64: 16, 144>}, {pipeline_mode = #tpu.pipeline_mode<synchronous>, transform_indices = @transform_8, window_bounds = array<i64: 16, 1>}, {pipeline_mode = #tpu.pipeline_mode<synchronous>, transform_indices = @transform_9, window_bounds = array<i64: 1, 100>}, {pipeline_mode = #tpu.pipeline_mode<synchronous>, transform_indices = @transform_10, window_bounds = array<i64: 100, 36>}, {pipeline_mode = #tpu.pipeline_mode<synchronous>, transform_indices = @transform_11, window_bounds = array<i64: 32, 144>}, {pipeline_mode = #tpu.pipeline_mode<synchronous>, transform_indices = @transform_12, window_bounds = array<i64: 32, 1>}, {pipeline_mode = #tpu.pipeline_mode<synchronous>, transform_indices = @transform_13, window_bounds = array<i64: 32, 288>}, {pipeline_mode = #tpu.pipeline_mode<synchronous>, transform_indices = @transform_14, window_bounds = array<i64: 32, 1>}, {pipeline_mode = #tpu.pipeline_mode<synchronous>, transform_indices = @transform_15, window_bounds = array<i64: 32, 16>}, {pipeline_mode = #tpu.pipeline_mode<synchronous>, transform_indices = @transform_16, window_bounds = array<i64: 32, 1>}, {pipeline_mode = #tpu.pipeline_mode<synchronous>, transform_indices = @transform_17, window_bounds = array<i64: 1, 36>}, {pipeline_mode = #tpu.pipeline_mode<synchronous>, transform_indices = @transform_18, window_bounds = array<i64: 36, 16>}, {pipeline_mode = #tpu.pipeline_mode<synchronous>, transform_indices = @transform_19, window_bounds = array<i64: 64, 288>}, {pipeline_mode = #tpu.pipeline_mode<synchronous>, transform_indices = @transform_20, window_bounds = array<i64: 64, 1>}, {pipeline_mode = #tpu.pipeline_mode<synchronous>, transform_indices = @transform_21, window_bounds = array<i64: 64, 576>}, {pipeline_mode = #tpu.pipeline_mode<synchronous>, transform_indices = @transform_22, window_bounds = array<i64: 64, 1>}, {pipeline_mode = #tpu.pipeline_mode<synchronous>, transform_indices = @transform_23, window_bounds = array<i64: 64, 32>}, {pipeline_mode = #tpu.pipeline_mode<synchronous>, transform_indices = @transform_24, window_bounds = array<i64: 64, 1>}, {pipeline_mode = #tpu.pipeline_mode<synchronous>, transform_indices = @transform_25, window_bounds = array<i64: 1, 16>}, {pipeline_mode = #tpu.pipeline_mode<synchronous>, transform_indices = @transform_26, window_bounds = array<i64: 8, 64>}, {pipeline_mode = #tpu.pipeline_mode<synchronous>, transform_indices = @transform_27, window_bounds = array<i64: 8, 1>}, {transform_indices = @transform_28, window_bounds = array<i64: 1, 8, 1>}]} {
    %c0 = arith.constant 0 : index
    %c0_0 = arith.constant 0 : index
    %c0_1 = arith.constant 0 : index
    %0 = vector.load %arg1[%c0, %c0_0, %c0_1] : memref<1x16x361xf32, #tpu.memory_space<vmem>>, vector<1x16x361xf32>
    %1 = vector.shape_cast %0 : vector<1x16x361xf32> to vector<16x361xf32>
    %cst = arith.constant 0.000000e+00 : f32
    %2 = vector.broadcast %cst : f32 to vector<16x40xf32>
    %3 = tpu.concatenate %2, %1, %2 in 1 : vector<16x40xf32>, vector<16x361xf32>, vector<16x40xf32> -> vector<16x441xf32>
    %4 = vector.extract_strided_slice %3 {offsets = [0, 20], sizes = [16, 361], strides = [1, 1]} : vector<16x441xf32> to vector<16x361xf32>
    %5 = vector.extract_strided_slice %3 {offsets = [0, 21], sizes = [16, 361], strides = [1, 1]} : vector<16x441xf32> to vector<16x361xf32>
    %6 = vector.extract_strided_slice %3 {offsets = [0, 22], sizes = [16, 361], strides = [1, 1]} : vector<16x441xf32> to vector<16x361xf32>
    %7 = vector.extract_strided_slice %3 {offsets = [0, 23], sizes = [16, 361], strides = [1, 1]} : vector<16x441xf32> to vector<16x361xf32>
    %8 = vector.extract_strided_slice %3 {offsets = [0, 39], sizes = [16, 361], strides = [1, 1]} : vector<16x441xf32> to vector<16x361xf32>
    %9 = vector.extract_strided_slice %3 {offsets = [0, 40], sizes = [16, 361], strides = [1, 1]} : vector<16x441xf32> to vector<16x361xf32>
    %10 = vector.extract_strided_slice %3 {offsets = [0, 41], sizes = [16, 361], strides = [1, 1]} : vector<16x441xf32> to vector<16x361xf32>
    %11 = vector.extract_strided_slice %3 {offsets = [0, 42], sizes = [16, 361], strides = [1, 1]} : vector<16x441xf32> to vector<16x361xf32>
    %12 = vector.extract_strided_slice %3 {offsets = [0, 58], sizes = [16, 361], strides = [1, 1]} : vector<16x441xf32> to vector<16x361xf32>
    %13 = vector.extract_strided_slice %3 {offsets = [0, 59], sizes = [16, 361], strides = [1, 1]} : vector<16x441xf32> to vector<16x361xf32>
    %14 = vector.extract_strided_slice %3 {offsets = [0, 60], sizes = [16, 361], strides = [1, 1]} : vector<16x441xf32> to vector<16x361xf32>
    %15 = vector.extract_strided_slice %3 {offsets = [0, 61], sizes = [16, 361], strides = [1, 1]} : vector<16x441xf32> to vector<16x361xf32>
    %16 = vector.extract_strided_slice %3 {offsets = [0, 77], sizes = [16, 361], strides = [1, 1]} : vector<16x441xf32> to vector<16x361xf32>
    %17 = vector.extract_strided_slice %3 {offsets = [0, 78], sizes = [16, 361], strides = [1, 1]} : vector<16x441xf32> to vector<16x361xf32>
    %18 = vector.extract_strided_slice %3 {offsets = [0, 79], sizes = [16, 361], strides = [1, 1]} : vector<16x441xf32> to vector<16x361xf32>
    %19 = vector.extract_strided_slice %3 {offsets = [0, 80], sizes = [16, 361], strides = [1, 1]} : vector<16x441xf32> to vector<16x361xf32>
    %20 = tpu.concatenate %4, %5, %6, %7, %8, %9, %10, %11, %12, %13, %14, %15, %16, %17, %18, %19 in 0 : vector<16x361xf32>, vector<16x361xf32>, vector<16x361xf32>, vector<16x361xf32>, vector<16x361xf32>, vector<16x361xf32>, vector<16x361xf32>, vector<16x361xf32>, vector<16x361xf32>, vector<16x361xf32>, vector<16x361xf32>, vector<16x361xf32>, vector<16x361xf32>, vector<16x361xf32>, vector<16x361xf32>, vector<16x361xf32> -> vector<256x361xf32>
    %c0_2 = arith.constant 0 : index
    %c0_3 = arith.constant 0 : index
    %21 = vector.load %arg2[%c0_2, %c0_3] : memref<16x256xf32, #tpu.memory_space<vmem>>, vector<16x256xf32>
    %cst_4 = arith.constant dense<0.000000e+00> : vector<16x361xf32>
    %22 = tpu.matmul %21, %20, %cst_4 {dimension_numbers = #tpu.dot_dimension_numbers<[1], [0], [0], [1], [0, 0, 1, 1], [], []>} : vector<16x256xf32>, vector<256x361xf32>, vector<16x361xf32> -> vector<16x361xf32>
    %c0_5 = arith.constant 0 : index
    %c0_6 = arith.constant 0 : index
    %23 = vector.load %arg3[%c0_5, %c0_6] : memref<16x1xf32, #tpu.memory_space<vmem>>, vector<16x1xf32>
    %24 = vector.broadcast %23 : vector<16x1xf32> to vector<16x361xf32>
    %25 = arith.addf %22, %24 : vector<16x361xf32>
    %cst_7 = arith.constant 0.000000e+00 : f32
    %26 = vector.broadcast %cst_7 : f32 to vector<16x361xf32>
    %27 = arith.maximumf %25, %26 : vector<16x361xf32>
    %c0_8 = arith.constant 0 : index
    %c0_9 = arith.constant 0 : index
    %28 = vector.load %arg4[%c0_8, %c0_9] : memref<1x361xf32, #tpu.memory_space<vmem>>, vector<1x361xf32>
    %29 = vector.broadcast %28 : vector<1x361xf32> to vector<16x361xf32>
    %30 = arith.mulf %27, %29 : vector<16x361xf32>
    %cst_10 = arith.constant 0.000000e+00 : f32
    %31 = vector.broadcast %cst_10 : f32 to vector<16x20xf32>
    %32 = tpu.concatenate %31, %30, %31 in 1 : vector<16x20xf32>, vector<16x361xf32>, vector<16x20xf32> -> vector<16x401xf32>
    %33 = vector.extract_strided_slice %32 {offsets = [0, 0], sizes = [16, 361], strides = [1, 1]} : vector<16x401xf32> to vector<16x361xf32>
    %34 = vector.extract_strided_slice %32 {offsets = [0, 1], sizes = [16, 361], strides = [1, 1]} : vector<16x401xf32> to vector<16x361xf32>
    %35 = vector.extract_strided_slice %32 {offsets = [0, 2], sizes = [16, 361], strides = [1, 1]} : vector<16x401xf32> to vector<16x361xf32>
    %36 = vector.extract_strided_slice %32 {offsets = [0, 19], sizes = [16, 361], strides = [1, 1]} : vector<16x401xf32> to vector<16x361xf32>
    %37 = vector.extract_strided_slice %32 {offsets = [0, 20], sizes = [16, 361], strides = [1, 1]} : vector<16x401xf32> to vector<16x361xf32>
    %38 = vector.extract_strided_slice %32 {offsets = [0, 21], sizes = [16, 361], strides = [1, 1]} : vector<16x401xf32> to vector<16x361xf32>
    %39 = vector.extract_strided_slice %32 {offsets = [0, 38], sizes = [16, 361], strides = [1, 1]} : vector<16x401xf32> to vector<16x361xf32>
    %40 = vector.extract_strided_slice %32 {offsets = [0, 39], sizes = [16, 361], strides = [1, 1]} : vector<16x401xf32> to vector<16x361xf32>
    %41 = vector.extract_strided_slice %32 {offsets = [0, 40], sizes = [16, 361], strides = [1, 1]} : vector<16x401xf32> to vector<16x361xf32>
    %42 = arith.maximumf %33, %34 : vector<16x361xf32>
    %43 = arith.maximumf %42, %35 : vector<16x361xf32>
    %44 = arith.maximumf %43, %36 : vector<16x361xf32>
    %45 = arith.maximumf %44, %37 : vector<16x361xf32>
    %46 = arith.maximumf %45, %38 : vector<16x361xf32>
    %47 = arith.maximumf %46, %39 : vector<16x361xf32>
    %48 = arith.maximumf %47, %40 : vector<16x361xf32>
    %49 = arith.maximumf %48, %41 : vector<16x361xf32>
    %c0_11 = arith.constant 0 : index
    %c0_12 = arith.constant 0 : index
    %50 = vector.load %arg5[%c0_11, %c0_12] : memref<361x100xf32, #tpu.memory_space<vmem>>, vector<361x100xf32>
    %cst_13 = arith.constant dense<0.000000e+00> : vector<16x100xf32>
    %51 = tpu.matmul %49, %50, %cst_13 {dimension_numbers = #tpu.dot_dimension_numbers<[1], [0], [0], [1], [0, 0, 1, 1], [], []>} : vector<16x361xf32>, vector<361x100xf32>, vector<16x100xf32> -> vector<16x100xf32>
    %cst_14 = arith.constant 0.000000e+00 : f32
    %52 = vector.broadcast %cst_14 : f32 to vector<16x11xf32>
    %53 = tpu.concatenate %52, %51, %52 in 1 : vector<16x11xf32>, vector<16x100xf32>, vector<16x11xf32> -> vector<16x122xf32>
    %54 = vector.extract_strided_slice %53 {offsets = [0, 0], sizes = [16, 100], strides = [1, 1]} : vector<16x122xf32> to vector<16x100xf32>
    %55 = vector.extract_strided_slice %53 {offsets = [0, 1], sizes = [16, 100], strides = [1, 1]} : vector<16x122xf32> to vector<16x100xf32>
    %56 = vector.extract_strided_slice %53 {offsets = [0, 2], sizes = [16, 100], strides = [1, 1]} : vector<16x122xf32> to vector<16x100xf32>
    %57 = vector.extract_strided_slice %53 {offsets = [0, 10], sizes = [16, 100], strides = [1, 1]} : vector<16x122xf32> to vector<16x100xf32>
    %58 = vector.extract_strided_slice %53 {offsets = [0, 11], sizes = [16, 100], strides = [1, 1]} : vector<16x122xf32> to vector<16x100xf32>
    %59 = vector.extract_strided_slice %53 {offsets = [0, 12], sizes = [16, 100], strides = [1, 1]} : vector<16x122xf32> to vector<16x100xf32>
    %60 = vector.extract_strided_slice %53 {offsets = [0, 20], sizes = [16, 100], strides = [1, 1]} : vector<16x122xf32> to vector<16x100xf32>
    %61 = vector.extract_strided_slice %53 {offsets = [0, 21], sizes = [16, 100], strides = [1, 1]} : vector<16x122xf32> to vector<16x100xf32>
    %62 = vector.extract_strided_slice %53 {offsets = [0, 22], sizes = [16, 100], strides = [1, 1]} : vector<16x122xf32> to vector<16x100xf32>
    %63 = tpu.concatenate %54, %55, %56, %57, %58, %59, %60, %61, %62 in 0 : vector<16x100xf32>, vector<16x100xf32>, vector<16x100xf32>, vector<16x100xf32>, vector<16x100xf32>, vector<16x100xf32>, vector<16x100xf32>, vector<16x100xf32>, vector<16x100xf32> -> vector<144x100xf32>
    %c0_15 = arith.constant 0 : index
    %c0_16 = arith.constant 0 : index
    %64 = vector.load %arg6[%c0_15, %c0_16] : memref<16x144xf32, #tpu.memory_space<vmem>>, vector<16x144xf32>
    %cst_17 = arith.constant dense<0.000000e+00> : vector<16x100xf32>
    %65 = tpu.matmul %64, %63, %cst_17 {dimension_numbers = #tpu.dot_dimension_numbers<[1], [0], [0], [1], [0, 0, 1, 1], [], []>} : vector<16x144xf32>, vector<144x100xf32>, vector<16x100xf32> -> vector<16x100xf32>
    %c0_18 = arith.constant 0 : index
    %c0_19 = arith.constant 0 : index
    %66 = vector.load %arg7[%c0_18, %c0_19] : memref<16x1xf32, #tpu.memory_space<vmem>>, vector<16x1xf32>
    %67 = vector.broadcast %66 : vector<16x1xf32> to vector<16x100xf32>
    %68 = arith.addf %65, %67 : vector<16x100xf32>
    %cst_20 = arith.constant 0.000000e+00 : f32
    %69 = vector.broadcast %cst_20 : f32 to vector<16x100xf32>
    %70 = arith.maximumf %68, %69 : vector<16x100xf32>
    %c0_21 = arith.constant 0 : index
    %c0_22 = arith.constant 0 : index
    %71 = vector.load %arg10[%c0_21, %c0_22] : memref<1x100xf32, #tpu.memory_space<vmem>>, vector<1x100xf32>
    %72 = vector.broadcast %71 : vector<1x100xf32> to vector<16x100xf32>
    %73 = arith.mulf %70, %72 : vector<16x100xf32>
    %cst_23 = arith.constant 0.000000e+00 : f32
    %74 = vector.broadcast %cst_23 : f32 to vector<16x11xf32>
    %75 = tpu.concatenate %74, %73, %74 in 1 : vector<16x11xf32>, vector<16x100xf32>, vector<16x11xf32> -> vector<16x122xf32>
    %76 = vector.extract_strided_slice %75 {offsets = [0, 0], sizes = [16, 100], strides = [1, 1]} : vector<16x122xf32> to vector<16x100xf32>
    %77 = vector.extract_strided_slice %75 {offsets = [0, 1], sizes = [16, 100], strides = [1, 1]} : vector<16x122xf32> to vector<16x100xf32>
    %78 = vector.extract_strided_slice %75 {offsets = [0, 2], sizes = [16, 100], strides = [1, 1]} : vector<16x122xf32> to vector<16x100xf32>
    %79 = vector.extract_strided_slice %75 {offsets = [0, 10], sizes = [16, 100], strides = [1, 1]} : vector<16x122xf32> to vector<16x100xf32>
    %80 = vector.extract_strided_slice %75 {offsets = [0, 11], sizes = [16, 100], strides = [1, 1]} : vector<16x122xf32> to vector<16x100xf32>
    %81 = vector.extract_strided_slice %75 {offsets = [0, 12], sizes = [16, 100], strides = [1, 1]} : vector<16x122xf32> to vector<16x100xf32>
    %82 = vector.extract_strided_slice %75 {offsets = [0, 20], sizes = [16, 100], strides = [1, 1]} : vector<16x122xf32> to vector<16x100xf32>
    %83 = vector.extract_strided_slice %75 {offsets = [0, 21], sizes = [16, 100], strides = [1, 1]} : vector<16x122xf32> to vector<16x100xf32>
    %84 = vector.extract_strided_slice %75 {offsets = [0, 22], sizes = [16, 100], strides = [1, 1]} : vector<16x122xf32> to vector<16x100xf32>
    %85 = tpu.concatenate %76, %77, %78, %79, %80, %81, %82, %83, %84 in 0 : vector<16x100xf32>, vector<16x100xf32>, vector<16x100xf32>, vector<16x100xf32>, vector<16x100xf32>, vector<16x100xf32>, vector<16x100xf32>, vector<16x100xf32>, vector<16x100xf32> -> vector<144x100xf32>
    %c0_24 = arith.constant 0 : index
    %c0_25 = arith.constant 0 : index
    %86 = vector.load %arg8[%c0_24, %c0_25] : memref<16x144xf32, #tpu.memory_space<vmem>>, vector<16x144xf32>
    %cst_26 = arith.constant dense<0.000000e+00> : vector<16x100xf32>
    %87 = tpu.matmul %86, %85, %cst_26 {dimension_numbers = #tpu.dot_dimension_numbers<[1], [0], [0], [1], [0, 0, 1, 1], [], []>} : vector<16x144xf32>, vector<144x100xf32>, vector<16x100xf32> -> vector<16x100xf32>
    %c0_27 = arith.constant 0 : index
    %c0_28 = arith.constant 0 : index
    %88 = vector.load %arg9[%c0_27, %c0_28] : memref<16x1xf32, #tpu.memory_space<vmem>>, vector<16x1xf32>
    %89 = vector.broadcast %88 : vector<16x1xf32> to vector<16x100xf32>
    %90 = arith.addf %87, %89 : vector<16x100xf32>
    %91 = arith.addf %90, %51 : vector<16x100xf32>
    %cst_29 = arith.constant 0.000000e+00 : f32
    %92 = vector.broadcast %cst_29 : f32 to vector<16x100xf32>
    %93 = arith.maximumf %91, %92 : vector<16x100xf32>
    %c0_30 = arith.constant 0 : index
    %c0_31 = arith.constant 0 : index
    %94 = vector.load %arg10[%c0_30, %c0_31] : memref<1x100xf32, #tpu.memory_space<vmem>>, vector<1x100xf32>
    %95 = vector.broadcast %94 : vector<1x100xf32> to vector<16x100xf32>
    %96 = arith.mulf %93, %95 : vector<16x100xf32>
    %cst_32 = arith.constant 0.000000e+00 : f32
    %97 = vector.broadcast %cst_32 : f32 to vector<16x11xf32>
    %98 = tpu.concatenate %97, %96, %97 in 1 : vector<16x11xf32>, vector<16x100xf32>, vector<16x11xf32> -> vector<16x122xf32>
    %99 = vector.extract_strided_slice %98 {offsets = [0, 0], sizes = [16, 100], strides = [1, 1]} : vector<16x122xf32> to vector<16x100xf32>
    %100 = vector.extract_strided_slice %98 {offsets = [0, 1], sizes = [16, 100], strides = [1, 1]} : vector<16x122xf32> to vector<16x100xf32>
    %101 = vector.extract_strided_slice %98 {offsets = [0, 2], sizes = [16, 100], strides = [1, 1]} : vector<16x122xf32> to vector<16x100xf32>
    %102 = vector.extract_strided_slice %98 {offsets = [0, 10], sizes = [16, 100], strides = [1, 1]} : vector<16x122xf32> to vector<16x100xf32>
    %103 = vector.extract_strided_slice %98 {offsets = [0, 11], sizes = [16, 100], strides = [1, 1]} : vector<16x122xf32> to vector<16x100xf32>
    %104 = vector.extract_strided_slice %98 {offsets = [0, 12], sizes = [16, 100], strides = [1, 1]} : vector<16x122xf32> to vector<16x100xf32>
    %105 = vector.extract_strided_slice %98 {offsets = [0, 20], sizes = [16, 100], strides = [1, 1]} : vector<16x122xf32> to vector<16x100xf32>
    %106 = vector.extract_strided_slice %98 {offsets = [0, 21], sizes = [16, 100], strides = [1, 1]} : vector<16x122xf32> to vector<16x100xf32>
    %107 = vector.extract_strided_slice %98 {offsets = [0, 22], sizes = [16, 100], strides = [1, 1]} : vector<16x122xf32> to vector<16x100xf32>
    %108 = tpu.concatenate %99, %100, %101, %102, %103, %104, %105, %106, %107 in 0 : vector<16x100xf32>, vector<16x100xf32>, vector<16x100xf32>, vector<16x100xf32>, vector<16x100xf32>, vector<16x100xf32>, vector<16x100xf32>, vector<16x100xf32>, vector<16x100xf32> -> vector<144x100xf32>
    %c0_33 = arith.constant 0 : index
    %c0_34 = arith.constant 0 : index
    %109 = vector.load %arg12[%c0_33, %c0_34] : memref<32x144xf32, #tpu.memory_space<vmem>>, vector<32x144xf32>
    %cst_35 = arith.constant dense<0.000000e+00> : vector<32x100xf32>
    %110 = tpu.matmul %109, %108, %cst_35 {dimension_numbers = #tpu.dot_dimension_numbers<[1], [0], [0], [1], [0, 0, 1, 1], [], []>} : vector<32x144xf32>, vector<144x100xf32>, vector<32x100xf32> -> vector<32x100xf32>
    %c0_36 = arith.constant 0 : index
    %c0_37 = arith.constant 0 : index
    %111 = vector.load %arg13[%c0_36, %c0_37] : memref<32x1xf32, #tpu.memory_space<vmem>>, vector<32x1xf32>
    %112 = vector.broadcast %111 : vector<32x1xf32> to vector<32x100xf32>
    %113 = arith.addf %110, %112 : vector<32x100xf32>
    %cst_38 = arith.constant 0.000000e+00 : f32
    %114 = vector.broadcast %cst_38 : f32 to vector<32x100xf32>
    %115 = arith.maximumf %113, %114 : vector<32x100xf32>
    %c0_39 = arith.constant 0 : index
    %c0_40 = arith.constant 0 : index
    %116 = vector.load %arg11[%c0_39, %c0_40] : memref<100x36xf32, #tpu.memory_space<vmem>>, vector<100x36xf32>
    %cst_41 = arith.constant dense<0.000000e+00> : vector<32x36xf32>
    %117 = tpu.matmul %115, %116, %cst_41 {dimension_numbers = #tpu.dot_dimension_numbers<[1], [0], [0], [1], [0, 0, 1, 1], [], []>} : vector<32x100xf32>, vector<100x36xf32>, vector<32x36xf32> -> vector<32x36xf32>
    %cst_42 = arith.constant 0.000000e+00 : f32
    %118 = vector.broadcast %cst_42 : f32 to vector<32x7xf32>
    %119 = tpu.concatenate %118, %117, %118 in 1 : vector<32x7xf32>, vector<32x36xf32>, vector<32x7xf32> -> vector<32x50xf32>
    %120 = vector.extract_strided_slice %119 {offsets = [0, 0], sizes = [32, 36], strides = [1, 1]} : vector<32x50xf32> to vector<32x36xf32>
    %121 = vector.extract_strided_slice %119 {offsets = [0, 1], sizes = [32, 36], strides = [1, 1]} : vector<32x50xf32> to vector<32x36xf32>
    %122 = vector.extract_strided_slice %119 {offsets = [0, 2], sizes = [32, 36], strides = [1, 1]} : vector<32x50xf32> to vector<32x36xf32>
    %123 = vector.extract_strided_slice %119 {offsets = [0, 6], sizes = [32, 36], strides = [1, 1]} : vector<32x50xf32> to vector<32x36xf32>
    %124 = vector.extract_strided_slice %119 {offsets = [0, 7], sizes = [32, 36], strides = [1, 1]} : vector<32x50xf32> to vector<32x36xf32>
    %125 = vector.extract_strided_slice %119 {offsets = [0, 8], sizes = [32, 36], strides = [1, 1]} : vector<32x50xf32> to vector<32x36xf32>
    %126 = vector.extract_strided_slice %119 {offsets = [0, 12], sizes = [32, 36], strides = [1, 1]} : vector<32x50xf32> to vector<32x36xf32>
    %127 = vector.extract_strided_slice %119 {offsets = [0, 13], sizes = [32, 36], strides = [1, 1]} : vector<32x50xf32> to vector<32x36xf32>
    %128 = vector.extract_strided_slice %119 {offsets = [0, 14], sizes = [32, 36], strides = [1, 1]} : vector<32x50xf32> to vector<32x36xf32>
    %129 = tpu.concatenate %120, %121, %122, %123, %124, %125, %126, %127, %128 in 0 : vector<32x36xf32>, vector<32x36xf32>, vector<32x36xf32>, vector<32x36xf32>, vector<32x36xf32>, vector<32x36xf32>, vector<32x36xf32>, vector<32x36xf32>, vector<32x36xf32> -> vector<288x36xf32>
    %c0_43 = arith.constant 0 : index
    %c0_44 = arith.constant 0 : index
    %130 = vector.load %arg14[%c0_43, %c0_44] : memref<32x288xf32, #tpu.memory_space<vmem>>, vector<32x288xf32>
    %cst_45 = arith.constant dense<0.000000e+00> : vector<32x36xf32>
    %131 = tpu.matmul %130, %129, %cst_45 {dimension_numbers = #tpu.dot_dimension_numbers<[1], [0], [0], [1], [0, 0, 1, 1], [], []>} : vector<32x288xf32>, vector<288x36xf32>, vector<32x36xf32> -> vector<32x36xf32>
    %c0_46 = arith.constant 0 : index
    %c0_47 = arith.constant 0 : index
    %132 = vector.load %arg15[%c0_46, %c0_47] : memref<32x1xf32, #tpu.memory_space<vmem>>, vector<32x1xf32>
    %133 = vector.broadcast %132 : vector<32x1xf32> to vector<32x36xf32>
    %134 = arith.addf %131, %133 : vector<32x36xf32>
    %c0_48 = arith.constant 0 : index
    %c0_49 = arith.constant 0 : index
    %135 = vector.load %arg16[%c0_48, %c0_49] : memref<32x16xf32, #tpu.memory_space<vmem>>, vector<32x16xf32>
    %c0_50 = arith.constant 0 : index
    %c0_51 = arith.constant 0 : index
    %136 = vector.load %arg11[%c0_50, %c0_51] : memref<100x36xf32, #tpu.memory_space<vmem>>, vector<100x36xf32>
    %cst_52 = arith.constant dense<0.000000e+00> : vector<16x36xf32>
    %137 = tpu.matmul %96, %136, %cst_52 {dimension_numbers = #tpu.dot_dimension_numbers<[1], [0], [0], [1], [0, 0, 1, 1], [], []>} : vector<16x100xf32>, vector<100x36xf32>, vector<16x36xf32> -> vector<16x36xf32>
    %cst_53 = arith.constant dense<0.000000e+00> : vector<32x36xf32>
    %138 = tpu.matmul %135, %137, %cst_53 {dimension_numbers = #tpu.dot_dimension_numbers<[1], [0], [0], [1], [0, 0, 1, 1], [], []>} : vector<32x16xf32>, vector<16x36xf32>, vector<32x36xf32> -> vector<32x36xf32>
    %c0_54 = arith.constant 0 : index
    %c0_55 = arith.constant 0 : index
    %139 = vector.load %arg17[%c0_54, %c0_55] : memref<32x1xf32, #tpu.memory_space<vmem>>, vector<32x1xf32>
    %140 = vector.broadcast %139 : vector<32x1xf32> to vector<32x36xf32>
    %141 = arith.addf %138, %140 : vector<32x36xf32>
    %142 = arith.addf %134, %141 : vector<32x36xf32>
    %cst_56 = arith.constant 0.000000e+00 : f32
    %143 = vector.broadcast %cst_56 : f32 to vector<32x36xf32>
    %144 = arith.maximumf %142, %143 : vector<32x36xf32>
    %c0_57 = arith.constant 0 : index
    %c0_58 = arith.constant 0 : index
    %145 = vector.load %arg18[%c0_57, %c0_58] : memref<1x36xf32, #tpu.memory_space<vmem>>, vector<1x36xf32>
    %146 = vector.broadcast %145 : vector<1x36xf32> to vector<32x36xf32>
    %147 = arith.mulf %144, %146 : vector<32x36xf32>
    %cst_59 = arith.constant 0.000000e+00 : f32
    %148 = vector.broadcast %cst_59 : f32 to vector<32x7xf32>
    %149 = tpu.concatenate %148, %147, %148 in 1 : vector<32x7xf32>, vector<32x36xf32>, vector<32x7xf32> -> vector<32x50xf32>
    %150 = vector.extract_strided_slice %149 {offsets = [0, 0], sizes = [32, 36], strides = [1, 1]} : vector<32x50xf32> to vector<32x36xf32>
    %151 = vector.extract_strided_slice %149 {offsets = [0, 1], sizes = [32, 36], strides = [1, 1]} : vector<32x50xf32> to vector<32x36xf32>
    %152 = vector.extract_strided_slice %149 {offsets = [0, 2], sizes = [32, 36], strides = [1, 1]} : vector<32x50xf32> to vector<32x36xf32>
    %153 = vector.extract_strided_slice %149 {offsets = [0, 6], sizes = [32, 36], strides = [1, 1]} : vector<32x50xf32> to vector<32x36xf32>
    %154 = vector.extract_strided_slice %149 {offsets = [0, 7], sizes = [32, 36], strides = [1, 1]} : vector<32x50xf32> to vector<32x36xf32>
    %155 = vector.extract_strided_slice %149 {offsets = [0, 8], sizes = [32, 36], strides = [1, 1]} : vector<32x50xf32> to vector<32x36xf32>
    %156 = vector.extract_strided_slice %149 {offsets = [0, 12], sizes = [32, 36], strides = [1, 1]} : vector<32x50xf32> to vector<32x36xf32>
    %157 = vector.extract_strided_slice %149 {offsets = [0, 13], sizes = [32, 36], strides = [1, 1]} : vector<32x50xf32> to vector<32x36xf32>
    %158 = vector.extract_strided_slice %149 {offsets = [0, 14], sizes = [32, 36], strides = [1, 1]} : vector<32x50xf32> to vector<32x36xf32>
    %159 = tpu.concatenate %150, %151, %152, %153, %154, %155, %156, %157, %158 in 0 : vector<32x36xf32>, vector<32x36xf32>, vector<32x36xf32>, vector<32x36xf32>, vector<32x36xf32>, vector<32x36xf32>, vector<32x36xf32>, vector<32x36xf32>, vector<32x36xf32> -> vector<288x36xf32>
    %c0_60 = arith.constant 0 : index
    %c0_61 = arith.constant 0 : index
    %160 = vector.load %arg20[%c0_60, %c0_61] : memref<64x288xf32, #tpu.memory_space<vmem>>, vector<64x288xf32>
    %cst_62 = arith.constant dense<0.000000e+00> : vector<64x36xf32>
    %161 = tpu.matmul %160, %159, %cst_62 {dimension_numbers = #tpu.dot_dimension_numbers<[1], [0], [0], [1], [0, 0, 1, 1], [], []>} : vector<64x288xf32>, vector<288x36xf32>, vector<64x36xf32> -> vector<64x36xf32>
    %c0_63 = arith.constant 0 : index
    %c0_64 = arith.constant 0 : index
    %162 = vector.load %arg21[%c0_63, %c0_64] : memref<64x1xf32, #tpu.memory_space<vmem>>, vector<64x1xf32>
    %163 = vector.broadcast %162 : vector<64x1xf32> to vector<64x36xf32>
    %164 = arith.addf %161, %163 : vector<64x36xf32>
    %cst_65 = arith.constant 0.000000e+00 : f32
    %165 = vector.broadcast %cst_65 : f32 to vector<64x36xf32>
    %166 = arith.maximumf %164, %165 : vector<64x36xf32>
    %c0_66 = arith.constant 0 : index
    %c0_67 = arith.constant 0 : index
    %167 = vector.load %arg19[%c0_66, %c0_67] : memref<36x16xf32, #tpu.memory_space<vmem>>, vector<36x16xf32>
    %cst_68 = arith.constant dense<0.000000e+00> : vector<64x16xf32>
    %168 = tpu.matmul %166, %167, %cst_68 {dimension_numbers = #tpu.dot_dimension_numbers<[1], [0], [0], [1], [0, 0, 1, 1], [], []>} : vector<64x36xf32>, vector<36x16xf32>, vector<64x16xf32> -> vector<64x16xf32>
    %cst_69 = arith.constant 0.000000e+00 : f32
    %169 = vector.broadcast %cst_69 : f32 to vector<64x5xf32>
    %170 = tpu.concatenate %169, %168, %169 in 1 : vector<64x5xf32>, vector<64x16xf32>, vector<64x5xf32> -> vector<64x26xf32>
    %171 = vector.extract_strided_slice %170 {offsets = [0, 0], sizes = [64, 16], strides = [1, 1]} : vector<64x26xf32> to vector<64x16xf32>
    %172 = vector.extract_strided_slice %170 {offsets = [0, 1], sizes = [64, 16], strides = [1, 1]} : vector<64x26xf32> to vector<64x16xf32>
    %173 = vector.extract_strided_slice %170 {offsets = [0, 2], sizes = [64, 16], strides = [1, 1]} : vector<64x26xf32> to vector<64x16xf32>
    %174 = vector.extract_strided_slice %170 {offsets = [0, 4], sizes = [64, 16], strides = [1, 1]} : vector<64x26xf32> to vector<64x16xf32>
    %175 = vector.extract_strided_slice %170 {offsets = [0, 5], sizes = [64, 16], strides = [1, 1]} : vector<64x26xf32> to vector<64x16xf32>
    %176 = vector.extract_strided_slice %170 {offsets = [0, 6], sizes = [64, 16], strides = [1, 1]} : vector<64x26xf32> to vector<64x16xf32>
    %177 = vector.extract_strided_slice %170 {offsets = [0, 8], sizes = [64, 16], strides = [1, 1]} : vector<64x26xf32> to vector<64x16xf32>
    %178 = vector.extract_strided_slice %170 {offsets = [0, 9], sizes = [64, 16], strides = [1, 1]} : vector<64x26xf32> to vector<64x16xf32>
    %179 = vector.extract_strided_slice %170 {offsets = [0, 10], sizes = [64, 16], strides = [1, 1]} : vector<64x26xf32> to vector<64x16xf32>
    %180 = tpu.concatenate %171, %172, %173, %174, %175, %176, %177, %178, %179 in 0 : vector<64x16xf32>, vector<64x16xf32>, vector<64x16xf32>, vector<64x16xf32>, vector<64x16xf32>, vector<64x16xf32>, vector<64x16xf32>, vector<64x16xf32>, vector<64x16xf32> -> vector<576x16xf32>
    %c0_70 = arith.constant 0 : index
    %c0_71 = arith.constant 0 : index
    %181 = vector.load %arg22[%c0_70, %c0_71] : memref<64x576xf32, #tpu.memory_space<vmem>>, vector<64x576xf32>
    %cst_72 = arith.constant dense<0.000000e+00> : vector<64x16xf32>
    %182 = tpu.matmul %181, %180, %cst_72 {dimension_numbers = #tpu.dot_dimension_numbers<[1], [0], [0], [1], [0, 0, 1, 1], [], []>} : vector<64x576xf32>, vector<576x16xf32>, vector<64x16xf32> -> vector<64x16xf32>
    %c0_73 = arith.constant 0 : index
    %c0_74 = arith.constant 0 : index
    %183 = vector.load %arg23[%c0_73, %c0_74] : memref<64x1xf32, #tpu.memory_space<vmem>>, vector<64x1xf32>
    %184 = vector.broadcast %183 : vector<64x1xf32> to vector<64x16xf32>
    %185 = arith.addf %182, %184 : vector<64x16xf32>
    %c0_75 = arith.constant 0 : index
    %c0_76 = arith.constant 0 : index
    %186 = vector.load %arg24[%c0_75, %c0_76] : memref<64x32xf32, #tpu.memory_space<vmem>>, vector<64x32xf32>
    %c0_77 = arith.constant 0 : index
    %c0_78 = arith.constant 0 : index
    %187 = vector.load %arg19[%c0_77, %c0_78] : memref<36x16xf32, #tpu.memory_space<vmem>>, vector<36x16xf32>
    %cst_79 = arith.constant dense<0.000000e+00> : vector<32x16xf32>
    %188 = tpu.matmul %147, %187, %cst_79 {dimension_numbers = #tpu.dot_dimension_numbers<[1], [0], [0], [1], [0, 0, 1, 1], [], []>} : vector<32x36xf32>, vector<36x16xf32>, vector<32x16xf32> -> vector<32x16xf32>
    %cst_80 = arith.constant dense<0.000000e+00> : vector<64x16xf32>
    %189 = tpu.matmul %186, %188, %cst_80 {dimension_numbers = #tpu.dot_dimension_numbers<[1], [0], [0], [1], [0, 0, 1, 1], [], []>} : vector<64x32xf32>, vector<32x16xf32>, vector<64x16xf32> -> vector<64x16xf32>
    %c0_81 = arith.constant 0 : index
    %c0_82 = arith.constant 0 : index
    %190 = vector.load %arg25[%c0_81, %c0_82] : memref<64x1xf32, #tpu.memory_space<vmem>>, vector<64x1xf32>
    %191 = vector.broadcast %190 : vector<64x1xf32> to vector<64x16xf32>
    %192 = arith.addf %189, %191 : vector<64x16xf32>
    %193 = arith.addf %185, %192 : vector<64x16xf32>
    %cst_83 = arith.constant 0.000000e+00 : f32
    %194 = vector.broadcast %cst_83 : f32 to vector<64x16xf32>
    %195 = arith.maximumf %193, %194 : vector<64x16xf32>
    %c0_84 = arith.constant 0 : index
    %c0_85 = arith.constant 0 : index
    %196 = vector.load %arg26[%c0_84, %c0_85] : memref<1x16xf32, #tpu.memory_space<vmem>>, vector<1x16xf32>
    %197 = vector.broadcast %196 : vector<1x16xf32> to vector<64x16xf32>
    %198 = arith.mulf %195, %197 : vector<64x16xf32>
    %c0_86 = arith.constant 0 : index
    %c0_87 = arith.constant 0 : index
    %199 = vector.load %arg27[%c0_86, %c0_87] : memref<8x64xf32, #tpu.memory_space<vmem>>, vector<8x64xf32>
    %cst_88 = arith.constant dense<0.000000e+00> : vector<8x16xf32>
    %200 = tpu.matmul %199, %198, %cst_88 {dimension_numbers = #tpu.dot_dimension_numbers<[1], [0], [0], [1], [0, 0, 1, 1], [], []>} : vector<8x64xf32>, vector<64x16xf32>, vector<8x16xf32> -> vector<8x16xf32>
    %cst_89 = arith.constant dense<0.000000e+00> : vector<8xf32>
    %201 = vector.multi_reduction <add>, %200, %cst_89 [1] : vector<8x16xf32> to vector<8xf32>
    %202 = vector.shape_cast %201 : vector<8xf32> to vector<8x1xf32>
    %cst_90 = arith.constant 2.500000e-01 : f32
    %203 = vector.broadcast %cst_90 : f32 to vector<8x1xf32>
    %204 = arith.mulf %202, %203 : vector<8x1xf32>
    %c0_91 = arith.constant 0 : index
    %c0_92 = arith.constant 0 : index
    %205 = vector.load %arg28[%c0_91, %c0_92] : memref<8x1xf32, #tpu.memory_space<vmem>>, vector<8x1xf32>
    %206 = arith.addf %204, %205 : vector<8x1xf32>
    %207 = vector.shape_cast %206 : vector<8x1xf32> to vector<1x8x1xf32>
    %c0_93 = arith.constant 0 : index
    %c0_94 = arith.constant 0 : index
    %c0_95 = arith.constant 0 : index
    %208 = vector.load %arg29[%c0_93, %c0_94, %c0_95] : memref<1x8x1xf32, #tpu.memory_space<vmem>>, vector<1x8x1xf32>
    tpu.vector_store %arg29[%c0_93, %c0_94, %c0_95], %207 {strides = array<i32>} : memref<1x8x1xf32, #tpu.memory_space<vmem>>, vector<1x8x1xf32>,
    return
  }
  func.func @transform_0(%arg0: i32) -> (i32, i32, i32) {
    %c0_i32 = arith.constant 0 : i32
    %c0_i32_0 = arith.constant 0 : i32
    %c0_i32_1 = arith.constant 0 : i32
    return %arg0, %c0_i32, %c0_i32_0 : i32, i32, i32
  }
  func.func @transform_1(%arg0: i32) -> (i32, i32) {
    %c0_i32 = arith.constant 0 : i32
    %c0_i32_0 = arith.constant 0 : i32
    %c0_i32_1 = arith.constant 0 : i32
    return %c0_i32, %c0_i32_0 : i32, i32
  }
  func.func @transform_2(%arg0: i32) -> (i32, i32) {
    %c0_i32 = arith.constant 0 : i32
    %c0_i32_0 = arith.constant 0 : i32
    %c0_i32_1 = arith.constant 0 : i32
    return %c0_i32, %c0_i32_0 : i32, i32
  }
  func.func @transform_3(%arg0: i32) -> (i32, i32) {
    %c0_i32 = arith.constant 0 : i32
    %c0_i32_0 = arith.constant 0 : i32
    %c0_i32_1 = arith.constant 0 : i32
    return %c0_i32, %c0_i32_0 : i32, i32
  }
  func.func @transform_4(%arg0: i32) -> (i32, i32) {
    %c0_i32 = arith.constant 0 : i32
    %c0_i32_0 = arith.constant 0 : i32
    %c0_i32_1 = arith.constant 0 : i32
    return %c0_i32, %c0_i32_0 : i32, i32
  }
  func.func @transform_5(%arg0: i32) -> (i32, i32) {
    %c0_i32 = arith.constant 0 : i32
    %c0_i32_0 = arith.constant 0 : i32
    %c0_i32_1 = arith.constant 0 : i32
    return %c0_i32, %c0_i32_0 : i32, i32
  }
  func.func @transform_6(%arg0: i32) -> (i32, i32) {
    %c0_i32 = arith.constant 0 : i32
    %c0_i32_0 = arith.constant 0 : i32
    %c0_i32_1 = arith.constant 0 : i32
    return %c0_i32, %c0_i32_0 : i32, i32
  }
  func.func @transform_7(%arg0: i32) -> (i32, i32) {
    %c0_i32 = arith.constant 0 : i32
    %c0_i32_0 = arith.constant 0 : i32
    %c0_i32_1 = arith.constant 0 : i32
    return %c0_i32, %c0_i32_0 : i32, i32
  }
  func.func @transform_8(%arg0: i32) -> (i32, i32) {
    %c0_i32 = arith.constant 0 : i32
    %c0_i32_0 = arith.constant 0 : i32
    %c0_i32_1 = arith.constant 0 : i32
    return %c0_i32, %c0_i32_0 : i32, i32
  }
  func.func @transform_9(%arg0: i32) -> (i32, i32) {
    %c0_i32 = arith.constant 0 : i32
    %c0_i32_0 = arith.constant 0 : i32
    %c0_i32_1 = arith.constant 0 : i32
    return %c0_i32, %c0_i32_0 : i32, i32
  }
  func.func @transform_10(%arg0: i32) -> (i32, i32) {
    %c0_i32 = arith.constant 0 : i32
    %c0_i32_0 = arith.constant 0 : i32
    %c0_i32_1 = arith.constant 0 : i32
    return %c0_i32, %c0_i32_0 : i32, i32
  }
  func.func @transform_11(%arg0: i32) -> (i32, i32) {
    %c0_i32 = arith.constant 0 : i32
    %c0_i32_0 = arith.constant 0 : i32
    %c0_i32_1 = arith.constant 0 : i32
    return %c0_i32, %c0_i32_0 : i32, i32
  }
  func.func @transform_12(%arg0: i32) -> (i32, i32) {
    %c0_i32 = arith.constant 0 : i32
    %c0_i32_0 = arith.constant 0 : i32
    %c0_i32_1 = arith.constant 0 : i32
    return %c0_i32, %c0_i32_0 : i32, i32
  }
  func.func @transform_13(%arg0: i32) -> (i32, i32) {
    %c0_i32 = arith.constant 0 : i32
    %c0_i32_0 = arith.constant 0 : i32
    %c0_i32_1 = arith.constant 0 : i32
    return %c0_i32, %c0_i32_0 : i32, i32
  }
  func.func @transform_14(%arg0: i32) -> (i32, i32) {
    %c0_i32 = arith.constant 0 : i32
    %c0_i32_0 = arith.constant 0 : i32
    %c0_i32_1 = arith.constant 0 : i32
    return %c0_i32, %c0_i32_0 : i32, i32
  }
  func.func @transform_15(%arg0: i32) -> (i32, i32) {
    %c0_i32 = arith.constant 0 : i32
    %c0_i32_0 = arith.constant 0 : i32
    %c0_i32_1 = arith.constant 0 : i32
    return %c0_i32, %c0_i32_0 : i32, i32
  }
  func.func @transform_16(%arg0: i32) -> (i32, i32) {
    %c0_i32 = arith.constant 0 : i32
    %c0_i32_0 = arith.constant 0 : i32
    %c0_i32_1 = arith.constant 0 : i32
    return %c0_i32, %c0_i32_0 : i32, i32
  }
  func.func @transform_17(%arg0: i32) -> (i32, i32) {
    %c0_i32 = arith.constant 0 : i32
    %c0_i32_0 = arith.constant 0 : i32
    %c0_i32_1 = arith.constant 0 : i32
    return %c0_i32, %c0_i32_0 : i32, i32
  }
  func.func @transform_18(%arg0: i32) -> (i32, i32) {
    %c0_i32 = arith.constant 0 : i32
    %c0_i32_0 = arith.constant 0 : i32
    %c0_i32_1 = arith.constant 0 : i32
    return %c0_i32, %c0_i32_0 : i32, i32
  }
  func.func @transform_19(%arg0: i32) -> (i32, i32) {
    %c0_i32 = arith.constant 0 : i32
    %c0_i32_0 = arith.constant 0 : i32
    %c0_i32_1 = arith.constant 0 : i32
    return %c0_i32, %c0_i32_0 : i32, i32
  }
  func.func @transform_20(%arg0: i32) -> (i32, i32) {
    %c0_i32 = arith.constant 0 : i32
    %c0_i32_0 = arith.constant 0 : i32
    %c0_i32_1 = arith.constant 0 : i32
    return %c0_i32, %c0_i32_0 : i32, i32
  }
  func.func @transform_21(%arg0: i32) -> (i32, i32) {
    %c0_i32 = arith.constant 0 : i32
    %c0_i32_0 = arith.constant 0 : i32
    %c0_i32_1 = arith.constant 0 : i32
    return %c0_i32, %c0_i32_0 : i32, i32
  }
  func.func @transform_22(%arg0: i32) -> (i32, i32) {
    %c0_i32 = arith.constant 0 : i32
    %c0_i32_0 = arith.constant 0 : i32
    %c0_i32_1 = arith.constant 0 : i32
    return %c0_i32, %c0_i32_0 : i32, i32
  }
  func.func @transform_23(%arg0: i32) -> (i32, i32) {
    %c0_i32 = arith.constant 0 : i32
    %c0_i32_0 = arith.constant 0 : i32
    %c0_i32_1 = arith.constant 0 : i32
    return %c0_i32, %c0_i32_0 : i32, i32
  }
  func.func @transform_24(%arg0: i32) -> (i32, i32) {
    %c0_i32 = arith.constant 0 : i32
    %c0_i32_0 = arith.constant 0 : i32
    %c0_i32_1 = arith.constant 0 : i32
    return %c0_i32, %c0_i32_0 : i32, i32
  }
  func.func @transform_25(%arg0: i32) -> (i32, i32) {
    %c0_i32 = arith.constant 0 : i32
    %c0_i32_0 = arith.constant 0 : i32
    %c0_i32_1 = arith.constant 0 : i32
    return %c0_i32, %c0_i32_0 : i32, i32
  }
  func.func @transform_26(%arg0: i32) -> (i32, i32) {
    %c0_i32 = arith.constant 0 : i32
    %c0_i32_0 = arith.constant 0 : i32
    %c0_i32_1 = arith.constant 0 : i32
    return %c0_i32, %c0_i32_0 : i32, i32
  }
  func.func @transform_27(%arg0: i32) -> (i32, i32) {
    %c0_i32 = arith.constant 0 : i32
    %c0_i32_0 = arith.constant 0 : i32
    %c0_i32_1 = arith.constant 0 : i32
    return %c0_i32, %c0_i32_0 : i32, i32
  }
  func.func @transform_28(%arg0: i32) -> (i32, i32, i32) {
    %c0_i32 = arith.constant 0 : i32
    %c0_i32_0 = arith.constant 0 : i32
    %c0_i32_1 = arith.constant 0 : i32
    return %arg0, %c0_i32, %c0_i32_0 : i32, i32, i32
  }
}

</mosaic_0001>

<bundles_post_ra>
// kernel: resnet2_forward.1
= control target key start
LH: loop header
LB: loop body
LE: loop exit
PB: predicated region body
PF: predicated region fallthrough
CT: control target
= control target key end

     0   :  { %s9432_s0 = inlined_call_operand.vmem [shape: f32[2,16,361], index: 0, kind: input, shape index: {}]   ;;  %s9433_s1 = inlined_call_operand.vmem [shape: f32[16,256], index: 1, kind: input, shape index: {}]   ;;  %s9434_s2 = inlined_call_operand.vmem [shape: f32[16,1], index: 2, kind: input, shape index: {}]   ;;  %s9435_s3 = inlined_call_operand.vmem [shape: f32[1,361], index: 3, kind: input, shape index: {}]   ;;  %s9436_s4 = inlined_call_operand.vmem [shape: f32[361,100], index: 4, kind: input, shape index: {}]   ;;  %s9437_s5 = inlined_call_operand.vmem [shape: f32[16,144], index: 5, kind: input, shape index: {}]   ;;  %s9438_s6 = inlined_call_operand.vmem [shape: f32[16,1], index: 6, kind: input, shape index: {}]   ;;  %s9439_s7 = inlined_call_operand.vmem [shape: f32[16,144], index: 7, kind: input, shape index: {}]   ;;  %s9440_s8 = inlined_call_operand.vmem [shape: f32[16,1], index: 8, kind: input, shape index: {}]   ;;  %s9441_s9 = inlined_call_operand.vmem [shape: f32[1,100], index: 9, kind: input, shape index: {}]   ;;  %s9442_s10 = inlined_call_operand.vmem [shape: f32[100,36], index: 10, kind: input, shape index: {}]   ;;  %s9443_s11 = inlined_call_operand.vmem [shape: f32[32,144], index: 11, kind: input, shape index: {}]   ;;  %s9444_s12 = inlined_call_operand.vmem [shape: f32[32,1], index: 12, kind: input, shape index: {}]   ;;  %s9445_s13 = inlined_call_operand.vmem [shape: f32[32,288], index: 13, kind: input, shape index: {}]   ;;  %s9446_s14 = inlined_call_operand.vmem [shape: f32[32,1], index: 14, kind: input, shape index: {}]   ;;  %s9447_s15 = inlined_call_operand.vmem [shape: f32[32,16], index: 15, kind: input, shape index: {}]   ;;  %s9448_s16 = inlined_call_operand.vmem [shape: f32[32,1], index: 16, kind: input, shape index: {}]   ;;  %s9449_s17 = inlined_call_operand.vmem [shape: f32[1,36], index: 17, kind: input, shape index: {}]   ;;  %s9450_s18 = inlined_call_operand.vmem [shape: f32[36,16], index: 18, kind: input, shape index: {}]   ;;  %s9451_s19 = inlined_call_operand.vmem [shape: f32[64,288], index: 19, kind: input, shape index: {}]   ;;  %s9452_s20 = inlined_call_operand.vmem [shape: f32[64,1], index: 20, kind: input, shape index: {}]   ;;  %s9453_s21 = inlined_call_operand.vmem [shape: f32[64,576], index: 21, kind: input, shape index: {}]   ;;  %s9454_s22 = inlined_call_operand.vmem [shape: f32[64,1], index: 22, kind: input, shape index: {}]   ;;  %s9455_s23 = inlined_call_operand.vmem [shape: f32[64,32], index: 23, kind: input, shape index: {}]   ;;  %s9456_s24 = inlined_call_operand.vmem [shape: f32[64,1], index: 24, kind: input, shape index: {}]   ;;  %s9457_s25 = inlined_call_operand.vmem [shape: f32[1,16], index: 25, kind: input, shape index: {}]   ;;  %s9458_s26 = inlined_call_operand.vmem [shape: f32[8,64], index: 26, kind: input, shape index: {}]   ;;  %s9459_s27 = inlined_call_operand.vmem [shape: f32[8,1], index: 27, kind: input, shape index: {}]   ;;  %s9460_s28 = inlined_call_operand.vmem [shape: f32[2,8,1], index: 28, kind: output, shape index: {}]  }
   0x1   :  { %9516 = sst [smem:[#allocation3_spill]] %s9432_s0 }
   0x2   :  { %9517 = sst [smem:[#allocation4_spill]] %s9433_s1 }
   0x3   :  { %9518 = sst [smem:[#allocation5_spill]] %s9434_s2 }
   0x4   :  { %9519 = sst [smem:[#allocation6_spill]] %s9435_s3 }
   0x5   :  { %9520 = sst [smem:[#allocation7_spill]] %s9436_s4 }
   0x6   :  { %9521 = sst [smem:[#allocation8_spill]] %s9437_s5 }
   0x7   :  { %9522 = sst [smem:[#allocation9_spill]] %s9438_s6 }
   0x8   :  { %9523 = sst [smem:[#allocation10_spill]] %s9439_s7 }
   0x9   :  { %9524 = sst [smem:[#allocation11_spill]] %s9440_s8  ;;  %s7778_s8 = smov 0  }
   0xa   :  { %9525 = sst [smem:[#allocation12_spill]] %s9441_s9 }
   0xb   :  { %9526 = sst [smem:[#allocation13_spill]] %s9442_s10 }
   0xc   :  { %9527 = sst [smem:[#allocation14_spill]] %s9443_s11 }
   0xd   :  { %9528 = sst [smem:[#allocation15_spill]] %s9444_s12 }
   0xe   :  { %9529 = sst [smem:[#allocation16_spill]] %s9458_s26 }
   0xf   :  { %9530 = sst [smem:[#allocation17_spill]] %s9459_s27 }
  0x10   :  { %9531 = sst [smem:[#allocation18_spill]] %s9460_s28 }
  0x11 LB: > { %9532 = sst [smem:[#allocation2_spill]] %s7595_s8  ;;  %s5141_s5 = sadd.s32 4294967295, %s7595_s8   ;;  %s7595_s8 = sphi %s7778_s8, %s38_s8  }
  0x12   : > { %p5145_p0 = scmp.ge.s32.totalorder %s7595_s8, 1  ;;  %p762_p1 = scmp.lt.s32.totalorder %s7595_s8, 3 }
  0x14   : > { %p763_p2 = pnand %p5145_p0, %p762_p1 }
  0x15   : > { %p835_p3 = scmp.lt.s32.totalorder (!%p763_p2), %s5141_s5, 1  ;;  %s9533_s6 = sld [smem:[#allocation3_spill]] (!%p763_p2)  ;;  %vm868_vm0 = vcmask (!%p763_p2), 326656   ;;  %vm879_vm1 = vcmask (!%p763_p2), 138240   ;;  %vm896_vm2 = vcmask (!%p763_p2), 1039360   ;;  %vm913_vm3 = vcmask (!%p763_p2), 1031168  }
  0x16   : > { %766 = sbr.rel (%p763_p2) target bundleno = 5522 (0x1592), region = 132  ;;  %s7597_s0 = smov (!%p763_p2), 40   ;;  %vm930_vm4 = vcmask (!%p763_p2), 1022976   ;;  %vm953_vm5 = vcmask (!%p763_p2), 891904   ;;  %vm976_vm6 = vcmask (!%p763_p2), 883712   ;;  %vm999_vm7 = vcmask (!%p763_p2), 875520  }
  0x17   : > { %s9488_s11 = smov (!%p763_p2), 127   ;;  %s9481_s29 = smov (!%p763_p2), 126   ;;  %vm1022_vm8 = vcmask (!%p763_p2), 867328   ;;  %vm1045_vm9 = vcmask (!%p763_p2), 736256   ;;  %vm1068_vm10 = vcmask (!%p763_p2), 728064   ;;  %vm1091_vm11 = vcmask (!%p763_p2), 719872  }
  0x18   : > { %s7600_s2 = smov (!%p763_p2), 125   ;;  %s9479_s7 = smov (!%p763_p2), 109   ;;  %vm1114_vm12 = vcmask (!%p763_p2), 711680   ;;  %vm1137_vm13 = vcmask (!%p763_p2), 580608   ;;  %vm1160_vm14 = vcmask (!%p763_p2), 572416   ;;  %vm1183_vm15 = vcmask (!%p763_p2), 564224  }
  0x19   : > { %s9477_s12 = smov (!%p763_p2), 108   ;;  %s9475_s1 = smov (!%p763_p2), 107  }
  0x1a   : > { %s9471_s4 = smov (!%p763_p2), 106   ;;  %s9485_s30 = smov (!%p763_p2), 89  }
  0x1b   : > { %s9473_s3 = smov (!%p763_p2), 88   ;;  %s9545_s28 = smov (!%p763_p2), 127  }
  0x1c   : > { %s9548_s8 = smov (!%p763_p2), 106   ;;  %s9553_s26 = sld [smem:[#allocation11_spill]] (!%p763_p2) }
  0x1d   : > { %s9576_s5 = smov (!%p835_p3, %s5141_s5), 1  ;;  %s9557_s27 = sld [smem:[#allocation15_spill]] }
  0x1e   : > { %s6437_s9 = smul.u32 48, %s9576_s5 }
  0x20   : > { %s839_s10 = scalar_lea.vmem %s9533_s6, %s6437_s9  ;;  %s9483_s9 = smov 90  }
  0x21   : > { %v844_v0 = vld [vmem:[%s839_s10] sm:$0xff]  ;;  %v845_v1 = vld [vmem:[%s839_s10 + $0x8] sm:$0xff]  ;;  %v846_v5 = vld [vmem:[%s839_s10 + $0x10] sm:$0xff]  ;;  %s7608_s6 = smov 87  }
  0x22   : > { %v848_v2 = vld [vmem:[%s839_s10 + $0x20] sm:$0xff]  ;;  %v6482_v3 = vpack.i.bf16 %v845_v1, %v844_v0  ;;  %v849_v4 = vld [vmem:[%s839_s10 + $0x28] sm:$0xff]  ;;  %v847_v6 = vld [vmem:[%s839_s10 + $0x18] sm:$0xff]  ;;  %s7609_s10 = smov 71  }
  0x23   : > { %v6492_v7 = vpack.i.bf16 %v849_v4, %v848_v2  ;;  %v6487_v8 = vpack.i.bf16 %v847_v6, %v846_v5 }
  0x24   : > { %6483 = vrot.lane.b32.xlu0 %v6482_v3, %s7597_s0 }
  0x25   : > { %6493 = vrot.lane.b32.xlu1 %v6492_v7, %s7597_s0 }
  0x28   : > { %6488 = vrot.lane.b32.xlu0 %v6487_v8, %s7597_s0  ;;  %s7610_s0 = smov 70  }
  0x96   : > { %v6484_v9 = vpop.permute.xlu0 %6483 }
  0x97   : > { %v6494_v10 = vpop.permute.xlu1 %6493  ;;  %v6486_v13 = vunpack.i.h.bf16 %v6484_v9  ;;  %v6485_v14 = vunpack.i.l.bf16 %v6484_v9 }
  0x98   : > { %v6496_v11 = vunpack.i.h.bf16 %v6494_v10  ;;  %v6495_v12 = vunpack.i.l.bf16 %v6494_v10 }
  0x99   : > { %v869_v19 = vsel %vm868_vm0, %v6485_v14, %v6486_v13  ;;  %v877_v25 = vsel %vm868_vm0, 0.0, %v6485_v14 }
  0x9a   : > { %v6489_v15 = vpop.permute.xlu0 %6488  ;;  %v872_v16 = vsel %vm868_vm0, %v6495_v12, %v6496_v11  ;;  %v881_v27 = vsel %vm879_vm1, %v6496_v11, 0.0 }
  0x9b   : > { %v6491_v17 = vunpack.i.h.bf16 %v6489_v15  ;;  %v6490_v18 = vunpack.i.l.bf16 %v6489_v15  ;;  %v7801_v30 = vpack.i.bf16 %v881_v27, %v872_v16 }
  0x9d   : > { %v871_v20 = vsel %vm868_vm0, %v6491_v17, %v6495_v12  ;;  %v870_v21 = vsel %vm868_vm0, %v6486_v13, %v6490_v18  ;;  %v878_v24 = vsel %vm868_vm0, 0.0, %v6491_v17  ;;  %v880_v28 = vsel %vm879_vm1, %v6490_v18, 0.0 }
  0x9e   : > { %v6502_v22 = vpack.i.bf16 %v872_v16, %v871_v20  ;;  %v6497_v23 = vpack.i.bf16 %v870_v21, %v869_v19  ;;  %v7794_v26 = vpack.i.bf16 %v878_v24, %v877_v25  ;;  %v7799_v29 = vpack.i.bf16 %v871_v20, %v869_v19 }
  0x9f   : > { %v6722_v31 = vpack.i.bf16 %v880_v28, %v870_v21  ;;  %v6547_v32 = vpack.i.bf16 %v871_v20, %v880_v28  ;;  %vm1206_vm0 = vcmask 556032   ;;  %vm1764_vm1 = vcmask 162816  }
  0xa0   : > { %6503 = vrot.lane.b32.xlu0 %v6502_v22, %s9488_s11  ;;  %6498 = vrot.lane.b32.xlu1 %v6497_v23, %s9488_s11 }
  0xa4   : > { %6513 = vrot.lane.b32.xlu0 %v6497_v23, %s9481_s29  ;;  %6508 = vrot.lane.b32.xlu1 %v7794_v26, %s9488_s11 }
  0xa8   : > { %6523 = vrot.lane.b32.xlu0 %v7794_v26, %s9481_s29  ;;  %6518 = vrot.lane.b32.xlu1 %v6502_v22, %s9481_s29  ;;  %s9538_s29 = smov 126  }
  0xac   : > { %6533 = vrot.lane.b32.xlu0 %v6502_v22, %s7600_s2  ;;  %6528 = vrot.lane.b32.xlu1 %v6497_v23, %s7600_s2 }
  0xb0   : > { %6543 = vrot.lane.b32.xlu0 %v6497_v23, %s9479_s7  ;;  %6538 = vrot.lane.b32.xlu1 %v7794_v26, %s7600_s2  ;;  %s7611_s2 = smov 69  }
  0xb4   : > { %6553 = vrot.lane.b32.xlu0 %v7801_v30, %s9479_s7  ;;  %6548 = vrot.lane.b32.xlu1 %v6547_v32, %s9479_s7 }
  0xb8   : > { %6563 = vrot.lane.b32.xlu0 %v6497_v23, %s9477_s12  ;;  %6558 = vrot.lane.b32.xlu1 %v7794_v26, %s9479_s7  ;;  %s9540_s7 = smov 108  }
  0xbc   : > { %6573 = vrot.lane.b32.xlu0 %v7801_v30, %s9477_s12  ;;  %6568 = vrot.lane.b32.xlu1 %v6547_v32, %s9477_s12 }
  0xc0   : > { %6583 = vrot.lane.b32.xlu0 %v6497_v23, %s9475_s1  ;;  %6578 = vrot.lane.b32.xlu1 %v7794_v26, %s9477_s12 }
  0xc4   : > { %6593 = vrot.lane.b32.xlu0 %v7801_v30, %s9475_s1  ;;  %6588 = vrot.lane.b32.xlu1 %v6547_v32, %s9475_s1 }
  0xc8   : > { %6603 = vrot.lane.b32.xlu0 %v6497_v23, %s9471_s4  ;;  %6598 = vrot.lane.b32.xlu1 %v7794_v26, %s9475_s1  ;;  %s9541_s1 = smov 107  }
  0xcc   : > { %6613 = vrot.lane.b32.xlu0 %v7801_v30, %s9471_s4  ;;  %6608 = vrot.lane.b32.xlu1 %v6547_v32, %s9471_s4 }
  0xd0   : > { %6623 = vrot.lane.b32.xlu0 %v6722_v31, %s9483_s9  ;;  %6618 = vrot.lane.b32.xlu1 %v7794_v26, %s9471_s4  ;;  %s9537_s4 = sld [smem:[#allocation7_spill]] }
  0xd4   : > { %6633 = vrot.lane.b32.xlu0 %v7799_v29, %s9483_s9  ;;  %6628 = vrot.lane.b32.xlu1 %v7801_v30, %s9483_s9 }
  0xd8   : > { %6643 = vrot.lane.b32.xlu0 %v6722_v31, %s9485_s30  ;;  %6638 = vrot.lane.b32.xlu1 %v7794_v26, %s9483_s9 }
  0xdc   : > { %6653 = vrot.lane.b32.xlu0 %v7799_v29, %s9485_s30  ;;  %6648 = vrot.lane.b32.xlu1 %v7801_v30, %s9485_s30 }
  0xe0   : > { %6663 = vrot.lane.b32.xlu0 %v6722_v31, %s9473_s3  ;;  %6658 = vrot.lane.b32.xlu1 %v7794_v26, %s9485_s30 }
  0xe4   : > { %6673 = vrot.lane.b32.xlu0 %v7799_v29, %s9473_s3  ;;  %6668 = vrot.lane.b32.xlu1 %v7801_v30, %s9473_s3 }
  0xe8   : > { %6683 = vrot.lane.b32.xlu0 %v6722_v31, %s7608_s6  ;;  %6678 = vrot.lane.b32.xlu1 %v7794_v26, %s9473_s3  ;;  %s9544_s3 = smov 88  }
  0xec   : > { %6693 = vrot.lane.b32.xlu0 %v7799_v29, %s7608_s6  ;;  %6688 = vrot.lane.b32.xlu1 %v7801_v30, %s7608_s6 }
  0xf0   : > { %6703 = vrot.lane.b32.xlu0 %v6722_v31, %s7609_s10  ;;  %6698 = vrot.lane.b32.xlu1 %v7794_v26, %s7608_s6  ;;  %s7612_s6 = smov 68  }
  0xf4   : > { %6713 = vrot.lane.b32.xlu0 %v7799_v29, %s7609_s10  ;;  %6708 = vrot.lane.b32.xlu1 %v7801_v30, %s7609_s10 }
  0xf8   : > { %6723 = vrot.lane.b32.xlu0 %v6722_v31, %s7610_s0  ;;  %6718 = vrot.lane.b32.xlu1 %v7794_v26, %s7609_s10  ;;  %s9543_s10 = smov 89  }
  0xfc   : > { %6733 = vrot.lane.b32.xlu0 %v7799_v29, %s7610_s0  ;;  %6728 = vrot.lane.b32.xlu1 %v7801_v30, %s7610_s0 }
 0x100   : > { %6743 = vrot.lane.b32.xlu0 %v6722_v31, %s7611_s2  ;;  %6738 = vrot.lane.b32.xlu1 %v7794_v26, %s7610_s0  ;;  %s9535_s0 = sld [smem:[#allocation5_spill]] }
 0x104   : > { %6753 = vrot.lane.b32.xlu0 %v7799_v29, %s7611_s2  ;;  %6748 = vrot.lane.b32.xlu1 %v7801_v30, %s7611_s2 }
 0x108   : > { %6763 = vrot.lane.b32.xlu0 %v6722_v31, %s7612_s6  ;;  %6758 = vrot.lane.b32.xlu1 %v7794_v26, %s7611_s2  ;;  %s9534_s2 = sld [smem:[#allocation4_spill]] }
 0x10c   : > { %6773 = vrot.lane.b32.xlu0 %v7799_v29, %s7612_s6  ;;  %6768 = vrot.lane.b32.xlu1 %v7801_v30, %s7612_s6 }
 0x110   : > { %6778 = vrot.lane.b32.xlu1 %v7794_v26, %s7612_s6  ;;  %s9536_s6 = sld [smem:[#allocation6_spill]] }
 0x112   : > { %v6504_v33 = vpop.permute.xlu0 %6503  ;;  %v6499_v34 = vpop.permute.xlu1 %6498 }
 0x113   : > { %v6506_v35 = vunpack.i.h.bf16 %v6504_v33  ;;  %v6505_v36 = vunpack.i.l.bf16 %v6504_v33  ;;  %v6501_v37 = vunpack.i.h.bf16 %v6499_v34  ;;  %v6500_v38 = vunpack.i.l.bf16 %v6499_v34 }
 0x115   : > { %v900_v39 = vsel %vm896_vm2, %v6505_v36, %v6506_v35  ;;  %v898_v40 = vsel %vm896_vm2, %v6500_v38, %v6501_v37 }
 0x116   : > { %v6514_v41 = vpop.permute.xlu0 %6513  ;;  %v6509_v42 = vpop.permute.xlu1 %6508  ;;  %v6787_v43 = vpack.i.bf16 %v6506_v35, %v900_v39  ;;  %v6782_v44 = vpack.i.bf16 %v6501_v37, %v898_v40 }
 0x117   : > { %v6516_v45 = vunpack.i.h.bf16 %v6514_v41  ;;  %v6515_v46 = vunpack.i.l.bf16 %v6514_v41  ;;  %v6511_v47 = vunpack.i.h.bf16 %v6509_v42  ;;  %v6510_v48 = vunpack.i.l.bf16 %v6509_v42 }
 0x118   : > { %6788 = vrot.lane.b32.xlu1 %v6787_v43, %s9477_s12  ;;  %6783 = vrot.lane.b32.xlu0 %v6782_v44, %s9477_s12 }
 0x119   : > { %v915_v49 = vsel %vm913_vm3, %v6515_v46, %v6516_v45  ;;  %v897_v50 = vsel %vm896_vm2, %v6510_v48, %v6500_v38  ;;  %v899_v51 = vsel %vm896_vm2, %v6511_v47, %v6505_v36 }
 0x11a   : > { %v6524_v52 = vpop.permute.xlu0 %6523  ;;  %v6519_v53 = vpop.permute.xlu1 %6518  ;;  %v6797_v54 = vpack.i.bf16 %v6516_v45, %v915_v49  ;;  %v6792_v55 = vpack.i.bf16 %v899_v51, %v897_v50 }
 0x11b   : > { %v6526_v56 = vunpack.i.h.bf16 %v6524_v52  ;;  %v6525_v57 = vunpack.i.l.bf16 %v6524_v52  ;;  %v6521_v58 = vunpack.i.h.bf16 %v6519_v53  ;;  %v6520_v59 = vunpack.i.l.bf16 %v6519_v53 }
 0x11c   : > { %6798 = vrot.lane.b32.xlu1 %v6797_v54, %s9477_s12  ;;  %6793 = vrot.lane.b32.xlu0 %v6792_v55, %s9477_s12 }
 0x11d   : > { %v914_v60 = vsel %vm913_vm3, %v6525_v57, %v6515_v46  ;;  %v916_v61 = vsel %vm913_vm3, %v6526_v56, %v6520_v59  ;;  %v917_v62 = vsel %vm913_vm3, %v6520_v59, %v6521_v58 }
 0x11e   : > { %v6534_v63 = vpop.permute.xlu0 %6533  ;;  %v6529_v0 = vpop.permute.xlu1 %6528  ;;  %v6807_v1 = vpack.i.bf16 %v916_v61, %v914_v60  ;;  %v6802_v2 = vpack.i.bf16 %v6521_v58, %v917_v62 }
 0x11f   : > { %v6536_v3 = vunpack.i.h.bf16 %v6534_v63  ;;  %v6535_v4 = vunpack.i.l.bf16 %v6534_v63  ;;  %v6531_v5 = vunpack.i.h.bf16 %v6529_v0  ;;  %v6530_v6 = vunpack.i.l.bf16 %v6529_v0 }
 0x120   : > { %6808 = vrot.lane.b32.xlu1 %v6807_v1, %s9477_s12  ;;  %6803 = vrot.lane.b32.xlu0 %v6802_v2, %s9477_s12 }
 0x121   : > { %v934_v7 = vsel %vm930_vm4, %v6535_v4, %v6536_v3  ;;  %v932_v8 = vsel %vm930_vm4, %v6530_v6, %v6531_v5 }
 0x122   : > { %v6544_v9 = vpop.permute.xlu0 %6543  ;;  %v6539_v10 = vpop.permute.xlu1 %6538  ;;  %v6817_v11 = vpack.i.bf16 %v6536_v3, %v934_v7  ;;  %v6812_v12 = vpack.i.bf16 %v6531_v5, %v932_v8 }
 0x123   : > { %v6541_v13 = vunpack.i.h.bf16 %v6539_v10  ;;  %v6540_v14 = vunpack.i.l.bf16 %v6539_v10  ;;  %v6546_v15 = vunpack.i.h.bf16 %v6544_v9  ;;  %v6545_v16 = vunpack.i.l.bf16 %v6544_v9 }
 0x124   : > { %6818 = vrot.lane.b32.xlu1 %v6817_v11, %s9477_s12  ;;  %6813 = vrot.lane.b32.xlu0 %v6812_v12, %s9477_s12 }
 0x125   : > { %v931_v17 = vsel %vm930_vm4, %v6540_v14, %v6530_v6  ;;  %v933_v18 = vsel %vm930_vm4, %v6541_v13, %v6535_v4  ;;  %v955_v26 = vsel %vm953_vm5, %v6545_v16, %v6546_v15 }
 0x126   : > { %v6554_v19 = vpop.permute.xlu0 %6553  ;;  %v6549_v20 = vpop.permute.xlu1 %6548  ;;  %v6822_v21 = vpack.i.bf16 %v933_v18, %v931_v17 }
 0x127   : > { %v6556_v22 = vunpack.i.h.bf16 %v6554_v19  ;;  %v6555_v23 = vunpack.i.l.bf16 %v6554_v19  ;;  %v6551_v24 = vunpack.i.h.bf16 %v6549_v20  ;;  %v6550_v25 = vunpack.i.l.bf16 %v6549_v20 }
 0x128   : > { %6823 = vrot.lane.b32.xlu0 %v6822_v21, %s9477_s12 }
 0x129   : > { %v956_v27 = vsel %vm953_vm5, %v6546_v15, %v6550_v25  ;;  %v958_v28 = vsel %vm953_vm5, %v6551_v24, %v6555_v23  ;;  %v959_v29 = vsel %vm953_vm5, %v6555_v23, %v6556_v22 }
 0x12a   : > { %v6564_v30 = vpop.permute.xlu0 %6563  ;;  %v6559_v31 = vpop.permute.xlu1 %6558  ;;  %v6827_v32 = vpack.i.bf16 %v956_v27, %v955_v26  ;;  %v6832_v33 = vpack.i.bf16 %v959_v29, %v958_v28 }
 0x12b   : > { %v6561_v34 = vunpack.i.h.bf16 %v6559_v31  ;;  %v6560_v35 = vunpack.i.l.bf16 %v6559_v31  ;;  %v7892_v36 = vunpack.i.h.bf16 %v6564_v30  ;;  %v6565_v37 = vunpack.i.l.bf16 %v6564_v30 }
 0x12c   : > { %6828 = vrot.lane.b32.xlu1 %v6827_v32, %s9477_s12  ;;  %6833 = vrot.lane.b32.xlu0 %v6832_v33, %s9477_s12 }
 0x12d   : > { %v954_v38 = vsel %vm953_vm5, %v6560_v35, %v6545_v16  ;;  %v957_v39 = vsel %vm953_vm5, %v6561_v34, %v6551_v24  ;;  %v978_v47 = vsel %vm976_vm6, %v6565_v37, %v7892_v36 }
 0x12e   : > { %v6574_v40 = vpop.permute.xlu0 %6573  ;;  %v6569_v41 = vpop.permute.xlu1 %6568  ;;  %v6837_v42 = vpack.i.bf16 %v957_v39, %v954_v38 }
 0x12f   : > { %v6576_v43 = vunpack.i.h.bf16 %v6574_v40  ;;  %v7898_v44 = vunpack.i.l.bf16 %v6574_v40  ;;  %v6571_v45 = vunpack.i.h.bf16 %v6569_v41  ;;  %v6570_v46 = vunpack.i.l.bf16 %v6569_v41 }
 0x130   : > { %6838 = vrot.lane.b32.xlu1 %v6837_v42, %s9477_s12 }
 0x131   : > { %v981_v48 = vsel %vm976_vm6, %v6571_v45, %v7898_v44  ;;  %v982_v49 = vsel %vm976_vm6, %v7898_v44, %v6576_v43  ;;  %v979_v50 = vsel %vm976_vm6, %v7892_v36, %v6570_v46  ;;  %v5969_v51 = vpack.c.bf16 %v7898_v44, %v7892_v36 }
 0x132   : > { %v6584_v52 = vpop.permute.xlu0 %6583  ;;  %v6579_v53 = vpop.permute.xlu1 %6578  ;;  %v6847_v54 = vpack.i.bf16 %v982_v49, %v981_v48  ;;  %v5903_v55 = vpack.c.bf16 %v981_v48, %v978_v47  ;;  %v6842_v56 = vpack.i.bf16 %v979_v50, %v978_v47 }
 0x133   : > { %v6581_v57 = vunpack.i.h.bf16 %v6579_v53  ;;  %v6580_v58 = vunpack.i.l.bf16 %v6579_v53  ;;  %v6586_v59 = vunpack.i.h.bf16 %v6584_v52  ;;  %v6585_v60 = vunpack.i.l.bf16 %v6584_v52 }
 0x134   : > { %5904 = vmatprep.subr.bf16.mxu0 %v5903_v55  ;;  %6848 = vrot.lane.b32.xlu1 %v6847_v54, %s9477_s12 }
 0x135   : > { %6843 = vrot.lane.b32.xlu0 %v6842_v56, %s9477_s12  ;;  %v977_v61 = vsel %vm976_vm6, %v6580_v58, %v6565_v37  ;;  %v980_v62 = vsel %vm976_vm6, %v6581_v57, %v6571_v45  ;;  %v1001_v7 = vsel %vm999_vm7, %v6585_v60, %v6586_v59 }
 0x136   : > { %v6594_v63 = vpop.permute.xlu0 %6593  ;;  %v6589_v0 = vpop.permute.xlu1 %6588  ;;  %v6852_v1 = vpack.i.bf16 %v980_v62, %v977_v61  ;;  %v5905_v2 = vpack.c.bf16 %v980_v62, %v977_v61 }
 0x137   : > { %v6596_v3 = vunpack.i.h.bf16 %v6594_v63  ;;  %v6595_v4 = vunpack.i.l.bf16 %v6594_v63  ;;  %v6591_v5 = vunpack.i.h.bf16 %v6589_v0  ;;  %v6590_v6 = vunpack.i.l.bf16 %v6589_v0 }
 0x138   : > { %5906 = vmatpush1.bf16.msra.mxu0 %v5905_v2 }
 0x139   : > { %6853 = vrot.lane.b32.xlu0 %v6852_v1, %s9477_s12  ;;  %v1002_v8 = vsel %vm999_vm7, %v6586_v59, %v6590_v6  ;;  %v1004_v9 = vsel %vm999_vm7, %v6591_v5, %v6595_v4  ;;  %v1005_v10 = vsel %vm999_vm7, %v6595_v4, %v6596_v3 }
 0x13a   : > { %v6604_v11 = vpop.permute.xlu0 %6603  ;;  %v6599_v12 = vpop.permute.xlu1 %6598  ;;  %v6857_v13 = vpack.i.bf16 %v1002_v8, %v1001_v7  ;;  %v6862_v14 = vpack.i.bf16 %v1005_v10, %v1004_v9 }
 0x13b   : > { %v6601_v15 = vunpack.i.h.bf16 %v6599_v12  ;;  %v6600_v16 = vunpack.i.l.bf16 %v6599_v12  ;;  %v6606_v17 = vunpack.i.h.bf16 %v6604_v11  ;;  %v6605_v18 = vunpack.i.l.bf16 %v6604_v11 }
 0x13c   : > { %6858 = vrot.lane.b32.xlu1 %v6857_v13, %s9477_s12 }
 0x13d   : > { %6863 = vrot.lane.b32.xlu0 %v6862_v14, %s9477_s12  ;;  %v1000_v19 = vsel %vm999_vm7, %v6600_v16, %v6585_v60  ;;  %v1003_v20 = vsel %vm999_vm7, %v6601_v15, %v6591_v5  ;;  %v1024_v30 = vsel %vm1022_vm8, %v6605_v18, %v6606_v17 }
 0x13e   : > { %v6614_v21 = vpop.permute.xlu0 %6613  ;;  %v6609_v22 = vpop.permute.xlu1 %6608  ;;  %v6867_v23 = vpack.i.bf16 %v1003_v20, %v1000_v19 }
 0x13f   : > { %v6616_v24 = vunpack.i.h.bf16 %v6614_v21  ;;  %v6615_v25 = vunpack.i.l.bf16 %v6614_v21  ;;  %v6611_v26 = vunpack.i.h.bf16 %v6609_v22  ;;  %v6610_v27 = vunpack.i.l.bf16 %v6609_v22 }
 0x140   : > { %6868 = vrot.lane.b32.xlu1 %v6867_v23, %s9477_s12 }
 0x141   : > { %v1027_v28 = vsel %vm1022_vm8, %v6611_v26, %v6615_v25  ;;  %v1028_v29 = vsel %vm1022_vm8, %v6615_v25, %v6616_v24  ;;  %v1025_v31 = vsel %vm1022_vm8, %v6606_v17, %v6610_v27 }
 0x142   : > { %v6624_v32 = vpop.permute.xlu0 %6623  ;;  %v6619_v33 = vpop.permute.xlu1 %6618  ;;  %v6877_v34 = vpack.i.bf16 %v1028_v29, %v1027_v28  ;;  %v6872_v35 = vpack.i.bf16 %v1025_v31, %v1024_v30 }
 0x143   : > { %v6621_v37 = vunpack.i.h.bf16 %v6619_v33  ;;  %v6620_v38 = vunpack.i.l.bf16 %v6619_v33  ;;  %v6626_v39 = vunpack.i.h.bf16 %v6624_v32  ;;  %v6625_v40 = vunpack.i.l.bf16 %v6624_v32 }
 0x144   : > { %6878 = vrot.lane.b32.xlu1 %v6877_v34, %s9477_s12  ;;  %6873 = vrot.lane.b32.xlu0 %v6872_v35, %s9477_s12 }
 0x145   : > { %v1023_v41 = vsel %vm1022_vm8, %v6620_v38, %v6605_v18  ;;  %v1026_v42 = vsel %vm1022_vm8, %v6621_v37, %v6611_v26  ;;  %v1048_v52 = vsel %vm1045_vm9, %v6625_v40, %v6626_v39  ;;  %vm7616_vm8 = vmmov 1  }
 0x146   : > { %v6634_v43 = vpop.permute.xlu0 %6633  ;;  %v6629_v45 = vpop.permute.xlu1 %6628  ;;  %v6882_v46 = vpack.i.bf16 %v1026_v42, %v1023_v41 }
 0x147   : > { %v6636_v47 = vunpack.i.h.bf16 %v6634_v43  ;;  %v6635_v48 = vunpack.i.l.bf16 %v6634_v43  ;;  %v6631_v49 = vunpack.i.h.bf16 %v6629_v45  ;;  %v6630_v50 = vunpack.i.l.bf16 %v6629_v45 }
 0x148   : > { %6883 = vrot.lane.b32.xlu0 %v6882_v46, %s9477_s12 }
 0x149   : > { %v1051_v53 = vsel %vm1045_vm9, %v6630_v50, %v6631_v49  ;;  %v1047_v54 = vsel %vm1045_vm9, %v6635_v48, %v6625_v40  ;;  %v1050_v55 = vsel %vm1045_vm9, %v6636_v47, %v6630_v50 }
 0x14a   : > { %v6644_v56 = vpop.permute.xlu0 %6643  ;;  %v6639_v57 = vpop.permute.xlu1 %6638  ;;  %v6887_v58 = vpack.i.bf16 %v1051_v53, %v1048_v52  ;;  %v6892_v59 = vpack.i.bf16 %v1050_v55, %v1047_v54 }
 0x14b   : > { %v6641_v60 = vunpack.i.h.bf16 %v6639_v57  ;;  %v6640_v61 = vunpack.i.l.bf16 %v6639_v57  ;;  %v6646_v62 = vunpack.i.h.bf16 %v6644_v56  ;;  %v6645_v63 = vunpack.i.l.bf16 %v6644_v56 }
 0x14c   : > { %6888 = vrot.lane.b32.xlu1 %v6887_v58, %s9477_s12  ;;  %6893 = vrot.lane.b32.xlu0 %v6892_v59, %s9477_s12 }
 0x14d   : > { %v1046_v0 = vsel %vm1045_vm9, %v6640_v61, %v6635_v48  ;;  %v1049_v1 = vsel %vm1045_vm9, %v6641_v60, %v6636_v47  ;;  %v1071_v11 = vsel %vm1068_vm10, %v6645_v63, %v6646_v62 }
 0x14e   : > { %v6654_v2 = vpop.permute.xlu0 %6653  ;;  %v6649_v3 = vpop.permute.xlu1 %6648  ;;  %v6897_v4 = vpack.i.bf16 %v1049_v1, %v1046_v0 }
 0x14f   : > { %v6656_v5 = vunpack.i.h.bf16 %v6654_v2  ;;  %v6655_v6 = vunpack.i.l.bf16 %v6654_v2  ;;  %v6651_v7 = vunpack.i.h.bf16 %v6649_v3  ;;  %v6650_v8 = vunpack.i.l.bf16 %v6649_v3 }
 0x150   : > { %6898 = vrot.lane.b32.xlu1 %v6897_v4, %s9477_s12 }
 0x151   : > { %v1070_v9 = vsel %vm1068_vm10, %v6655_v6, %v6645_v63  ;;  %v1073_v10 = vsel %vm1068_vm10, %v6656_v5, %v6650_v8  ;;  %v1074_v12 = vsel %vm1068_vm10, %v6650_v8, %v6651_v7 }
 0x152   : > { %v6664_v13 = vpop.permute.xlu0 %6663  ;;  %v6659_v14 = vpop.permute.xlu1 %6658  ;;  %v6907_v15 = vpack.i.bf16 %v1073_v10, %v1070_v9  ;;  %v6902_v16 = vpack.i.bf16 %v1074_v12, %v1071_v11 }
 0x153   : > { %v6661_v17 = vunpack.i.h.bf16 %v6659_v14  ;;  %v6660_v18 = vunpack.i.l.bf16 %v6659_v14  ;;  %v6666_v19 = vunpack.i.h.bf16 %v6664_v13  ;;  %v6665_v20 = vunpack.i.l.bf16 %v6664_v13 }
 0x154   : > { %6908 = vrot.lane.b32.xlu1 %v6907_v15, %s9477_s12  ;;  %6903 = vrot.lane.b32.xlu0 %v6902_v16, %s9477_s12 }
 0x155   : > { %v1069_v21 = vsel %vm1068_vm10, %v6660_v18, %v6655_v6  ;;  %v1072_v22 = vsel %vm1068_vm10, %v6661_v17, %v6656_v5  ;;  %v1094_v30 = vsel %vm1091_vm11, %v6665_v20, %v6666_v19 }
 0x156   : > { %v6674_v23 = vpop.permute.xlu0 %6673  ;;  %v6669_v24 = vpop.permute.xlu1 %6668  ;;  %v6912_v25 = vpack.i.bf16 %v1072_v22, %v1069_v21 }
 0x157   : > { %v6676_v26 = vunpack.i.h.bf16 %v6674_v23  ;;  %v6675_v27 = vunpack.i.l.bf16 %v6674_v23  ;;  %v6671_v28 = vunpack.i.h.bf16 %v6669_v24  ;;  %v6670_v29 = vunpack.i.l.bf16 %v6669_v24 }
 0x158   : > { %6913 = vrot.lane.b32.xlu0 %v6912_v25, %s9477_s12 }
 0x159   : > { %v1097_v31 = vsel %vm1091_vm11, %v6670_v29, %v6671_v28  ;;  %v1093_v32 = vsel %vm1091_vm11, %v6675_v27, %v6665_v20  ;;  %v1096_v33 = vsel %vm1091_vm11, %v6676_v26, %v6670_v29 }
 0x15a   : > { %v6684_v34 = vpop.permute.xlu0 %6683  ;;  %v6679_v35 = vpop.permute.xlu1 %6678  ;;  %v6917_v37 = vpack.i.bf16 %v1097_v31, %v1094_v30  ;;  %v6922_v38 = vpack.i.bf16 %v1096_v33, %v1093_v32 }
 0x15b   : > { %v6681_v39 = vunpack.i.h.bf16 %v6679_v35  ;;  %v6680_v40 = vunpack.i.l.bf16 %v6679_v35  ;;  %v6686_v41 = vunpack.i.h.bf16 %v6684_v34  ;;  %v6685_v42 = vunpack.i.l.bf16 %v6684_v34 }
 0x15c   : > { %6918 = vrot.lane.b32.xlu1 %v6917_v37, %s9477_s12  ;;  %6923 = vrot.lane.b32.xlu0 %v6922_v38, %s9477_s12 }
 0x15d   : > { %v1092_v43 = vsel %vm1091_vm11, %v6680_v40, %v6675_v27  ;;  %v1095_v45 = vsel %vm1091_vm11, %v6681_v39, %v6676_v26  ;;  %v1117_v56 = vsel %vm1114_vm12, %v6685_v42, %v6686_v41 }
 0x15e   : > { %v6694_v46 = vpop.permute.xlu0 %6693  ;;  %v6689_v47 = vpop.permute.xlu1 %6688  ;;  %v6927_v48 = vpack.i.bf16 %v1095_v45, %v1092_v43 }
 0x15f   : > { %v6696_v49 = vunpack.i.h.bf16 %v6694_v46  ;;  %v6695_v50 = vunpack.i.l.bf16 %v6694_v46  ;;  %v6691_v52 = vunpack.i.h.bf16 %v6689_v47  ;;  %v6690_v53 = vunpack.i.l.bf16 %v6689_v47 }
 0x160   : > { %6928 = vrot.lane.b32.xlu1 %v6927_v48, %s9477_s12 }
 0x161   : > { %v1116_v54 = vsel %vm1114_vm12, %v6695_v50, %v6685_v42  ;;  %v1119_v55 = vsel %vm1114_vm12, %v6696_v49, %v6690_v53  ;;  %v1120_v57 = vsel %vm1114_vm12, %v6690_v53, %v6691_v52 }
 0x162   : > { %v6704_v58 = vpop.permute.xlu0 %6703  ;;  %v6699_v59 = vpop.permute.xlu1 %6698  ;;  %v6937_v60 = vpack.i.bf16 %v1119_v55, %v1116_v54  ;;  %v6932_v61 = vpack.i.bf16 %v1120_v57, %v1117_v56 }
 0x163   : > { %v6701_v62 = vunpack.i.h.bf16 %v6699_v59  ;;  %v6700_v63 = vunpack.i.l.bf16 %v6699_v59  ;;  %v6706_v0 = vunpack.i.h.bf16 %v6704_v58  ;;  %v6705_v1 = vunpack.i.l.bf16 %v6704_v58 }
 0x164   : > { %6938 = vrot.lane.b32.xlu1 %v6937_v60, %s9477_s12  ;;  %6933 = vrot.lane.b32.xlu0 %v6932_v61, %s9477_s12 }
 0x165   : > { %v1115_v2 = vsel %vm1114_vm12, %v6700_v63, %v6695_v50  ;;  %v1118_v3 = vsel %vm1114_vm12, %v6701_v62, %v6696_v49  ;;  %v1140_v11 = vsel %vm1137_vm13, %v6705_v1, %v6706_v0 }
 0x166   : > { %v6714_v4 = vpop.permute.xlu0 %6713  ;;  %v6709_v5 = vpop.permute.xlu1 %6708  ;;  %v6942_v6 = vpack.i.bf16 %v1118_v3, %v1115_v2  ;;  %v1214_v2 = vld [vmem:[%s9534_s2 + $0x8] sm:$0xff] }
 0x167   : > { %v6716_v7 = vunpack.i.h.bf16 %v6714_v4  ;;  %v6715_v8 = vunpack.i.l.bf16 %v6714_v4  ;;  %v6711_v9 = vunpack.i.h.bf16 %v6709_v5  ;;  %v6710_v10 = vunpack.i.l.bf16 %v6709_v5  ;;  %1706 = vmatprep.mubr.f32.mxu1 %v1214_v2  ;;  %1629 = vmatprep.mubr.f32.mxu0 %v1214_v2 }
 0x168   : > { %6943 = vrot.lane.b32.xlu0 %v6942_v6, %s9477_s12 }
 0x169   : > { %v1143_v12 = vsel %vm1137_vm13, %v6710_v10, %v6711_v9  ;;  %v1139_v13 = vsel %vm1137_vm13, %v6715_v8, %v6705_v1  ;;  %v1142_v14 = vsel %vm1137_vm13, %v6716_v7, %v6710_v10 }
 0x16a   : > { %v6724_v15 = vpop.permute.xlu0 %6723  ;;  %v6719_v16 = vpop.permute.xlu1 %6718  ;;  %v6947_v17 = vpack.i.bf16 %v1143_v12, %v1140_v11  ;;  %v6952_v18 = vpack.i.bf16 %v1142_v14, %v1139_v13 }
 0x16b   : > { %v6721_v19 = vunpack.i.h.bf16 %v6719_v16  ;;  %v6720_v20 = vunpack.i.l.bf16 %v6719_v16  ;;  %v6726_v21 = vunpack.i.h.bf16 %v6724_v15  ;;  %v6725_v22 = vunpack.i.l.bf16 %v6724_v15 }
 0x16c   : > { %6948 = vrot.lane.b32.xlu1 %v6947_v17, %s9477_s12  ;;  %6953 = vrot.lane.b32.xlu0 %v6952_v18, %s9477_s12 }
 0x16d   : > { %v1138_v23 = vsel %vm1137_vm13, %v6720_v20, %v6715_v8  ;;  %v1141_v24 = vsel %vm1137_vm13, %v6721_v19, %v6716_v7  ;;  %v1163_v34 = vsel %vm1160_vm14, %v6725_v22, %v6726_v21  ;;  %vm2896_vm13 = vcmask 351232  }
 0x16e   : > { %v6734_v25 = vpop.permute.xlu0 %6733  ;;  %v6729_v26 = vpop.permute.xlu1 %6728  ;;  %v6957_v27 = vpack.i.bf16 %v1141_v24, %v1138_v23 }
 0x16f   : > { %v6736_v28 = vunpack.i.h.bf16 %v6734_v25  ;;  %v6735_v29 = vunpack.i.l.bf16 %v6734_v25  ;;  %v6731_v30 = vunpack.i.h.bf16 %v6729_v26  ;;  %v6730_v31 = vunpack.i.l.bf16 %v6729_v26  ;;  %v1217_v26 = vld [vmem:[%s9535_s0] sm:$0xff] }
 0x170   : > { %6958 = vrot.lane.b32.xlu1 %v6957_v27, %s9477_s12  ;;  %v7613_v27 = vmov 0  }
 0x171   : > { %v1162_v32 = vsel %vm1160_vm14, %v6735_v29, %v6725_v22  ;;  %v1165_v33 = vsel %vm1160_vm14, %v6736_v28, %v6730_v31  ;;  %v1166_v35 = vsel %vm1160_vm14, %v6730_v31, %v6731_v30  ;;  %7007 = vset.pattern.permute.xlu1 %v7613_v27  ;;  %7008 = vset.pattern.permute.xlu0 %v7613_v27 }
 0x172   : > { %v6744_v37 = vpop.permute.xlu0 %6743  ;;  %v6739_v38 = vpop.permute.xlu1 %6738  ;;  %v6967_v39 = vpack.i.bf16 %v1165_v33, %v1162_v32  ;;  %v6962_v40 = vpack.i.bf16 %v1166_v35, %v1163_v34 }
 0x173   : > { %v6741_v41 = vunpack.i.h.bf16 %v6739_v38  ;;  %v6740_v42 = vunpack.i.l.bf16 %v6739_v38  ;;  %v6746_v43 = vunpack.i.h.bf16 %v6744_v37  ;;  %v6745_v45 = vunpack.i.l.bf16 %v6744_v37 }
 0x174   : > { %6968 = vrot.lane.b32.xlu1 %v6967_v39, %s9477_s12  ;;  %6963 = vrot.lane.b32.xlu0 %v6962_v40, %s9477_s12 }
 0x175   : > { %v1164_v46 = vsel %vm1160_vm14, %v6741_v41, %v6736_v28  ;;  %v1161_v47 = vsel %vm1160_vm14, %v6740_v42, %v6735_v29  ;;  %v1186_v56 = vsel %vm1183_vm15, %v6745_v45, %v6746_v43  ;;  %v1218_v28 = vld [vmem:[%s9535_s0 + $0x8] sm:$0xff]  ;;  %s9539_s0 = smov 109   ;;  %vm3037_vm14 = vcmask 261120  }
 0x176   : > { %v6754_v48 = vpop.permute.xlu0 %6753  ;;  %v6749_v49 = vpop.permute.xlu1 %6748  ;;  %v6972_v50 = vpack.i.bf16 %v1164_v46, %v1161_v47 }
 0x177   : > { %v6756_v52 = vunpack.i.h.bf16 %v6754_v48  ;;  %v6755_v53 = vunpack.i.l.bf16 %v6754_v48  ;;  %v6751_v54 = vunpack.i.h.bf16 %v6749_v49  ;;  %v6750_v55 = vunpack.i.l.bf16 %v6749_v49 }
 0x178   : > { %6973 = vrot.lane.b32.xlu0 %v6972_v50, %s9477_s12 }
 0x179   : > { %v1185_v57 = vsel %vm1183_vm15, %v6755_v53, %v6745_v45  ;;  %v1188_v58 = vsel %vm1183_vm15, %v6756_v52, %v6750_v55  ;;  %v1189_v59 = vsel %vm1183_vm15, %v6750_v55, %v6751_v54 }
 0x17a   : > { %v6764_v60 = vpop.permute.xlu0 %6763  ;;  %v6759_v61 = vpop.permute.xlu1 %6758  ;;  %v6977_v62 = vpack.i.bf16 %v1189_v59, %v1186_v56  ;;  %v6982_v63 = vpack.i.bf16 %v1188_v58, %v1185_v57 }
 0x17b   : > { %v6761_v0 = vunpack.i.h.bf16 %v6759_v61  ;;  %v6760_v1 = vunpack.i.l.bf16 %v6759_v61  ;;  %v6766_v3 = vunpack.i.h.bf16 %v6764_v60  ;;  %v6765_v4 = vunpack.i.l.bf16 %v6764_v60 }
 0x17c   : > { %6978 = vrot.lane.b32.xlu1 %v6977_v62, %s9477_s12  ;;  %6983 = vrot.lane.b32.xlu0 %v6982_v63, %s9477_s12 }
 0x17d   : > { %v1187_v5 = vsel %vm1183_vm15, %v6761_v0, %v6756_v52  ;;  %v1184_v6 = vsel %vm1183_vm15, %v6760_v1, %v6755_v53  ;;  %v1209_v14 = vsel %vm1206_vm0, %v6765_v4, %v6766_v3  ;;  %vm8784_vm15 = vmpackc.low %vm2896_vm13, %vm2896_vm13 }
 0x17e   : > { %v6774_v7 = vpop.permute.xlu0 %6773  ;;  %v6769_v8 = vpop.permute.xlu1 %6768  ;;  %v6987_v9 = vpack.i.bf16 %v1187_v5, %v1184_v6 }
 0x17f   : > { %v6776_v10 = vunpack.i.h.bf16 %v6774_v7  ;;  %v6775_v11 = vunpack.i.l.bf16 %v6774_v7  ;;  %v6771_v12 = vunpack.i.h.bf16 %v6769_v8  ;;  %v6770_v13 = vunpack.i.l.bf16 %v6769_v8 }
 0x180   : > { %6988 = vrot.lane.b32.xlu1 %v6987_v9, %s9477_s12 }
 0x181   : > { %v1208_v15 = vsel %vm1206_vm0, %v6775_v11, %v6765_v4  ;;  %v1211_v16 = vsel %vm1206_vm0, %v6776_v10, %v6770_v13  ;;  %v1212_v17 = vsel %vm1206_vm0, %v6770_v13, %v6771_v12 }
 0x182   : > { %v6779_v18 = vpop.permute.xlu1 %6778  ;;  %v6997_v19 = vpack.i.bf16 %v1211_v16, %v1208_v15  ;;  %v6992_v20 = vpack.i.bf16 %v1212_v17, %v1209_v14 }
 0x183   : > { %v6781_v21 = vunpack.i.h.bf16 %v6779_v18  ;;  %v6780_v22 = vunpack.i.l.bf16 %v6779_v18 }
 0x184   : > { %6998 = vrot.lane.b32.xlu1 %v6997_v19, %s9477_s12  ;;  %6993 = vrot.lane.b32.xlu0 %v6992_v20, %s9477_s12 }
 0x185   : > { %v1210_v23 = vsel %vm1206_vm0, %v6781_v21, %v6776_v10  ;;  %v1207_v24 = vsel %vm1206_vm0, %v6780_v22, %v6775_v11  ;;  %vm3886_vm0 = vcmask 293888  }
 0x186   : > { %v7002_v25 = vpack.i.bf16 %v1210_v23, %v1207_v24 }
 0x188   : > { %7003 = vrot.lane.b32.xlu0 %v7002_v25, %s9477_s12  ;;  %1221 = vperm.xlu1 %7007, %v1217_v26   ;;  %s7614_s12 = smov 20  }
 0x18a   : > { %v8015_v29 = vpop.permute.xlu1 %6788  ;;  %v8017_v30 = vpop.permute.xlu0 %6783 }
 0x18b   : > { %v6791_v31 = vunpack.i.h.bf16 %v8015_v29  ;;  %v6790_v32 = vunpack.i.l.bf16 %v8015_v29  ;;  %v6786_v33 = vunpack.i.h.bf16 %v8017_v30  ;;  %v6785_v34 = vunpack.i.l.bf16 %v8017_v30 }
 0x18c   : > { %1226 = vperm.xlu0 %7008, %v1218_v28  }
 0x18d   : > { %v1410_v35 = vsel %vm976_vm6, %v6785_v34, %v6786_v33  ;;  %v1412_v37 = vsel %vm976_vm6, %v6790_v32, %v6791_v31  ;;  %v5973_v44 = vpack.c.bf16 %v6791_v31, %v6786_v33 }
 0x18e   : > { %v8029_v38 = vpop.permute.xlu1 %6798  ;;  %v6794_v39 = vpop.permute.xlu0 %6793  ;;  %v5907_v40 = vpack.c.bf16 %v1412_v37, %v1410_v35 }
 0x18f   : > { %v6796_v41 = vunpack.i.h.bf16 %v6794_v39  ;;  %v6795_v42 = vunpack.i.l.bf16 %v6794_v39  ;;  %v6801_v43 = vunpack.i.h.bf16 %v8029_v38  ;;  %v6800_v45 = vunpack.i.l.bf16 %v8029_v38 }
 0x190   : > { %5908 = vmatprep.subr.bf16.mxu0 %v5907_v40 }
 0x191   : > { %v1409_v46 = vsel %vm976_vm6, %v6795_v42, %v6785_v34  ;;  %v1411_v47 = vsel %vm976_vm6, %v6796_v41, %v6790_v32  ;;  %v1414_v56 = vsel %vm976_vm6, %v6800_v45, %v6801_v43 }
 0x192   : > { %v6809_v48 = vpop.permute.xlu1 %6808  ;;  %v8035_v49 = vpop.permute.xlu0 %6803  ;;  %v5909_v50 = vpack.c.bf16 %v1411_v47, %v1409_v46 }
 0x193   : > { %v6811_v52 = vunpack.i.h.bf16 %v6809_v48  ;;  %v6810_v53 = vunpack.i.l.bf16 %v6809_v48  ;;  %v6806_v54 = vunpack.i.h.bf16 %v8035_v49  ;;  %v6805_v55 = vunpack.i.l.bf16 %v8035_v49 }
 0x194   : > { %5910 = vmatpush1.bf16.msra.mxu0 %v5909_v50 }
 0x195   : > { %v1416_v57 = vsel %vm976_vm6, %v6805_v55, %v6806_v54  ;;  %v1413_v58 = vsel %vm976_vm6, %v6810_v53, %v6800_v45  ;;  %v1415_v59 = vsel %vm976_vm6, %v6811_v52, %v6805_v55 }
 0x196   : > { %v6819_v60 = vpop.permute.xlu1 %6818  ;;  %v6814_v61 = vpop.permute.xlu0 %6813  ;;  %v5911_v62 = vpack.c.bf16 %v1416_v57, %v1414_v56  ;;  %v5913_v63 = vpack.c.bf16 %v1415_v59, %v1413_v58 }
 0x197   : > { %v6821_v0 = vunpack.i.h.bf16 %v6819_v60  ;;  %v6820_v1 = vunpack.i.l.bf16 %v6819_v60  ;;  %v6816_v2 = vunpack.i.h.bf16 %v6814_v61  ;;  %v6815_v3 = vunpack.i.l.bf16 %v6814_v61 }
 0x198   : > { %5912 = vmatprep.subr.bf16.mxu0 %v5911_v62 }
 0x199   : > { %5914 = vmatpush1.bf16.msra.mxu0 %v5913_v63  ;;  %v1418_v4 = vsel %vm976_vm6, %v6815_v3, %v6816_v2  ;;  %v1420_v5 = vsel %vm976_vm6, %v6820_v1, %v6821_v0  ;;  %v8049_v6 = vpack.c.bf16 %v6821_v0, %v6816_v2 }
 0x19a   : > { %v6824_v7 = vpop.permute.xlu0 %6823  ;;  %v5915_v8 = vpack.c.bf16 %v1420_v5, %v1418_v4 }
 0x19b   : > { %v6826_v9 = vunpack.i.h.bf16 %v6824_v7  ;;  %v6825_v10 = vunpack.i.l.bf16 %v6824_v7 }
 0x19c   : > { %5916 = vmatprep.subr.bf16.mxu0 %v5915_v8 }
 0x19d   : > { %v1417_v11 = vsel %vm976_vm6, %v6825_v10, %v6815_v3  ;;  %v1419_v12 = vsel %vm976_vm6, %v6826_v9, %v6820_v1 }
 0x19e   : > { %v6829_v13 = vpop.permute.xlu1 %6828  ;;  %v6834_v14 = vpop.permute.xlu0 %6833  ;;  %v5917_v15 = vpack.c.bf16 %v1419_v12, %v1417_v11 }
 0x19f   : > { %v6831_v16 = vunpack.i.h.bf16 %v6829_v13  ;;  %v6830_v17 = vunpack.i.l.bf16 %v6829_v13  ;;  %v6836_v18 = vunpack.i.h.bf16 %v6834_v14  ;;  %v6835_v19 = vunpack.i.l.bf16 %v6834_v14 }
 0x1a0   : > { %5918 = vmatpush1.bf16.msra.mxu0 %v5917_v15 }
 0x1a1   : > { %v1422_v20 = vsel %vm976_vm6, %v6830_v17, %v6831_v16  ;;  %v1424_v21 = vsel %vm976_vm6, %v6835_v19, %v6836_v18  ;;  %v8055_v22 = vpack.c.bf16 %v6836_v18, %v6831_v16 }
 0x1a2   : > { %v6839_v23 = vpop.permute.xlu1 %6838  ;;  %v5919_v24 = vpack.c.bf16 %v1424_v21, %v1422_v20 }
 0x1a3   : > { %v6841_v25 = vunpack.i.h.bf16 %v6839_v23  ;;  %v6840_v26 = vunpack.i.l.bf16 %v6839_v23 }
 0x1a4   : > { %5920 = vmatprep.subr.bf16.mxu0 %v5919_v24 }
 0x1a5   : > { %v1421_v27 = vsel %vm976_vm6, %v6840_v26, %v6830_v17  ;;  %v1423_v28 = vsel %vm976_vm6, %v6841_v25, %v6835_v19 }
 0x1a6   : > { %v6849_v32 = vpop.permute.xlu1 %6848  ;;  %v5921_v34 = vpack.c.bf16 %v1423_v28, %v1421_v27 }
 0x1a7   : > { %v6851_v35 = vunpack.i.h.bf16 %v6849_v32  ;;  %v6850_v37 = vunpack.i.l.bf16 %v6849_v32  ;;  %v6844_v39 = vpop.permute.xlu0 %6843 }
 0x1a8   : > { %v6846_v40 = vunpack.i.h.bf16 %v6844_v39  ;;  %v6845_v41 = vunpack.i.l.bf16 %v6844_v39  ;;  %5922 = vmatpush1.bf16.msra.mxu0 %v5921_v34 }
 0x1a9   : > { %v1428_v42 = vsel %vm976_vm6, %v6850_v37, %v6851_v35 }
 0x1aa   : > { %v1426_v45 = vsel %vm976_vm6, %v6845_v41, %v6846_v40  ;;  %v8061_v46 = vpack.c.bf16 %v6851_v35, %v6846_v40 }
 0x1ab   : > { %v6854_v47 = vpop.permute.xlu0 %6853  ;;  %v5923_v48 = vpack.c.bf16 %v1428_v42, %v1426_v45 }
 0x1ac   : > { %v6856_v50 = vunpack.i.h.bf16 %v6854_v47  ;;  %v6855_v52 = vunpack.i.l.bf16 %v6854_v47 }
 0x1ad   : > { %5924 = vmatprep.subr.bf16.mxu0 %v5923_v48 }
 0x1ae   : > { %v6859_v53 = vpop.permute.xlu1 %6858  ;;  %v1425_v55 = vsel %vm976_vm6, %v6855_v52, %v6845_v41  ;;  %v1427_v56 = vsel %vm976_vm6, %v6856_v50, %v6850_v37 }
 0x1af   : > { %v6861_v57 = vunpack.i.h.bf16 %v6859_v53  ;;  %v6860_v58 = vunpack.i.l.bf16 %v6859_v53  ;;  %v6864_v59 = vpop.permute.xlu0 %6863  ;;  %v5925_v60 = vpack.c.bf16 %v1427_v56, %v1425_v55 }
 0x1b0   : > { %v6866_v61 = vunpack.i.h.bf16 %v6864_v59  ;;  %v6865_v62 = vunpack.i.l.bf16 %v6864_v59 }
 0x1b1   : > { %5926 = vmatpush1.bf16.msra.mxu0 %v5925_v60  ;;  %v1430_v63 = vsel %vm976_vm6, %v6860_v58, %v6861_v57 }
 0x1b2   : > { %v6869_v0 = vpop.permute.xlu1 %6868  ;;  %v1432_v1 = vsel %vm976_vm6, %v6865_v62, %v6866_v61  ;;  %v8067_v2 = vpack.c.bf16 %v6866_v61, %v6861_v57 }
 0x1b3   : > { %v6871_v3 = vunpack.i.h.bf16 %v6869_v0  ;;  %v6870_v4 = vunpack.i.l.bf16 %v6869_v0  ;;  %v5927_v5 = vpack.c.bf16 %v1432_v1, %v1430_v63 }
 0x1b5   : > { %5928 = vmatprep.subr.bf16.mxu0 %v5927_v5  ;;  %v1429_v7 = vsel %vm976_vm6, %v6870_v4, %v6860_v58  ;;  %v1431_v8 = vsel %vm976_vm6, %v6871_v3, %v6865_v62 }
 0x1b6   : > { %v6879_v9 = vpop.permute.xlu1 %6878  ;;  %v6874_v10 = vpop.permute.xlu0 %6873  ;;  %v5929_v11 = vpack.c.bf16 %v1431_v8, %v1429_v7 }
 0x1b7   : > { %v6881_v12 = vunpack.i.h.bf16 %v6879_v9  ;;  %v6880_v13 = vunpack.i.l.bf16 %v6879_v9  ;;  %v6876_v14 = vunpack.i.h.bf16 %v6874_v10  ;;  %v6875_v15 = vunpack.i.l.bf16 %v6874_v10 }
 0x1b8   : > { %5930 = vmatpush1.bf16.msra.mxu0 %v5929_v11 }
 0x1b9   : > { %v1434_v16 = vsel %vm976_vm6, %v6875_v15, %v6876_v14  ;;  %v1436_v17 = vsel %vm976_vm6, %v6880_v13, %v6881_v12  ;;  %v8073_v18 = vpack.c.bf16 %v6881_v12, %v6876_v14  ;;  %v5977_v14 = vpack.c.bf16 %v6806_v54, %v6801_v43 }
 0x1ba   : > { %v6884_v19 = vpop.permute.xlu0 %6883  ;;  %v5931_v20 = vpack.c.bf16 %v1436_v17, %v1434_v16 }
 0x1bb   : > { %v6886_v21 = vunpack.i.h.bf16 %v6884_v19  ;;  %v6885_v23 = vunpack.i.l.bf16 %v6884_v19 }
 0x1bc   : > { %5932 = vmatprep.subr.bf16.mxu0 %v5931_v20 }
 0x1bd   : > { %v1433_v24 = vsel %vm976_vm6, %v6885_v23, %v6875_v15  ;;  %v1435_v25 = vsel %vm976_vm6, %v6886_v21, %v6880_v13 }
 0x1be   : > { %v6889_v26 = vpop.permute.xlu1 %6888  ;;  %v6894_v27 = vpop.permute.xlu0 %6893  ;;  %v5933_v28 = vpack.c.bf16 %v1435_v25, %v1433_v24 }
 0x1bf   : > { %v6896_v32 = vunpack.i.h.bf16 %v6894_v27  ;;  %v6895_v34 = vunpack.i.l.bf16 %v6894_v27  ;;  %v6891_v35 = vunpack.i.h.bf16 %v6889_v26  ;;  %v6890_v37 = vunpack.i.l.bf16 %v6889_v26 }
 0x1c0   : > { %5934 = vmatpush1.bf16.msra.mxu0 %v5933_v28 }
 0x1c1   : > { %v5967_v39 = vpack.c.bf16 %v6891_v35, %v6890_v37  ;;  %v1438_v40 = vsel %vm976_vm6, %v6895_v34, %v6890_v37  ;;  %v1440_v41 = vsel %vm976_vm6, %v6896_v32, %v6891_v35 }
 0x1c2   : > { %v6899_v42 = vpop.permute.xlu1 %6898  ;;  %v5935_v45 = vpack.c.bf16 %v1440_v41, %v1438_v40 }
 0x1c3   : > { %v6901_v47 = vunpack.i.h.bf16 %v6899_v42  ;;  %v6900_v48 = vunpack.i.l.bf16 %v6899_v42  ;;  %5968 = vmatprep.subr.bf16.mxu1 %v5967_v39 }
 0x1c4   : > { %5936 = vmatprep.subr.bf16.mxu0 %v5935_v45  ;;  %5970 = vmatpush3.bf16.msra.mxu1 %v5969_v51 }
 0x1c5   : > { %v1437_v50 = vsel %vm976_vm6, %v6900_v48, %v6895_v34  ;;  %v1439_v52 = vsel %vm976_vm6, %v6901_v47, %v6896_v32 }
 0x1c6   : > { %v6909_v53 = vpop.permute.xlu1 %6908  ;;  %v6904_v55 = vpop.permute.xlu0 %6903  ;;  %v5937_v56 = vpack.c.bf16 %v1439_v52, %v1437_v50 }
 0x1c7   : > { %v6911_v57 = vunpack.i.h.bf16 %v6909_v53  ;;  %v6910_v58 = vunpack.i.l.bf16 %v6909_v53  ;;  %v6906_v59 = vunpack.i.h.bf16 %v6904_v55  ;;  %v6905_v60 = vunpack.i.l.bf16 %v6904_v55 }
 0x1c8   : > { %5938 = vmatpush1.bf16.msra.mxu0 %v5937_v56 }
 0x1c9   : > { %v5971_v61 = vpack.c.bf16 %v6906_v59, %v6905_v60  ;;  %v1442_v62 = vsel %vm976_vm6, %v6910_v58, %v6905_v60  ;;  %v1444_v63 = vsel %vm976_vm6, %v6911_v57, %v6906_v59 }
 0x1ca   : > { %v6914_v0 = vpop.permute.xlu0 %6913  ;;  %v5939_v36 = vpack.c.bf16 %v1444_v63, %v1442_v62 }
 0x1cb   : > { %v6916_v51 = vunpack.i.h.bf16 %v6914_v0  ;;  %v6915_v1 = vunpack.i.l.bf16 %v6914_v0  ;;  %5972 = vmatprep.subr.bf16.mxu1 %v5971_v61 }
 0x1cc   : > { %5940 = vmatprep.subr.bf16.mxu0 %v5939_v36  ;;  %5974 = vmatpush3.bf16.msra.mxu1 %v5973_v44 }
 0x1cd   : > { %v1441_v3 = vsel %vm976_vm6, %v6915_v1, %v6910_v58  ;;  %v1443_v4 = vsel %vm976_vm6, %v6916_v51, %v6911_v57 }
 0x1ce   : > { %v6919_v5 = vpop.permute.xlu1 %6918  ;;  %v6924_v7 = vpop.permute.xlu0 %6923  ;;  %v5941_v8 = vpack.c.bf16 %v1443_v4, %v1441_v3 }
 0x1cf   : > { %v6921_v9 = vunpack.i.h.bf16 %v6919_v5  ;;  %v6920_v10 = vunpack.i.l.bf16 %v6919_v5  ;;  %v6926_v11 = vunpack.i.h.bf16 %v6924_v7  ;;  %v6925_v12 = vunpack.i.l.bf16 %v6924_v7 }
 0x1d0   : > { %5942 = vmatpush1.bf16.msra.mxu0 %v5941_v8 }
 0x1d1   : > { %v5975_v30 = vpack.c.bf16 %v6921_v9, %v6920_v10  ;;  %v1446_v29 = vsel %vm976_vm6, %v6925_v12, %v6920_v10  ;;  %v1448_v31 = vsel %vm976_vm6, %v6926_v11, %v6921_v9 }
 0x1d2   : > { %v6929_v33 = vpop.permute.xlu1 %6928  ;;  %v5943_v13 = vpack.c.bf16 %v1448_v31, %v1446_v29 }
 0x1d3   : > { %v6931_v15 = vunpack.i.h.bf16 %v6929_v33  ;;  %v6930_v16 = vunpack.i.l.bf16 %v6929_v33  ;;  %5976 = vmatprep.subr.bf16.mxu1 %v5975_v30 }
 0x1d4   : > { %5944 = vmatprep.subr.bf16.mxu0 %v5943_v13  ;;  %5978 = vmatpush3.bf16.msra.mxu1 %v5977_v14 }
 0x1d5   : > { %v1445_v17 = vsel %vm976_vm6, %v6930_v16, %v6925_v12  ;;  %v1447_v19 = vsel %vm976_vm6, %v6931_v15, %v6926_v11 }
 0x1d6   : > { %v6939_v20 = vpop.permute.xlu1 %6938  ;;  %v6934_v21 = vpop.permute.xlu0 %6933  ;;  %v5945_v23 = vpack.c.bf16 %v1447_v19, %v1445_v17 }
 0x1d7   : > { %v6941_v24 = vunpack.i.h.bf16 %v6939_v20  ;;  %v6940_v25 = vunpack.i.l.bf16 %v6939_v20  ;;  %v6936_v26 = vunpack.i.h.bf16 %v6934_v21  ;;  %v6935_v27 = vunpack.i.l.bf16 %v6934_v21 }
 0x1d8   : > { %5946 = vmatpush1.bf16.msra.mxu0 %v5945_v23 }
 0x1d9   : > { %v5979_v38 = vpack.c.bf16 %v6936_v26, %v6935_v27  ;;  %v1450_v43 = vsel %vm976_vm6, %v6940_v25, %v6935_v27  ;;  %v1452_v49 = vsel %vm976_vm6, %v6941_v24, %v6936_v26 }
 0x1da   : > { %v6944_v54 = vpop.permute.xlu0 %6943  ;;  %v5947_v28 = vpack.c.bf16 %v1452_v49, %v1450_v43 }
 0x1db   : > { %v6946_v32 = vunpack.i.h.bf16 %v6944_v54  ;;  %v6945_v34 = vunpack.i.l.bf16 %v6944_v54  ;;  %5980 = vmatprep.subr.bf16.mxu1 %v5979_v38 }
 0x1dc   : > { %5948 = vmatprep.subr.bf16.mxu0 %v5947_v28  ;;  %5982 = vmatpush3.bf16.msra.mxu1 %v8049_v6 }
 0x1dd   : > { %v1449_v35 = vsel %vm976_vm6, %v6945_v34, %v6940_v25  ;;  %v1451_v37 = vsel %vm976_vm6, %v6946_v32, %v6941_v24 }
 0x1de   : > { %v6949_v39 = vpop.permute.xlu1 %6948  ;;  %v6954_v40 = vpop.permute.xlu0 %6953  ;;  %v5949_v41 = vpack.c.bf16 %v1451_v37, %v1449_v35  ;;  %v1213_v37 = vld [vmem:[%s9534_s2] sm:$0xff] }
 0x1df   : > { %v6951_v42 = vunpack.i.h.bf16 %v6949_v39  ;;  %v6950_v45 = vunpack.i.l.bf16 %v6949_v39  ;;  %v6956_v47 = vunpack.i.h.bf16 %v6954_v40  ;;  %v6955_v48 = vunpack.i.l.bf16 %v6954_v40 }
 0x1e0   : > { %5950 = vmatpush1.bf16.msra.mxu0 %v5949_v41  ;;  %v1216_v41 = vld [vmem:[%s9534_s2 + $0x18] sm:$0xff] }
 0x1e1   : > { %v5983_v50 = vpack.c.bf16 %v6951_v42, %v6950_v45  ;;  %v1454_v52 = vsel %vm976_vm6, %v6955_v48, %v6950_v45  ;;  %v1456_v53 = vsel %vm976_vm6, %v6956_v47, %v6951_v42  ;;  %v1725_v45 = vlaneseq }
 0x1e2   : > { %v6959_v55 = vpop.permute.xlu1 %6958  ;;  %v5951_v56 = vpack.c.bf16 %v1456_v53, %v1454_v52 }
 0x1e3   : > { %v6961_v6 = vunpack.i.h.bf16 %v6959_v55  ;;  %v6960_v57 = vunpack.i.l.bf16 %v6959_v55  ;;  %5984 = vmatprep.subr.bf16.mxu1 %v5983_v50  ;;  %v1723_v55 = vld [vmem:[%s9536_s6] sm:$0x7]  ;;  %s9552_s6 = smov 118  }
 0x1e4   : > { %5952 = vmatprep.subr.bf16.mxu0 %v5951_v56  ;;  %5986 = vmatpush3.bf16.msra.mxu1 %v8055_v22 }
 0x1e5   : > { %v1453_v58 = vsel %vm976_vm6, %v6960_v57, %v6955_v48  ;;  %v1455_v59 = vsel %vm976_vm6, %v6961_v6, %v6956_v47  ;;  %v1726_v47 = vshrl.u32 %v1725_v45, 7  ;;  %v2024_v45 = vld [vmem:[%s9537_s4 + $0x20] sm:$0xff] }
 0x1e6   : > { %v6969_v60 = vpop.permute.xlu1 %6968  ;;  %v6964_v61 = vpop.permute.xlu0 %6963  ;;  %v5953_v62 = vpack.c.bf16 %v1455_v59, %v1453_v58 }
 0x1e7   : > { %v6971_v63 = vunpack.i.h.bf16 %v6969_v60  ;;  %v6970_v0 = vunpack.i.l.bf16 %v6969_v60  ;;  %v6966_v36 = vunpack.i.h.bf16 %v6964_v61  ;;  %v6965_v44 = vunpack.i.l.bf16 %v6964_v61 }
 0x1e8   : > { %5954 = vmatpush1.bf16.msra.mxu0 %v5953_v62  ;;  %v1735_v50 = vsub.s32 2, %v1726_v47  ;;  %v1731_v58 = vsub.s32 1, %v1726_v47  ;;  %v1727_v62 = vsub.s32 0, %v1726_v47  ;;  %v2025_v47 = vld [vmem:[%s9537_s4 + $0x28] sm:$0xff] }
 0x1e9   : > { %v5987_v51 = vpack.c.bf16 %v6966_v36, %v6965_v44  ;;  %v1458_v1 = vsel %vm976_vm6, %v6970_v0, %v6965_v44  ;;  %v1460_v3 = vsel %vm976_vm6, %v6971_v63, %v6966_v36 }
 0x1ea   : > { %v6974_v4 = vpop.permute.xlu0 %6973  ;;  %v5955_v5 = vpack.c.bf16 %v1460_v3, %v1458_v1  ;;  %v1736_v60 = vrot.slane %v1723_v55, %v1735_v50  ;;  %v6009_v50 = vpack.c.bf16 %v2025_v47, %v2024_v45  ;;  %v2064_v45 = vld [vmem:[%s9537_s4 + $0x160] sm:$0xff]  ;;  %v2065_v47 = vld [vmem:[%s9537_s4 + $0x168] sm:$0x1] }
 0x1eb   : > { %v6976_v22 = vunpack.i.h.bf16 %v6974_v4  ;;  %v6975_v7 = vunpack.i.l.bf16 %v6974_v4  ;;  %5988 = vmatprep.subr.bf16.mxu1 %v5987_v51  ;;  %v1732_v4 = vrot.slane %v1723_v55, %v1731_v58  ;;  %v2044_v58 = vld [vmem:[%s9537_s4 + $0xc0] sm:$0xff] }
 0x1ec   : > { %5956 = vmatprep.subr.bf16.mxu0 %v5955_v5  ;;  %5990 = vmatpush3.bf16.msra.mxu1 %v8061_v46 }
 0x1ed   : > { %v1457_v8 = vsel %vm976_vm6, %v6975_v7, %v6970_v0  ;;  %v1459_v9 = vsel %vm976_vm6, %v6976_v22, %v6971_v63 }
 0x1ee   : > { %v6979_v10 = vpop.permute.xlu1 %6978  ;;  %v6984_v11 = vpop.permute.xlu0 %6983  ;;  %v5957_v12 = vpack.c.bf16 %v1459_v9, %v1457_v8  ;;  %v1728_v8 = vrot.slane %v1723_v55, %v1727_v62  ;;  %v2026_v55 = vld [vmem:[%s9537_s4 + $0x30] sm:$0xff]  ;;  %v2029_v62 = vld [vmem:[%s9537_s4 + $0x48] sm:$0xff] }
 0x1ef   : > { %v6981_v30 = vunpack.i.h.bf16 %v6979_v10  ;;  %v6980_v29 = vunpack.i.l.bf16 %v6979_v10  ;;  %v6986_v31 = vunpack.i.h.bf16 %v6984_v11  ;;  %v6985_v33 = vunpack.i.l.bf16 %v6984_v11 }
 0x1f0   : > { %5958 = vmatpush1.bf16.msra.mxu0 %v5957_v12 }
 0x1f1   : > { %v5991_v13 = vpack.c.bf16 %v6981_v30, %v6980_v29  ;;  %v1462_v14 = vsel %vm976_vm6, %v6985_v33, %v6980_v29  ;;  %v1464_v15 = vsel %vm976_vm6, %v6986_v31, %v6981_v30 }
 0x1f2   : > { %v6989_v16 = vpop.permute.xlu1 %6988  ;;  %v5959_v17 = vpack.c.bf16 %v1464_v15, %v1462_v14 }
 0x1f3   : > { %v6991_v46 = vunpack.i.h.bf16 %v6989_v16  ;;  %v6990_v19 = vunpack.i.l.bf16 %v6989_v16  ;;  %5992 = vmatprep.subr.bf16.mxu1 %v5991_v13 }
 0x1f4   : > { %5960 = vmatprep.subr.bf16.mxu0 %v5959_v17  ;;  %5994 = vmatpush3.bf16.msra.mxu1 %v8067_v2 }
 0x1f5   : > { %v1461_v20 = vsel %vm976_vm6, %v6990_v19, %v6985_v33  ;;  %v1463_v21 = vsel %vm976_vm6, %v6991_v46, %v6986_v31  ;;  %v7615_v46 = vmov 0.0  }
 0x1f6   : > { %v6999_v23 = vpop.permute.xlu1 %6998  ;;  %v6994_v24 = vpop.permute.xlu0 %6993  ;;  %v5961_v25 = vpack.c.bf16 %v1463_v21, %v1461_v20  ;;  %v2036_v20 = vld [vmem:[%s9537_s4 + $0x80] sm:$0xff]  ;;  %v2037_v21 = vld [vmem:[%s9537_s4 + $0x88] sm:$0xff] }
 0x1f7   : > { %v7001_v26 = vunpack.i.h.bf16 %v6999_v23  ;;  %v7000_v27 = vunpack.i.l.bf16 %v6999_v23  ;;  %v6996_v38 = vunpack.i.h.bf16 %v6994_v24  ;;  %v6995_v43 = vunpack.i.l.bf16 %v6994_v24  ;;  %v2020_v23 = vld [vmem:[%s9537_s4] sm:$0xff] }
 0x1f8   : > { %5962 = vmatpush1.bf16.msra.mxu0 %v5961_v25  ;;  %v5999_v25 = vpack.c.bf16 %v2037_v21, %v2036_v20  ;;  %v2052_v21 = vld [vmem:[%s9537_s4 + $0x100] sm:$0xff] }
 0x1f9   : > { %v5995_v49 = vpack.c.bf16 %v6996_v38, %v6995_v43  ;;  %v1466_v54 = vsel %vm976_vm6, %v7000_v27, %v6995_v43  ;;  %v1468_v28 = vsel %vm976_vm6, %v7001_v26, %v6996_v38 }
 0x1fa   : > { %v7004_v32 = vpop.permute.xlu0 %7003  ;;  %v5963_v34 = vpack.c.bf16 %v1468_v28, %v1466_v54  ;;  %v2038_v54 = vld [vmem:[%s9537_s4 + $0x90] sm:$0xff]  ;;  %v2039_v28 = vld [vmem:[%s9537_s4 + $0x98] sm:$0xff] }
 0x1fb   : > { %v7006_v2 = vunpack.i.h.bf16 %v7004_v32  ;;  %v7005_v35 = vunpack.i.l.bf16 %v7004_v32  ;;  %5996 = vmatprep.subr.bf16.mxu1 %v5995_v49  ;;  %v2022_v32 = vld [vmem:[%s9537_s4 + $0x10] sm:$0xff] }
 0x1fc   : > { %5964 = vmatprep.subr.bf16.mxu0 %v5963_v34  ;;  %5998 = vmatpush3.bf16.msra.mxu1 %v8073_v18  ;;  %v1215_v18 = vld [vmem:[%s9534_s2 + $0x10] sm:$0xff]  ;;  %s9549_s2 = sld [smem:[#allocation9_spill]] }
 0x1fd   : > { %v1465_v39 = vsel %vm976_vm6, %v7005_v35, %v7000_v27  ;;  %v1467_v40 = vsel %vm976_vm6, %v7006_v2, %v7001_v26  ;;  %v2021_v26 = vld [vmem:[%s9537_s4 + $0x8] sm:$0xff]  ;;  %6000 = vmatprep.subr.bf16.mxu1 %v5999_v25  ;;  %v6003_v2 = vpack.c.bf16 %v2039_v28, %v2038_v54  ;;  %v2023_v35 = vld [vmem:[%s9537_s4 + $0x18] sm:$0xff]  ;;  %v2054_v25 = vld [vmem:[%s9537_s4 + $0x110] sm:$0xff] }
 0x1fe   : > { %v5965_v42 = vpack.c.bf16 %v1467_v40, %v1465_v39  ;;  %v6001_v38 = vpack.c.bf16 %v2021_v26, %v2020_v23  ;;  %v2053_v23 = vld [vmem:[%s9537_s4 + $0x108] sm:$0xff]  ;;  %v2055_v26 = vld [vmem:[%s9537_s4 + $0x118] sm:$0xff]  ;;  %v2058_v28 = vld [vmem:[%s9537_s4 + $0x130] sm:$0xff] }
 0x1ff   : > { %1707 = vmatmul.mubr.f32.vlgmr.msra.gmra.mrb[0].mxu1 %v1213_v37 }
 0x200   : > { %5966 = vmatpush1.bf16.msra.mxu0 %v5965_v42  ;;  %1711 = vmatprep.mubr.f32.mxu1 %v1216_v41  ;;  %v2040_v42 = vld [vmem:[%s9537_s4 + $0xa0] sm:$0xff] }
 0x201   : > { %6002 = vmatpush3.bf16.msra.mxu1 %v6001_v38  ;;  %v2056_v38 = vld [vmem:[%s9537_s4 + $0x120] sm:$0xff] }
 0x202   : > { %6004 = vmatprep.subr.bf16.mxu1 %v6003_v2  ;;  %v2060_v2 = vld [vmem:[%s9537_s4 + $0x140] sm:$0xff] }
 0x203   : > { %1630 = vmatmul.mubr.f32.vlgmr.msra.gmra.mrb[0].mxu0 %v1213_v37  ;;  %1712 = vmatmul.mubr.f32.gmra.mrb[2].mxu1 %v1215_v18  ;;  %v6005_v37 = vpack.c.bf16 %v2023_v35, %v2022_v32  ;;  %v2059_v32 = vld [vmem:[%s9537_s4 + $0x138] sm:$0xff]  ;;  %v2061_v35 = vld [vmem:[%s9537_s4 + $0x148] sm:$0xff] }
 0x204   : > { %1635 = vmatprep.mubr.f32.mxu0 %v1216_v41 }
 0x205   : > { %6006 = vmatpush3.bf16.msra.mxu1 %v6005_v37  ;;  %v6047_v37 = vpack.c.bf16 %v2061_v35, %v2060_v2 }
 0x207   : > { %1636 = vmatmul.mubr.f32.gmra.mrb[2].mxu0 %v1215_v18  ;;  %v1222_v53 = vpop.permute.xlu1 %1221  ;;  %v2041_v18 = vld [vmem:[%s9537_s4 + $0xa8] sm:$0xff] }
 0x20b   : > { %v1227_v1 = vpop.permute.xlu0 %1226 }
 0x2d2   : > { %v5273_v48 = vpop.f32.mrb[0].mxu1 }
 0x2d3   : > { %v5274_v52 = vpop.f32.mrb[1].mxu1 }
 0x2d4   : > { %v5275_v56 = vadd.f32 %v5274_v52, %v5273_v48  ;;  %v6007_v48 = vpack.c.bf16 %v2041_v18, %v2040_v42  ;;  %v2042_v52 = vld [vmem:[%s9537_s4 + $0xb0] sm:$0xff]  ;;  %v2063_v42 = vld [vmem:[%s9537_s4 + $0x158] sm:$0xff] }
 0x2d6   : > { %v1709_v6 = vadd.f32 %v5275_v56, %v1222_v53  ;;  %v1631_v57 = vpop.f32.mrb[0].mxu0  ;;  %v5276_v59 = vpop.f32.mrb[2].mxu1  ;;  %6008 = vmatprep.subr.bf16.mxu1 %v6007_v48  ;;  %v6055_v48 = vpack.c.bf16 %v2065_v47, %v2064_v45 }
 0x2d7   : > { %v1632_v61 = vadd.f32 %v1631_v57, %v1222_v53  ;;  %v1633_v63 = vpop.f32.mrb[1].mxu0  ;;  %v5277_v0 = vpop.f32.mrb[3].mxu1  ;;  %6010 = vmatpush3.bf16.msra.mxu1 %v6009_v50 }
 0x2d8   : > { %v1719_v36 = vmax.f32 %v1709_v6, 0.0  ;;  %v1634_v44 = vadd.f32 %v1633_v63, %v1222_v53  ;;  %v5278_v51 = vadd.f32 %v5277_v0, %v5276_v59  ;;  %v2043_v53 = vld [vmem:[%s9537_s4 + $0xb8] sm:$0xff]  ;;  %v2045_v59 = vld [vmem:[%s9537_s4 + $0xc8] sm:$0xff]  ;;  %v2046_v0 = vld [vmem:[%s9537_s4 + $0xd0] sm:$0xff] }
 0x2d9   : > { %v1717_v7 = vmax.f32 %v1632_v61, 0.0  ;;  %v6011_v56 = vpack.c.bf16 %v2043_v53, %v2042_v52  ;;  %v2027_v6 = vld [vmem:[%s9537_s4 + $0x38] sm:$0xff]  ;;  %v6015_v61 = vpack.c.bf16 %v2045_v59, %v2044_v58 }
 0x2da   : > { %v1718_v3 = vmax.f32 %v1634_v44, 0.0  ;;  %v1637_v5 = vpop.f32.mrb[2].mxu0  ;;  %v1742_v22 = vmul.f32 %v1736_v60, %v1719_v36  ;;  %v1714_v12 = vadd.f32 %v5278_v51, %v1227_v1  ;;  %v6013_v57 = vpack.c.bf16 %v2027_v6, %v2026_v55  ;;  %v2047_v36 = vld [vmem:[%s9537_s4 + $0xd8] sm:$0xff]  ;;  %v2030_v44 = vld [vmem:[%s9537_s4 + $0x50] sm:$0xff] }
 0x2db   : > { %v1638_v9 = vadd.f32 %v1637_v5, %v1227_v1  ;;  %v1639_v10 = vpop.f32.mrb[3].mxu0  ;;  %v1740_v33 = vmul.f32 %v1728_v8, %v1717_v7  ;;  %6012 = vmatprep.subr.bf16.mxu1 %v6011_v56  ;;  %v6019_v51 = vpack.c.bf16 %v2047_v36, %v2046_v0  ;;  %v2049_v5 = vld [vmem:[%s9537_s4 + $0xe8] sm:$0xff] }
 0x2dc   : > { %v1640_v11 = vadd.f32 %v1639_v10, %v1227_v1  ;;  %1756 = vrot.lane.b32.xlu1 %v1742_v22, %s7614_s12  ;;  %v1741_v29 = vmul.f32 %v1732_v4, %v1718_v3  ;;  %v1722_v14 = vmax.f32 %v1714_v12, 0.0  ;;  %6014 = vmatpush3.bf16.msra.mxu1 %v6013_v57  ;;  %v2031_v1 = vld [vmem:[%s9537_s4 + $0x58] sm:$0xff]  ;;  %v2032_v22 = vld [vmem:[%s9537_s4 + $0x60] sm:$0xff]  ;;  %v2050_v12 = vld [vmem:[%s9537_s4 + $0xf0] sm:$0xff] }
 0x2dd   : > { %v1720_v30 = vmax.f32 %v1638_v9, 0.0  ;;  %6016 = vmatprep.subr.bf16.mxu1 %v6015_v61  ;;  %v6021_v3 = vpack.c.bf16 %v2031_v1, %v2030_v44 }
 0x2de   : > { %v1721_v31 = vmax.f32 %v1640_v11, 0.0  ;;  %v1745_v17 = vmul.f32 %v1736_v60, %v1722_v14  ;;  %v2028_v60 = vld [vmem:[%s9537_s4 + $0x40] sm:$0xff] }
 0x2df   : > { %v1743_v13 = vmul.f32 %v1728_v8, %v1720_v30  ;;  %v6017_v63 = vpack.c.bf16 %v2029_v62, %v2028_v60  ;;  %v2033_v8 = vld [vmem:[%s9537_s4 + $0x68] sm:$0xff]  ;;  %v2051_v30 = vld [vmem:[%s9537_s4 + $0xf8] sm:$0xff] }
 0x2e0   : > { %1754 = vrot.lane.b32.xlu1 %v1741_v29, %s7614_s12  ;;  %v1744_v16 = vmul.f32 %v1732_v4, %v1721_v31  ;;  %v2048_v4 = vld [vmem:[%s9537_s4 + $0xe0] sm:$0xff]  ;;  %v6025_v10 = vpack.c.bf16 %v2033_v8, %v2032_v22  ;;  %v2034_v29 = vld [vmem:[%s9537_s4 + $0x70] sm:$0xff]  ;;  %v6027_v31 = vpack.c.bf16 %v2051_v30, %v2050_v12 }
 0x2e1   : > { %v7009_v15 = vpack.i.bf16 %v1743_v13, %v1740_v33  ;;  %6018 = vmatpush3.bf16.msra.mxu1 %v6017_v63  ;;  %v6023_v7 = vpack.c.bf16 %v2049_v5, %v2048_v4  ;;  %v2035_v33 = vld [vmem:[%s9537_s4 + $0x78] sm:$0xff] }
 0x2e2   : > { %6020 = vmatprep.subr.bf16.mxu1 %v6019_v51 }
 0x2e3   : > { %7010 = vrot.lane.b32.xlu0 %v7009_v15, %s7614_s12  ;;  %v6029_v15 = vpack.c.bf16 %v2035_v33, %v2034_v29 }
 0x2e4   : > { %1760 = vrot.lane.b32.xlu1 %v1744_v16, %s7614_s12 }
 0x2e5   : > { %6022 = vmatpush3.bf16.msra.mxu1 %v6021_v3 }
 0x2e6   : > { %6024 = vmatprep.subr.bf16.mxu1 %v6023_v7 }
 0x2e7   : > { %1762 = vrot.lane.b32.xlu0 %v1745_v17, %s7614_s12  ;;  %s9551_s12 = sld [smem:[#allocation12_spill]] }
 0x2e8   : > { %1930 = vrot.lane.b32.xlu1 %v7615_v46, %s9483_s9  ;;  %s9542_s9 = smov 90  }
 0x2e9   : > { %6026 = vmatpush3.bf16.msra.mxu1 %v6025_v10 }
 0x2ea   : > { %6028 = vmatprep.subr.bf16.mxu1 %v6027_v31 }
 0x2eb   : > { %1962 = vrot.lane.b32.xlu0 %v7615_v46, %s9485_s30  ;;  %s9510_s30 = smov 7  }
 0x2ed   : > { %6030 = vmatpush3.bf16.msra.mxu1 %v6029_v15 }
 0x34e   : > { %v1757_v19 = vpop.permute.xlu1 %1756 }
 0x352   : > { %v1755_v24 = vpop.permute.xlu1 %1754 }
 0x353   : > { %v1766_v27 = vsel %vm1764_vm1, %v1755_v24, %v1757_v19 }
 0x354   : > { %v8155_v43 = vsel %vm930_vm4, %v1766_v27, 0.0  ;;  %v6035_v27 = vpack.c.bf16 %v2055_v26, %v2054_v25 }
 0x355   : > { %1787 = vrot.lane.b32.xlu0 %v8155_v43, %s9488_s11  ;;  %v8159_v49 = vpop.permute.xlu0 %7010 }
 0x356   : > { %v7012_v34 = vunpack.i.l.bf16 %v8159_v49  ;;  %v7013_v9 = vunpack.i.h.bf16 %v8159_v49  ;;  %v1761_v11 = vpop.permute.xlu1 %1760  ;;  %v2057_v49 = vld [vmem:[%s9537_s4 + $0x128] sm:$0xff] }
 0x357   : > { %v6039_v54 = vpack.c.bf16 %v2057_v49, %v2056_v38 }
 0x358   : > { %v8175_v39 = vsel %vm1764_vm1, %v7012_v34, %v1755_v24  ;;  %v8178_v40 = vsel %vm1764_vm1, 0.0, %v7012_v34  ;;  %v8282_v13 = vsel %vm1764_vm1, 0.0, %v7013_v9  ;;  %v8285_v14 = vsel %vm1764_vm1, %v7013_v9, %v1761_v11 }
 0x359   : > { %1815 = vrot.lane.b32.xlu0 %v8155_v43, %s9538_s29  ;;  %v8184_v41 = vpack.i.bf16 %v8178_v40, %v8175_v39  ;;  %v1763_v16 = vpop.permute.xlu0 %1762  ;;  %v7084_v17 = vpack.i.bf16 %v8282_v13, %v8285_v14  ;;  %v6031_v24 = vpack.c.bf16 %v2053_v23, %v2052_v21  ;;  %v6043_v34 = vpack.c.bf16 %v2059_v32, %v2058_v28 }
 0x35a   : > { %v1768_v19 = vsel %vm1764_vm1, %v1761_v11, %v1763_v16  ;;  %v8371_v53 = vpop.permute.xlu1 %1930  ;;  %vm4051_vm1 = vcmask 39936  }
 0x35b   : > { %7015 = vrot.lane.b32.xlu1 %v8184_v41, %s9488_s11  ;;  %v8298_v20 = vsel %vm930_vm4, %v1768_v19, 0.0  ;;  %6032 = vmatprep.subr.bf16.mxu0 %v6031_v24  ;;  %vm2073_vm4 = vcmask 1040384   ;;  %s9502_s11 = smov 114  }
 0x35c   : > { %6034 = vmatpush3.bf16.msra.mxu0 %v6031_v24  ;;  %vm6056_vm12 = vmpackc.low %vm2073_vm4, %vm7616_vm8  ;;  %vm4060_vm4 = vcmask 171008  }
 0x35d   : > { %1843 = vrot.lane.b32.xlu0 %v8155_v43, %s9539_s0  ;;  %6036 = vmatprep.subr.bf16.mxu0 %v6035_v27  ;;  %v8367_v50 = vpop.permute.xlu0 %1962  ;;  %vm9206_vm8 = vmpackc.low %vm4060_vm4, %vm4060_vm4 }
 0x35f   : > { %7020 = vrot.lane.b32.xlu1 %v8184_v41, %s9538_s29 }
 0x360   : > { %6038 = vmatpush3.bf16.msra.mxu0 %v6035_v27 }
 0x361   : > { %1871 = vrot.lane.b32.xlu0 %v8155_v43, %s9540_s7  ;;  %6040 = vmatprep.subr.bf16.mxu0 %v6039_v54 }
 0x363   : > { %7025 = vrot.lane.b32.xlu1 %v8184_v41, %s9539_s0 }
 0x364   : > { %6042 = vmatpush3.bf16.msra.mxu0 %v6039_v54 }
 0x365   : > { %1899 = vrot.lane.b32.xlu0 %v8155_v43, %s9541_s1  ;;  %6044 = vmatprep.subr.bf16.mxu0 %v6043_v34 }
 0x367   : > { %7030 = vrot.lane.b32.xlu1 %v8184_v41, %s9540_s7 }
 0x368   : > { %6046 = vmatpush3.bf16.msra.mxu0 %v6043_v34 }
 0x369   : > { %1928 = vrot.lane.b32.xlu0 %v8155_v43, %s9542_s9  ;;  %6048 = vmatprep.subr.bf16.mxu0 %v6047_v37 }
 0x36b   : > { %7035 = vrot.lane.b32.xlu1 %v8184_v41, %s9541_s1 }
 0x36c   : > { %6050 = vmatpush3.bf16.msra.mxu0 %v6047_v37 }
 0x36d   : > { %1960 = vrot.lane.b32.xlu0 %v8155_v43, %s9543_s10 }
 0x36f   : > { %7040 = vrot.lane.b32.xlu1 %v8184_v41, %s9542_s9 }
 0x371   : > { %1992 = vrot.lane.b32.xlu0 %v8155_v43, %s9544_s3 }
 0x373   : > { %7045 = vrot.lane.b32.xlu1 %v8184_v41, %s9543_s10 }
 0x375   : > { %7085 = vrot.lane.b32.xlu0 %v7084_v17, %s9543_s10 }
 0x377   : > { %7050 = vrot.lane.b32.xlu1 %v8184_v41, %s9544_s3  ;;  %v2062_v41 = vld [vmem:[%s9537_s4 + $0x150] sm:$0xff] }
 0x378   : > { %v6051_v18 = vpack.c.bf16 %v2063_v42, %v2062_v41 }
 0x379   : > { %1793 = vrot.lane.b32.xlu0 %v8298_v20, %s9545_s28 }
 0x37a   : > { %6052 = vmatprep.subr.bf16.mxu0 %v6051_v18 }
 0x37b   : > { %7055 = vrot.lane.b32.xlu1 %v7084_v17, %s9545_s28  ;;  %6054 = vmatpush3.bf16.msra.mxu0 %v6051_v18 }
 0x37c   : > { %6057 = vmatprep.subr.msk.bf16.mxu0 %vm6056_vm12, %v6055_v48 }
 0x37d   : > { %1821 = vrot.lane.b32.xlu0 %v8298_v20, %s9538_s29 }
 0x37f   : > { %7060 = vrot.lane.b32.xlu1 %v7084_v17, %s9538_s29  ;;  %6060 = vmatpush3.bf16.msk.msra.mxu0 %vm6056_vm12, %v6055_v48  ;;  %vm4357_vm12 = vcmask 523264  }
 0x381   : > { %1849 = vrot.lane.b32.xlu0 %v8298_v20, %s9539_s0 }
 0x383   : > { %7065 = vrot.lane.b32.xlu1 %v7084_v17, %s9539_s0  ;;  %s9498_s0 = smov 116  }
 0x385   : > { %1877 = vrot.lane.b32.xlu0 %v8298_v20, %s9540_s7 }
 0x387   : > { %7070 = vrot.lane.b32.xlu1 %v7084_v17, %s9540_s7 }
 0x389   : > { %1905 = vrot.lane.b32.xlu0 %v8298_v20, %s9541_s1 }
 0x38b   : > { %7075 = vrot.lane.b32.xlu1 %v7084_v17, %s9541_s1 }
 0x38d   : > { %1936 = vrot.lane.b32.xlu0 %v8298_v20, %s9542_s9 }
 0x38f   : > { %7080 = vrot.lane.b32.xlu1 %v7084_v17, %s9542_s9  ;;  %s9495_s9 = smov 11  }
 0x391   : > { %2000 = vrot.lane.b32.xlu0 %v8298_v20, %s9544_s3 }
 0x393   : > { %7090 = vrot.lane.b32.xlu1 %v7084_v17, %s9544_s3 }
 0x397   : > { %1968 = vrot.lane.b32.xlu1 %v8298_v20, %s9543_s10  ;;  %s9494_s10 = smov 117  }
 0x39b   : > { %1994 = vrot.lane.b32.xlu1 %v7615_v46, %s9544_s3  ;;  %s9492_s3 = smov 118  }
 0x3c7   : > { %v8369_v52 = vpop.permute.xlu0 %1787 }
 0x3cb   : > { %v8373_v55 = vpop.permute.xlu0 %1815 }
 0x3cd   : > { %v7016_v56 = vpop.permute.xlu1 %7015 }
 0x3ce   : > { %v7018_v61 = vunpack.i.h.bf16 %v7016_v56  ;;  %v7017_v62 = vunpack.i.l.bf16 %v7016_v56 }
 0x3cf   : > { %v8375_v6 = vpop.permute.xlu0 %1843 }
 0x3d0   : > { %v1795_v51 = vsel %vm896_vm2, %v7018_v61, %v7017_v62  ;;  %v1796_v1 = vsel %vm896_vm2, %v7017_v62, %v8369_v52 }
 0x3d1   : > { %v7021_v57 = vpop.permute.xlu1 %7020  ;;  %v1805_v10 = vmax.f32 %v8178_v40, %v1795_v51  ;;  %v1806_v11 = vmax.f32 %v8175_v39, %v1796_v1 }
 0x3d2   : > { %v7023_v0 = vunpack.i.h.bf16 %v7021_v57  ;;  %v7022_v36 = vunpack.i.l.bf16 %v7021_v57 }
 0x3d3   : > { %v8377_v58 = vpop.permute.xlu0 %1871 }
 0x3d4   : > { %v1823_v22 = vsel %vm913_vm3, %v7023_v0, %v7022_v36  ;;  %v1824_v7 = vsel %vm913_vm3, %v7022_v36, %v8373_v55 }
 0x3d5   : > { %v7026_v59 = vpop.permute.xlu1 %7025  ;;  %v1833_v15 = vmax.f32 %v1805_v10, %v1823_v22  ;;  %v1834_v16 = vmax.f32 %v1806_v11, %v1824_v7 }
 0x3d6   : > { %v7028_v3 = vunpack.i.h.bf16 %v7026_v59  ;;  %v7027_v4 = vunpack.i.l.bf16 %v7026_v59 }
 0x3d7   : > { %v8379_v60 = vpop.permute.xlu0 %1899 }
 0x3d8   : > { %v1851_v30 = vsel %vm953_vm5, %v7028_v3, %v7027_v4  ;;  %v1852_v29 = vsel %vm953_vm5, %v7027_v4, %v8375_v6 }
 0x3d9   : > { %v7031_v63 = vpop.permute.xlu1 %7030  ;;  %v1861_v39 = vmax.f32 %v1833_v15, %v1851_v30  ;;  %v1862_v24 = vmax.f32 %v1834_v16, %v1852_v29 }
 0x3da   : > { %v7033_v8 = vunpack.i.h.bf16 %v7031_v63  ;;  %v7032_v9 = vunpack.i.l.bf16 %v7031_v63 }
 0x3db   : > { %v8381_v44 = vpop.permute.xlu0 %1928 }
 0x3dc   : > { %v1879_v19 = vsel %vm976_vm6, %v7033_v8, %v7032_v9  ;;  %v1880_v21 = vsel %vm976_vm6, %v7032_v9, %v8377_v58 }
 0x3dd   : > { %v7036_v5 = vpop.permute.xlu1 %7035  ;;  %v1889_v38 = vmax.f32 %v1861_v39, %v1879_v19  ;;  %v1890_v49 = vmax.f32 %v1862_v24, %v1880_v21 }
 0x3de   : > { %v7038_v31 = vunpack.i.h.bf16 %v7036_v5  ;;  %v7037_v33 = vunpack.i.l.bf16 %v7036_v5 }
 0x3df   : > { %v8391_v12 = vpop.permute.xlu0 %1960 }
 0x3e0   : > { %v1907_v26 = vsel %vm999_vm7, %v7038_v31, %v7037_v33  ;;  %v1908_v27 = vsel %vm999_vm7, %v7037_v33, %v8379_v60 }
 0x3e1   : > { %v7041_v17 = vpop.permute.xlu1 %7040  ;;  %v1917_v35 = vmax.f32 %v1889_v38, %v1907_v26  ;;  %v1918_v37 = vmax.f32 %v1890_v49, %v1908_v27  ;;  %v1807_v38 = vmax.f32 %v8155_v43, %v8369_v52 }
 0x3e2   : > { %v7043_v40 = vunpack.i.h.bf16 %v7041_v17  ;;  %v7042_v23 = vunpack.i.l.bf16 %v7041_v17 }
 0x3e3   : > { %v8399_v25 = vpop.permute.xlu0 %1992 }
 0x3e4   : > { %v1938_v28 = vsel %vm1045_vm9, %v7043_v40, %v7042_v23  ;;  %v1939_v32 = vsel %vm1045_vm9, %v7042_v23, %v8381_v44 }
 0x3e5   : > { %v7046_v54 = vpop.permute.xlu1 %7045  ;;  %v1950_v45 = vmax.f32 %v1917_v35, %v1938_v28  ;;  %v1951_v48 = vmax.f32 %v1918_v37, %v1939_v32 }
 0x3e6   : > { %v7048_v34 = vunpack.i.h.bf16 %v7046_v54  ;;  %v7047_v2 = vunpack.i.l.bf16 %v7046_v54 }
 0x3e7   : > { %v8407_v41 = vpop.permute.xlu0 %7085 }
 0x3e8   : > { %v1970_v42 = vsel %vm1068_vm10, %v7048_v34, %v7047_v2  ;;  %v1971_v18 = vsel %vm1068_vm10, %v7047_v2, %v8391_v12 }
 0x3e9   : > { %v7051_v47 = vpop.permute.xlu1 %7050  ;;  %v1982_v59 = vmax.f32 %v1950_v45, %v1970_v42  ;;  %v1983_v62 = vmax.f32 %v1951_v48, %v1971_v18 }
 0x3ea   : > { %v7053_v56 = vunpack.i.h.bf16 %v7051_v47  ;;  %v7052_v57 = vunpack.i.l.bf16 %v7051_v47 }
 0x3eb   : > { %v1794_v61 = vpop.permute.xlu0 %1793 }
 0x3ec   : > { %v2002_v63 = vsel %vm1091_vm11, %v7053_v56, %v7052_v57  ;;  %v2003_v0 = vsel %vm1091_vm11, %v7052_v57, %v8399_v25  ;;  %v1810_v2 = vmax.f32 %v8298_v20, %v1794_v61  ;;  %v7088_v20 = vunpack.i.h.bf16 %v8407_v41 }
 0x3ed   : > { %v2014_v36 = vmax.f32 %v1982_v59, %v2002_v63  ;;  %v7056_v51 = vpop.permute.xlu1 %7055  ;;  %v2015_v1 = vmax.f32 %v1983_v62, %v2003_v0  ;;  %v7087_v59 = vunpack.i.l.bf16 %v8407_v41 }
 0x3ee   : > { %v7058_v22 = vunpack.i.h.bf16 %v7056_v51  ;;  %v7057_v7 = vunpack.i.l.bf16 %v7056_v51 }
 0x3ef   : > { %v1822_v3 = vpop.permute.xlu0 %1821  ;;  %2141 = vmatprep.mubr.f32.mxu1 %v2015_v1 }
 0x3f0   : > { %2142 = vmatmul.mubr.f32.vlgmr.msra.gmra.mrb[4].mxu1 %v2014_v36  ;;  %v1797_v11 = vsel %vm896_vm2, %v7058_v22, %v7057_v7  ;;  %v1798_v19 = vsel %vm896_vm2, %v7057_v7, %v1794_v61  ;;  %v1940_v7 = vsel %vm1045_vm9, %v8381_v44, %v8371_v53  ;;  %vm2066_vm2 = vcmask 859136  }
 0x3f1   : > { %v7061_v4 = vpop.permute.xlu1 %7060  ;;  %v1808_v21 = vmax.f32 %v8282_v13, %v1797_v11  ;;  %v1809_v49 = vmax.f32 %v8285_v14, %v1798_v19  ;;  %v1835_v13 = vmax.f32 %v1807_v38, %v8373_v55  ;;  %v1838_v14 = vmax.f32 %v1810_v2, %v1822_v3 }
 0x3f2   : > { %v7063_v9 = vunpack.i.h.bf16 %v7061_v4  ;;  %v7062_v10 = vunpack.i.l.bf16 %v7061_v4  ;;  %v1972_v11 = vsel %vm1068_vm10, %v8391_v12, %v8367_v50 }
 0x3f3   : > { %v1850_v5 = vpop.permute.xlu0 %1849  ;;  %v1863_v48 = vmax.f32 %v1835_v13, %v8375_v6 }
 0x3f4   : > { %v1825_v15 = vsel %vm913_vm3, %v7063_v9, %v7062_v10  ;;  %v1826_v39 = vsel %vm913_vm3, %v7062_v10, %v1822_v3  ;;  %v1866_v61 = vmax.f32 %v1838_v14, %v1850_v5  ;;  %vm2235_vm3 = vcmask 89088  }
 0x3f5   : > { %v7066_v8 = vpop.permute.xlu1 %7065  ;;  %v1836_v24 = vmax.f32 %v1808_v21, %v1825_v15  ;;  %v1837_v35 = vmax.f32 %v1809_v49, %v1826_v39  ;;  %v1891_v36 = vmax.f32 %v1863_v48, %v8377_v58  ;;  %v1973_v58 = vsel %vm1068_vm10, %v7088_v20, %v7087_v59 }
 0x3f6   : > { %v7068_v30 = vunpack.i.h.bf16 %v7066_v8  ;;  %v7067_v29 = vunpack.i.l.bf16 %v7066_v8  ;;  %v7617_v49 = vmov 0.0|0.0  }
 0x3f7   : > { %v1878_v31 = vpop.permute.xlu0 %1877  ;;  %6061 = vmatprep.subr.bf16.mxu1 %v7617_v49  ;;  %6089 = vmatprep.subr.bf16.mxu0 %v7617_v49 }
 0x3f8   : > { %v1853_v40 = vsel %vm953_vm5, %v7068_v30, %v7067_v29  ;;  %v1854_v32 = vsel %vm953_vm5, %v7067_v29, %v1850_v5  ;;  %v1894_v3 = vmax.f32 %v1866_v61, %v1878_v31  ;;  %v1919_v5 = vmax.f32 %v1891_v36, %v8379_v60 }
 0x3f9   : > { %v7071_v33 = vpop.permute.xlu1 %7070  ;;  %v1864_v34 = vmax.f32 %v1836_v24, %v1853_v40  ;;  %v1865_v47 = vmax.f32 %v1837_v35, %v1854_v32  ;;  %vm2238_vm5 = vcmask 908288  }
 0x3fa   : > { %v7073_v16 = vunpack.i.h.bf16 %v7071_v33  ;;  %v7072_v17 = vunpack.i.l.bf16 %v7071_v33 }
 0x3fb   : > { %v1906_v28 = vpop.permute.xlu0 %1905 }
 0x3fc   : > { %v1881_v54 = vsel %vm976_vm6, %v7073_v16, %v7072_v17  ;;  %v1882_v18 = vsel %vm976_vm6, %v7072_v17, %v1878_v31  ;;  %v1922_v8 = vmax.f32 %v1894_v3, %v1906_v28  ;;  %v1952_v31 = vmax.f32 %v1919_v5, %v1940_v7  ;;  %vm8468_vm6 = vmpackc.low %vm2238_vm5, %vm2238_vm5 }
 0x3fd   : > { %v7076_v23 = vpop.permute.xlu1 %7075  ;;  %v1892_v45 = vmax.f32 %v1864_v34, %v1881_v54  ;;  %v1893_v62 = vmax.f32 %v1865_v47, %v1882_v18 }
 0x3fe   : > { %v7078_v26 = vunpack.i.h.bf16 %v7076_v23  ;;  %v7077_v27 = vunpack.i.l.bf16 %v7076_v23  ;;  %v1984_v17 = vmax.f32 %v1952_v31, %v1972_v11 }
 0x3ff   : > { %v1937_v63 = vpop.permute.xlu0 %1936 }
 0x400   : > { %v1909_v37 = vsel %vm999_vm7, %v7078_v26, %v7077_v27  ;;  %v1910_v56 = vsel %vm999_vm7, %v7077_v27, %v1906_v28  ;;  %v1943_v41 = vsel %vm1045_vm9, %v1937_v63, %v8371_v53  ;;  %vm2307_vm7 = vcmask 130048  }
 0x401   : > { %v7081_v42 = vpop.permute.xlu1 %7080  ;;  %v1920_v57 = vmax.f32 %v1892_v45, %v1909_v37  ;;  %v1921_v22 = vmax.f32 %v1893_v62, %v1910_v56  ;;  %v1955_v33 = vmax.f32 %v1922_v8, %v1943_v41 }
 0x402   : > { %v7083_v43 = vunpack.i.h.bf16 %v7081_v42  ;;  %v7082_v52 = vunpack.i.l.bf16 %v7081_v42 }
 0x403   : > { %v2001_v53 = vpop.permute.xlu0 %2000 }
 0x404   : > { %v1941_v55 = vsel %vm1045_vm9, %v7083_v43, %v7082_v52  ;;  %v1942_v51 = vsel %vm1045_vm9, %v7082_v52, %v1937_v63  ;;  %v2636_v52 = vld [vmem:[%s9557_s27 + $0x8] sm:$0xff]  ;;  %vm2786_vm9 = vcmask 1043456  }
 0x405   : > { %v7091_v0 = vpop.permute.xlu1 %7090  ;;  %v1953_v1 = vmax.f32 %v1920_v57, %v1941_v55  ;;  %v1954_v10 = vmax.f32 %v1921_v22, %v1942_v51  ;;  %v2296_v57 = vld [vmem:[%s9549_s2 + $0x8] sm:$0xff]  ;;  %v2295_v55 = vld [vmem:[%s9549_s2] sm:$0xff]  ;;  %s9554_s2 = sld [smem:[#allocation10_spill]] }
 0x406   : > { %v7093_v6 = vunpack.i.h.bf16 %v7091_v0  ;;  %v7092_v4 = vunpack.i.l.bf16 %v7091_v0 }
 0x407   : > { %v1985_v44 = vmax.f32 %v1953_v1, %v1973_v58 }
 0x408   : > { %v2005_v60 = vsel %vm1091_vm11, %v7093_v6, %v7092_v4  ;;  %v2006_v16 = vsel %vm1091_vm11, %v7092_v4, %v2001_v53 }
 0x409   : > { %v1969_v9 = vpop.permute.xlu1 %1968  ;;  %v2017_v39 = vmax.f32 %v1985_v44, %v2005_v60 }
 0x40a   : > { %v1974_v30 = vsel %vm1068_vm10, %v7087_v59, %v1969_v9  ;;  %v1975_v29 = vsel %vm1068_vm10, %v1969_v9, %v8367_v50  ;;  %vm2773_vm10 = vcmask 818176  }
 0x40b   : > { %v1986_v15 = vmax.f32 %v1954_v10, %v1974_v30  ;;  %v1987_v19 = vmax.f32 %v1955_v33, %v1975_v29 }
 0x40d   : > { %v1995_v21 = vpop.permute.xlu1 %1994  ;;  %v2018_v40 = vmax.f32 %v1986_v15, %v2006_v16 }
 0x40e   : > { %v2004_v12 = vsel %vm1091_vm11, %v8399_v25, %v1995_v21  ;;  %v2007_v23 = vsel %vm1091_vm11, %v2001_v53, %v1995_v21  ;;  %vm2891_vm11 = vcmask 56320  }
 0x40f   : > { %v2016_v50 = vmax.f32 %v1984_v17, %v2004_v12  ;;  %v2019_v24 = vmax.f32 %v1987_v19, %v2007_v23  ;;  %2146 = vmatprep.mubr.f32.mxu1 %v2018_v40 }
 0x410   : > { %2147 = vmatmul.mubr.f32.gmra.mrb[6].mxu1 %v2017_v39 }
 0x411   : > { %5690 = vmatprep.mubr.msk.f32.mxu0 %vm2066_vm2, %v2016_v50 }
 0x412   : > { %5691 = vmatmul.mubr.msk.f32.vlgmr.msra.gmra.mrb[4].mxu0 %vm2066_vm2, %v2019_v24  ;;  %vm7632_vm2 = vmmov 0  }
 0x4c3   : > { %v5311_v26 = vpop.f32.mrb[4].mxu1 }
 0x4c4   : > { %v5312_v27 = vpop.f32.mrb[5].mxu1 }
 0x4c5   : > { %v5313_v38 = vadd.f32 %v5312_v27, %v5311_v26 }
 0x4e3   : > { %v5314_v54 = vpop.f32.mrb[6].mxu1 }
 0x4e4   : > { %v5315_v25 = vpop.f32.mrb[7].mxu1 }
 0x4e5   : > { %v5316_v28 = vadd.f32 %v5315_v25, %v5314_v54  ;;  %v5692_v32 = vpop.f32.mrb[4].mxu0 }
 0x4e6   : > { %v2218_v34 = vpop.f32.mrb[5].mxu0 }
 0x4e7   : > { %v8457_v13 = vadd.f32 %v5692_v32, %v5316_v28  ;;  %v8459_v2 = vadd.f32 %v5313_v38, %v2218_v34  ;;  %v8516_v32 = vld [vmem:[%s9551_s12] ss:$0 sm:$0xff]  ;;  %s9559_s12 = sld [smem:[#allocation13_spill]] }
 0x4e9   : > { %v7094_v35 = vpack.i.bf16 %v8457_v13, %v8459_v2 }
 0x4eb   : > { %7095 = vrot.lane.b32.xlu0 %v7094_v35, %s9495_s9 }
 0x55d   : > { %v7096_v37 = vpop.permute.xlu0 %7095 }
 0x55e   : > { %v7098_v42 = vunpack.i.h.bf16 %v7096_v37  ;;  %v7097_v18 = vunpack.i.l.bf16 %v7096_v37 }
 0x560   : > { %v2237_v45 = vsel %vm2235_vm3, 0.0, %v7098_v42  ;;  %v2236_v43 = vsel %vm2235_vm3, 0.0, %v7097_v18 }
 0x561   : > { %v2240_v14 = vsel %vm2238_vm5, %v2237_v45, 0.0  ;;  %v2239_v47 = vsel %vm2238_vm5, %v2236_v43, 0.0  ;;  %v6062_v48 = vpack.c.bf16 %v2237_v45, %v2236_v43 }
 0x562   : > { %v7104_v56 = vpack.i.bf16 %v2240_v14, %v2239_v47 }
 0x563   : > { %6064 = vmatpush1.bf16.msk.msra.mxu1 %vm8468_vm6, %v6062_v48 }
 0x564   : > { %7105 = vrot.lane.b32.xlu0 %v7104_v56, %s9538_s29  ;;  %7100 = vrot.lane.b32.xlu1 %v7104_v56, %s9545_s28 }
 0x565   : > { %6065 = vmatprep.subr.bf16.mxu1 %v7617_v49 }
 0x568   : > { %7115 = vrot.lane.b32.xlu0 %v7104_v56, %s9494_s10  ;;  %7110 = vrot.lane.b32.xlu1 %v7104_v56, %s9492_s3  ;;  %s9550_s3 = sld [smem:[#allocation8_spill]] }
 0x56c   : > { %7125 = vrot.lane.b32.xlu0 %v7104_v56, %s9540_s7  ;;  %7120 = vrot.lane.b32.xlu1 %v7104_v56, %s9498_s0 }
 0x56e   : > { %v2292_v20 = vld [vmem:[%s9550_s3 + $0x8] sm:$0xff]  ;;  %v2291_v40 = vld [vmem:[%s9550_s3] sm:$0xff]  ;;  %v2294_v12 = vld [vmem:[%s9550_s3 + $0x18] sm:$0xff] }
 0x56f   : > { %5153 = vmatprep.mubr.msk.f32.mxu1 %vm2307_vm7, %v2292_v20  ;;  %v2293_v23 = vld [vmem:[%s9550_s3 + $0x10] sm:$0xff]  ;;  %v2467_v20 = vld [vmem:[%s9553_s26 + $0x8] sm:$0xff]  ;;  %s9558_s3 = sld [smem:[#allocation14_spill]] }
 0x570   : > { %7135 = vrot.lane.b32.xlu0 %v7104_v56, %s9548_s8  ;;  %7130 = vrot.lane.b32.xlu1 %v7104_v56, %s9541_s1 }
 0x574   : > { %2304 = vperm.xlu0 %7008, %v2296_v57   ;;  %2299 = vperm.xlu1 %7007, %v2295_v55  }
 0x5d6   : > { %v7106_v59 = vpop.permute.xlu0 %7105  ;;  %v7101_v61 = vpop.permute.xlu1 %7100 }
 0x5d7   : > { %v7103_v62 = vunpack.i.h.bf16 %v7101_v61  ;;  %v7102_v63 = vunpack.i.l.bf16 %v7101_v61  ;;  %v7108_v0 = vunpack.i.h.bf16 %v7106_v59  ;;  %v7107_v36 = vunpack.i.l.bf16 %v7106_v59  ;;  %v2466_v59 = vld [vmem:[%s9553_s26] sm:$0xff]  ;;  %v2463_v61 = vld [vmem:[%s9554_s2 + $0x8] sm:$0xff] }
 0x5d8   : > { %5158 = vmatprep.mubr.msk.f32.mxu0 %vm2307_vm7, %v2463_v61  ;;  %v2638_v61 = vld [vmem:[%s9557_s27 + $0x18] sm:$0xff] }
 0x5d9   : > { %v6066_v51 = vpack.c.bf16 %v7103_v62, %v7102_v63  ;;  %v6069_v3 = vpack.c.bf16 %v7108_v0, %v7107_v36 }
 0x5da   : > { %v7111_v1 = vpop.permute.xlu1 %7110  ;;  %v7116_v22 = vpop.permute.xlu0 %7115 }
 0x5db   : > { %6067 = vmatpush1.bf16.msra.mxu1 %v6066_v51  ;;  %v7113_v6 = vunpack.i.h.bf16 %v7111_v1  ;;  %v7112_v4 = vunpack.i.l.bf16 %v7111_v1  ;;  %v7118_v7 = vunpack.i.h.bf16 %v7116_v22  ;;  %v7117_v41 = vunpack.i.l.bf16 %v7116_v22 }
 0x5dc   : > { %6068 = vmatprep.subr.bf16.mxu1 %v7617_v49 }
 0x5dd   : > { %v6072_v5 = vpack.c.bf16 %v7113_v6, %v7112_v4  ;;  %v6075_v9 = vpack.c.bf16 %v7118_v7, %v7117_v41 }
 0x5de   : > { %v7121_v8 = vpop.permute.xlu1 %7120  ;;  %v7126_v11 = vpop.permute.xlu0 %7125 }
 0x5df   : > { %6070 = vmatpush1.bf16.msra.mxu1 %v6069_v3  ;;  %v7123_v10 = vunpack.i.h.bf16 %v7121_v8  ;;  %v7122_v58 = vunpack.i.l.bf16 %v7121_v8  ;;  %v7128_v30 = vunpack.i.h.bf16 %v7126_v11  ;;  %v7127_v29 = vunpack.i.l.bf16 %v7126_v11 }
 0x5e0   : > { %6071 = vmatprep.subr.bf16.mxu1 %v7617_v49 }
 0x5e1   : > { %v6078_v44 = vpack.c.bf16 %v7123_v10, %v7122_v58  ;;  %v6081_v33 = vpack.c.bf16 %v7128_v30, %v7127_v29 }
 0x5e2   : > { %v7131_v31 = vpop.permute.xlu1 %7130  ;;  %v7136_v60 = vpop.permute.xlu0 %7135 }
 0x5e3   : > { %6073 = vmatpush1.bf16.msra.mxu1 %v6072_v5  ;;  %v7133_v53 = vunpack.i.h.bf16 %v7131_v31  ;;  %v7132_v15 = vunpack.i.l.bf16 %v7131_v31  ;;  %v7138_v16 = vunpack.i.h.bf16 %v7136_v60  ;;  %v7137_v17 = vunpack.i.l.bf16 %v7136_v60 }
 0x5e4   : > { %6074 = vmatprep.subr.bf16.mxu1 %v7617_v49 }
 0x5e5   : > { %v6084_v19 = vpack.c.bf16 %v7133_v53, %v7132_v15  ;;  %v6087_v21 = vpack.c.bf16 %v7138_v16, %v7137_v17 }
 0x5e7   : > { %6076 = vmatpush1.bf16.msra.mxu1 %v6075_v9 }
 0x5e8   : > { %6077 = vmatprep.subr.bf16.mxu1 %v7617_v49 }
 0x5eb   : > { %6079 = vmatpush1.bf16.msra.mxu1 %v6078_v44 }
 0x5ec   : > { %6080 = vmatprep.subr.bf16.mxu1 %v7617_v49 }
 0x5ef   : > { %6082 = vmatpush1.bf16.msra.mxu1 %v6081_v33 }
 0x5f0   : > { %6083 = vmatprep.subr.bf16.mxu1 %v7617_v49 }
 0x5f3   : > { %6085 = vmatpush1.bf16.msra.mxu1 %v6084_v19  ;;  %v2300_v39 = vpop.permute.xlu1 %2299  ;;  %v2305_v27 = vpop.permute.xlu0 %2304 }
 0x5f4   : > { %6086 = vmatprep.subr.bf16.mxu1 %v7617_v49 }
 0x5f7   : > { %6088 = vmatpush1.bf16.msra.mxu1 %v6087_v21 }
 0x5f8   : > { %6117 = vmatprep.subr.bf16.mxu1 %v7617_v49 }
 0x5fa   : > { %2379 = vmatmul.mubr.f32.vlgmr.msra.gmra.mrb[8].mxu1 %v2291_v40 }
 0x5fb   : > { %5154 = vmatprep.mubr.msk.f32.mxu1 %vm2307_vm7, %v2294_v12 }
 0x5fe   : > { %2384 = vmatmul.mubr.f32.gmra.mrb[10].mxu1 %v2293_v23  ;;  %v2462_v23 = vld [vmem:[%s9554_s2] sm:$0xff] }
 0x6cd   : > { %v2380_v50 = vpop.f32.mrb[8].mxu1 }
 0x6ce   : > { %v2381_v24 = vadd.f32 %v2380_v50, %v2300_v39  ;;  %v2382_v26 = vpop.f32.mrb[9].mxu1  ;;  %v2465_v39 = vld [vmem:[%s9554_s2 + $0x18] sm:$0xff]  ;;  %v2464_v50 = vld [vmem:[%s9554_s2 + $0x10] sm:$0xff]  ;;  %s9506_s2 = smov 121  }
 0x6d0   : > { %v2389_v54 = vmax.f32 %v2381_v24, 0.0 }
 0x6d1   : > { %v2385_v38 = vpop.f32.mrb[10].mxu1 }
 0x6d2   : > { %v2386_v25 = vadd.f32 %v2385_v38, %v2305_v27  ;;  %v2387_v28 = vpop.f32.mrb[11].mxu1  ;;  %v2398_v35 = vmul.f32 %v8516_v32, %v2389_v54 }
 0x6d4   : > { %v2390_v34 = vmax.f32 %v2386_v25, 0.0 }
 0x6d6   : > { %v2399_v37 = vmul.f32 %v8516_v32, %v2390_v34 }
 0x6d8   : > { %v7139_v42 = vpack.i.bf16 %v2399_v37, %v2398_v35 }
 0x6da   : > { %7140 = vrot.lane.b32.xlu1 %v7139_v42, %s9495_s9  ;;  %s9555_s9 = smov 11  }
 0x74c   : > { %v7141_v18 = vpop.permute.xlu1 %7140 }
 0x74d   : > { %v7143_v45 = vunpack.i.h.bf16 %v7141_v18  ;;  %v7142_v43 = vunpack.i.l.bf16 %v7141_v18 }
 0x74f   : > { %v2409_v14 = vsel %vm2235_vm3, 0.0, %v7143_v45  ;;  %v2408_v47 = vsel %vm2235_vm3, 0.0, %v7142_v43 }
 0x750   : > { %v2411_v48 = vsel %vm2238_vm5, %v2409_v14, 0.0  ;;  %v2410_v56 = vsel %vm2238_vm5, %v2408_v47, 0.0  ;;  %v6090_v57 = vpack.c.bf16 %v2409_v14, %v2408_v47 }
 0x751   : > { %v7149_v55 = vpack.i.bf16 %v2411_v48, %v2410_v56 }
 0x752   : > { %6092 = vmatpush1.bf16.msk.msra.mxu0 %vm8468_vm6, %v6090_v57 }
 0x753   : > { %7150 = vrot.lane.b32.xlu1 %v7149_v55, %s9538_s29  ;;  %7145 = vrot.lane.b32.xlu0 %v7149_v55, %s9545_s28 }
 0x754   : > { %6093 = vmatprep.subr.bf16.mxu0 %v7617_v49 }
 0x757   : > { %7160 = vrot.lane.b32.xlu1 %v7149_v55, %s9494_s10  ;;  %7155 = vrot.lane.b32.xlu0 %v7149_v55, %s9552_s6  ;;  %s9556_s10 = smov 117  }
 0x75b   : > { %7170 = vrot.lane.b32.xlu1 %v7149_v55, %s9540_s7  ;;  %7165 = vrot.lane.b32.xlu0 %v7149_v55, %s9498_s0 }
 0x75f   : > { %7180 = vrot.lane.b32.xlu1 %v7149_v55, %s9548_s8  ;;  %7175 = vrot.lane.b32.xlu0 %v7149_v55, %s9541_s1 }
 0x763   : > { %2475 = vperm.xlu1 %7007, %v2467_v20   ;;  %2470 = vperm.xlu0 %7008, %v2466_v59  }
 0x7c5   : > { %v7151_v62 = vpop.permute.xlu1 %7150  ;;  %v7146_v63 = vpop.permute.xlu0 %7145 }
 0x7c6   : > { %v7148_v0 = vunpack.i.h.bf16 %v7146_v63  ;;  %v7147_v36 = vunpack.i.l.bf16 %v7146_v63  ;;  %v7153_v51 = vunpack.i.h.bf16 %v7151_v62  ;;  %v7152_v1 = vunpack.i.l.bf16 %v7151_v62  ;;  %v2637_v62 = vld [vmem:[%s9557_s27 + $0x10] sm:$0xff]  ;;  %v2628_v63 = vld [vmem:[%s9558_s3 + $0x8] sm:$0xff] }
 0x7c7   : > { %5162 = vmatprep.mubr.msk.f32.mxu1 %vm2307_vm7, %v2628_v63 }
 0x7c8   : > { %v6094_v3 = vpack.c.bf16 %v7148_v0, %v7147_v36  ;;  %v6097_v4 = vpack.c.bf16 %v7153_v51, %v7152_v1  ;;  %v2760_v0 = vld [vmem:[%s9559_s12] sm:$0xff]  ;;  %v2761_v36 = vld [vmem:[%s9559_s12 + $0x8] sm:$0xff]  ;;  %v2762_v51 = vld [vmem:[%s9559_s12 + $0x10] sm:$0xff] }
 0x7c9   : > { %v7156_v6 = vpop.permute.xlu0 %7155  ;;  %v7161_v41 = vpop.permute.xlu1 %7160  ;;  %v8614_v1 = vpack.c.bf16 %v2761_v36, %v2760_v0 }
 0x7ca   : > { %6095 = vmatpush1.bf16.msra.mxu0 %v6094_v3  ;;  %v7158_v22 = vunpack.i.h.bf16 %v7156_v6  ;;  %v7157_v7 = vunpack.i.l.bf16 %v7156_v6  ;;  %v7163_v5 = vunpack.i.h.bf16 %v7161_v41  ;;  %v7162_v8 = vunpack.i.l.bf16 %v7161_v41  ;;  %v2763_v3 = vld [vmem:[%s9559_s12 + $0x18] sm:$0xff]  ;;  %v2766_v41 = vld [vmem:[%s9559_s12 + $0x30] sm:$0xff] }
 0x7cb   : > { %6096 = vmatprep.subr.bf16.mxu0 %v7617_v49  ;;  %v8619_v6 = vpack.c.bf16 %v2763_v3, %v2762_v51 }
 0x7cc   : > { %v6100_v9 = vpack.c.bf16 %v7158_v22, %v7157_v7  ;;  %v6103_v58 = vpack.c.bf16 %v7163_v5, %v7162_v8  ;;  %v2765_v22 = vld [vmem:[%s9559_s12 + $0x28] sm:$0xff]  ;;  %v2767_v5 = vld [vmem:[%s9559_s12 + $0x38] sm:$0xff] }
 0x7cd   : > { %v7166_v10 = vpop.permute.xlu0 %7165  ;;  %v7171_v29 = vpop.permute.xlu1 %7170  ;;  %v8640_v8 = vpack.c.bf16 %v2767_v5, %v2766_v41 }
 0x7ce   : > { %6098 = vmatpush1.bf16.msra.mxu0 %v6097_v4  ;;  %v7168_v11 = vunpack.i.h.bf16 %v7166_v10  ;;  %v7167_v30 = vunpack.i.l.bf16 %v7166_v10  ;;  %v7173_v44 = vunpack.i.h.bf16 %v7171_v29  ;;  %v7172_v31 = vunpack.i.l.bf16 %v7171_v29  ;;  %v2764_v4 = vld [vmem:[%s9559_s12 + $0x20] sm:$0xff]  ;;  %v2769_v10 = vld [vmem:[%s9559_s12 + $0x48] sm:$0xff] }
 0x7cf   : > { %6099 = vmatprep.subr.bf16.mxu0 %v7617_v49  ;;  %v8630_v7 = vpack.c.bf16 %v2765_v22, %v2764_v4 }
 0x7d0   : > { %v6106_v33 = vpack.c.bf16 %v7168_v11, %v7167_v30  ;;  %v6109_v15 = vpack.c.bf16 %v7173_v44, %v7172_v31 }
 0x7d1   : > { %v7176_v53 = vpop.permute.xlu0 %7175  ;;  %v7181_v17 = vpop.permute.xlu1 %7180 }
 0x7d2   : > { %6101 = vmatpush1.bf16.msra.mxu0 %v6100_v9  ;;  %v7178_v60 = vunpack.i.h.bf16 %v7176_v53  ;;  %v7177_v16 = vunpack.i.l.bf16 %v7176_v53  ;;  %v7183_v19 = vunpack.i.h.bf16 %v7181_v17  ;;  %v7182_v21 = vunpack.i.l.bf16 %v7181_v17  ;;  %v2768_v9 = vld [vmem:[%s9559_s12 + $0x40] sm:$0xff] }
 0x7d3   : > { %6102 = vmatprep.subr.bf16.mxu0 %v7617_v49 }
 0x7d4   : > { %v6112_v40 = vpack.c.bf16 %v7178_v60, %v7177_v16  ;;  %v6115_v12 = vpack.c.bf16 %v7183_v19, %v7182_v21 }
 0x7d6   : > { %6104 = vmatpush1.bf16.msra.mxu0 %v6103_v58  ;;  %v8650_v58 = vpack.c.bf16 %v2769_v10, %v2768_v9 }
 0x7d7   : > { %6105 = vmatprep.subr.bf16.mxu0 %v7617_v49 }
 0x7da   : > { %6107 = vmatpush1.bf16.msra.mxu0 %v6106_v33 }
 0x7db   : > { %6108 = vmatprep.subr.bf16.mxu0 %v7617_v49 }
 0x7de   : > { %6110 = vmatpush1.bf16.msra.mxu0 %v6109_v15 }
 0x7df   : > { %6111 = vmatprep.subr.bf16.mxu0 %v7617_v49 }
 0x7e2   : > { %6113 = vmatpush1.bf16.msra.mxu0 %v6112_v40  ;;  %v2471_v24 = vpop.permute.xlu0 %2470  ;;  %v2476_v25 = vpop.permute.xlu1 %2475 }
 0x7e3   : > { %6114 = vmatprep.subr.bf16.mxu0 %v7617_v49 }
 0x7e6   : > { %6116 = vmatpush1.bf16.msra.mxu0 %v6115_v12 }
 0x7e7   : > { %6146 = vmatprep.subr.bf16.mxu0 %v8614_v1 }
 0x7e9   : > { %2549 = vmatmul.mubr.f32.vlgmr.msra.gmra.mrb[6].mxu0 %v2462_v23 }
 0x7ea   : > { %5159 = vmatprep.mubr.msk.f32.mxu0 %vm2307_vm7, %v2465_v39  ;;  %6148 = vmatpush3.bf16.msra.mxu0 %v8614_v1 }
 0x7eb   : > { %6150 = vmatprep.subr.bf16.mxu0 %v8619_v6 }
 0x7ed   : > { %2554 = vmatmul.mubr.f32.gmra.mrb[8].mxu0 %v2464_v50 }
 0x7ee   : > { %6152 = vmatpush3.bf16.msra.mxu0 %v8619_v6 }
 0x7ef   : > { %6154 = vmatprep.subr.bf16.mxu0 %v8630_v7 }
 0x7f2   : > { %6156 = vmatpush3.bf16.msra.mxu0 %v8630_v7 }
 0x7f3   : > { %6158 = vmatprep.subr.bf16.mxu0 %v8640_v8 }
 0x7f6   : > { %6160 = vmatpush3.bf16.msra.mxu0 %v8640_v8 }
 0x7f7   : > { %6162 = vmatprep.subr.bf16.mxu0 %v8650_v58 }
 0x7fa   : > { %6164 = vmatpush3.bf16.msra.mxu0 %v8650_v58 }
 0x8bc   : > { %v2550_v26 = vpop.f32.mrb[6].mxu0 }
 0x8bd   : > { %v2551_v27 = vadd.f32 %v2550_v26, %v2471_v24  ;;  %v2552_v38 = vpop.f32.mrb[7].mxu0 }
 0x8bf   : > { %v2559_v54 = vadd.f32 %v2551_v27, %v8459_v2 }
 0x8c0   : > { %v2555_v28 = vpop.f32.mrb[8].mxu0 }
 0x8c1   : > { %v2556_v34 = vadd.f32 %v2555_v28, %v2476_v25  ;;  %v2557_v35 = vpop.f32.mrb[9].mxu0  ;;  %v2561_v37 = vmax.f32 %v2559_v54, 0.0 }
 0x8c3   : > { %v2560_v42 = vadd.f32 %v2556_v34, %v8457_v13  ;;  %v8566_v45 = vmul.f32 %v8516_v32, %v2561_v37 }
 0x8c5   : > { %v2562_v18 = vmax.f32 %v2560_v42, 0.0 }
 0x8c7   : > { %v8569_v43 = vmul.f32 %v8516_v32, %v2562_v18  ;;  %v2635_v32 = vld [vmem:[%s9557_s27] sm:$0xff] }
 0x8c9   : > { %v7184_v14 = vpack.i.bf16 %v8569_v43, %v8566_v45 }
 0x8cb   : > { %7185 = vrot.lane.b32.xlu0 %v7184_v14, %s9555_s9 }
 0x93d   : > { %v7186_v2 = vpop.permute.xlu0 %7185 }
 0x93e   : > { %v7188_v47 = vunpack.i.h.bf16 %v7186_v2  ;;  %v7187_v48 = vunpack.i.l.bf16 %v7186_v2 }
 0x940   : > { %v2574_v56 = vsel %vm2235_vm3, 0.0, %v7188_v47  ;;  %v2573_v57 = vsel %vm2235_vm3, 0.0, %v7187_v48  ;;  %v2627_v47 = vld [vmem:[%s9558_s3] sm:$0xff]  ;;  %v2630_v48 = vld [vmem:[%s9558_s3 + $0x18] sm:$0xff]  ;;  %vm5086_vm3 = vcmask 7168  }
 0x941   : > { %v2576_v13 = vsel %vm2238_vm5, %v2574_v56, 0.0  ;;  %v2575_v55 = vsel %vm2238_vm5, %v2573_v57, 0.0  ;;  %v6118_v20 = vpack.c.bf16 %v2574_v56, %v2573_v57  ;;  %v2629_v56 = vld [vmem:[%s9558_s3 + $0x10] sm:$0xff]  ;;  %v2632_v57 = vld [vmem:[%s9558_s3 + $0x28] sm:$0xff] }
 0x942   : > { %v7194_v59 = vpack.i.bf16 %v2576_v13, %v2575_v55  ;;  %v2631_v13 = vld [vmem:[%s9558_s3 + $0x20] sm:$0xff]  ;;  %v2634_v55 = vld [vmem:[%s9558_s3 + $0x38] sm:$0xff] }
 0x943   : > { %6120 = vmatpush1.bf16.msk.msra.mxu1 %vm8468_vm6, %v6118_v20  ;;  %v2633_v20 = vld [vmem:[%s9558_s3 + $0x30] sm:$0xff]  ;;  %s9563_s3 = smov 7  }
 0x944   : > { %7195 = vrot.lane.b32.xlu0 %v7194_v59, %s9538_s29  ;;  %7190 = vrot.lane.b32.xlu1 %v7194_v59, %s9545_s28 }
 0x945   : > { %6121 = vmatprep.subr.bf16.mxu1 %v7617_v49 }
 0x948   : > { %7205 = vrot.lane.b32.xlu0 %v7194_v59, %s9556_s10  ;;  %7200 = vrot.lane.b32.xlu1 %v7194_v59, %s9552_s6  ;;  %s9504_s10 = smov 120  }
 0x94c   : > { %7215 = vrot.lane.b32.xlu0 %v7194_v59, %s9540_s7  ;;  %7210 = vrot.lane.b32.xlu1 %v7194_v59, %s9498_s0  ;;  %s9560_s0 = smov 116   ;;  %s9508_s7 = smov 115  }
 0x950   : > { %7225 = vrot.lane.b32.xlu0 %v7194_v59, %s9548_s8  ;;  %7220 = vrot.lane.b32.xlu1 %v7194_v59, %s9541_s1  ;;  %v2770_v59 = vld [vmem:[%s9559_s12 + $0x50] sm:$0xff]  ;;  %s9565_s8 = smov 120   ;;  %s9566_s1 = smov 115  }
 0x954   : > { %2646 = vperm.xlu0 %7008, %v2636_v52   ;;  %2641 = vperm.xlu1 %7007, %v2635_v32   ;;  %v2771_v52 = vld [vmem:[%s9559_s12 + $0x58] sm:$0xff] }
 0x955   : > { %v8692_v32 = vpack.c.bf16 %v2771_v52, %v2770_v59  ;;  %v3304_v59 = vld [vmem:[%s9448_s16 + $0x8] sm:$0xff]  ;;  %v3016_v52 = vld [vmem:[%s9446_s14 + $0x18] sm:$0xff] }
 0x957   : > { %6166 = vmatprep.subr.bf16.mxu0 %v8692_v32 }
 0x958   : > { %2656 = vperm.xlu0 %7008, %v2638_v61   ;;  %2651 = vperm.xlu1 %7007, %v2637_v62   ;;  %v8699_v61 = vld [vmem:[%s9559_s12 + $0x60] sm:$0xf] }
 0x959   : > { %6168 = vmatpush3.bf16.msra.mxu0 %v8692_v32 }
 0x95a   : > { %5717 = vmatprep.subr.msk.mxu0 %vm2786_vm9, %v8699_v61 }
 0x95d   : > { %5718 = vmatpush3.msk.msra.mxu0 %vm2786_vm9, %v8699_v61 }
 0x9b6   : > { %v7196_v11 = vpop.permute.xlu0 %7195  ;;  %v7191_v30 = vpop.permute.xlu1 %7190 }
 0x9b7   : > { %v7193_v29 = vunpack.i.h.bf16 %v7191_v30  ;;  %v7192_v44 = vunpack.i.l.bf16 %v7191_v30  ;;  %v7198_v31 = vunpack.i.h.bf16 %v7196_v11  ;;  %v7197_v33 = vunpack.i.l.bf16 %v7196_v11 }
 0x9b9   : > { %v6122_v53 = vpack.c.bf16 %v7193_v29, %v7192_v44  ;;  %v6125_v60 = vpack.c.bf16 %v7198_v31, %v7197_v33 }
 0x9ba   : > { %v7201_v15 = vpop.permute.xlu1 %7200  ;;  %v7206_v19 = vpop.permute.xlu0 %7205 }
 0x9bb   : > { %6123 = vmatpush1.bf16.msra.mxu1 %v6122_v53  ;;  %v7203_v16 = vunpack.i.h.bf16 %v7201_v15  ;;  %v7202_v17 = vunpack.i.l.bf16 %v7201_v15  ;;  %v7208_v21 = vunpack.i.h.bf16 %v7206_v19  ;;  %v7207_v40 = vunpack.i.l.bf16 %v7206_v19 }
 0x9bc   : > { %6124 = vmatprep.subr.bf16.mxu1 %v7617_v49 }
 0x9bd   : > { %v6128_v12 = vpack.c.bf16 %v7203_v16, %v7202_v17  ;;  %v6131_v39 = vpack.c.bf16 %v7208_v21, %v7207_v40 }
 0x9be   : > { %v7211_v23 = vpop.permute.xlu1 %7210  ;;  %v7216_v26 = vpop.permute.xlu0 %7215 }
 0x9bf   : > { %6126 = vmatpush1.bf16.msra.mxu1 %v6125_v60  ;;  %v7213_v50 = vunpack.i.h.bf16 %v7211_v23  ;;  %v7212_v24 = vunpack.i.l.bf16 %v7211_v23  ;;  %v7218_v27 = vunpack.i.h.bf16 %v7216_v26  ;;  %v7217_v38 = vunpack.i.l.bf16 %v7216_v26 }
 0x9c0   : > { %6127 = vmatprep.subr.bf16.mxu1 %v7617_v49 }
 0x9c1   : > { %v6134_v54 = vpack.c.bf16 %v7213_v50, %v7212_v24  ;;  %v6137_v28 = vpack.c.bf16 %v7218_v27, %v7217_v38 }
 0x9c2   : > { %v7221_v25 = vpop.permute.xlu1 %7220  ;;  %v7226_v37 = vpop.permute.xlu0 %7225 }
 0x9c3   : > { %6129 = vmatpush1.bf16.msra.mxu1 %v6128_v12  ;;  %v7223_v34 = vunpack.i.h.bf16 %v7221_v25  ;;  %v7222_v35 = vunpack.i.l.bf16 %v7221_v25  ;;  %v7228_v42 = vunpack.i.h.bf16 %v7226_v37  ;;  %v7227_v18 = vunpack.i.l.bf16 %v7226_v37 }
 0x9c4   : > { %6130 = vmatprep.subr.bf16.mxu1 %v7617_v49 }
 0x9c5   : > { %v6140_v14 = vpack.c.bf16 %v7223_v34, %v7222_v35  ;;  %v6143_v2 = vpack.c.bf16 %v7228_v42, %v7227_v18 }
 0x9c7   : > { %6132 = vmatpush1.bf16.msra.mxu1 %v6131_v39 }
 0x9c8   : > { %6133 = vmatprep.subr.bf16.mxu1 %v7617_v49 }
 0x9cb   : > { %6135 = vmatpush1.bf16.msra.mxu1 %v6134_v54 }
 0x9cc   : > { %6136 = vmatprep.subr.bf16.mxu1 %v7617_v49 }
 0x9cf   : > { %6138 = vmatpush1.bf16.msra.mxu1 %v6137_v28  ;;  %v3003_v28 = vld [vmem:[%s9445_s13 + $0x10] sm:$0xff] }
 0x9d0   : > { %6139 = vmatprep.subr.bf16.mxu1 %v7617_v49 }
 0x9d3   : > { %6141 = vmatpush1.bf16.msra.mxu1 %v6140_v14  ;;  %v2642_v62 = vpop.permute.xlu1 %2641  ;;  %v2647_v3 = vpop.permute.xlu0 %2646 }
 0x9d4   : > { %6142 = vmatprep.subr.bf16.mxu1 %v7617_v49 }
 0x9d7   : > { %6144 = vmatpush1.bf16.msra.mxu1 %v6143_v2  ;;  %v2652_v9 = vpop.permute.xlu1 %2651  ;;  %v2657_v44 = vpop.permute.xlu0 %2656 }
 0x9da   : > { %2736 = vmatmul.mubr.f32.vlgmr.msra.gmra.mrb[12].mxu1 %v2627_v47 }
 0x9db   : > { %5163 = vmatprep.mubr.msk.f32.mxu1 %vm2307_vm7, %v2630_v48  ;;  %v3013_v48 = vld [vmem:[%s9446_s14] sm:$0xff] }
 0x9de   : > { %2741 = vmatmul.mubr.f32.gmra.mrb[14].mxu1 %v2629_v56  ;;  %v3002_v56 = vld [vmem:[%s9445_s13 + $0x8] sm:$0xff] }
 0x9df   : > { %5164 = vmatprep.mubr.msk.f32.mxu1 %vm2307_vm7, %v2632_v57  ;;  %v3303_v57 = vld [vmem:[%s9448_s16] sm:$0xff] }
 0x9e2   : > { %2746 = vmatmul.mubr.f32.gmra.mrb[16].mxu1 %v2631_v13  ;;  %v3015_v13 = vld [vmem:[%s9446_s14 + $0x10] sm:$0xff] }
 0x9e3   : > { %5165 = vmatprep.mubr.msk.f32.mxu1 %vm2307_vm7, %v2634_v55  ;;  %v3014_v55 = vld [vmem:[%s9446_s14 + $0x8] sm:$0xff] }
 0x9e6   : > { %2751 = vmatmul.mubr.f32.gmra.mrb[18].mxu1 %v2633_v20  ;;  %v3305_v20 = vld [vmem:[%s9448_s16 + $0x10] sm:$0xff] }
 0x9e7   : > { %3114 = vmatprep.mubr.f32.mxu1 %v3002_v56 }
 0xaad   : > { %v2737_v63 = vpop.f32.mrb[12].mxu1 }
 0xaae   : > { %v2738_v0 = vadd.f32 %v2737_v63, %v2642_v62  ;;  %v2739_v36 = vpop.f32.mrb[13].mxu1  ;;  %v3306_v62 = vld [vmem:[%s9448_s16 + $0x18] sm:$0xff] }
 0xab0   : > { %v2756_v51 = vmax.f32 %v2738_v0, 0.0 }
 0xab1   : > { %v2742_v4 = vpop.f32.mrb[14].mxu1 }
 0xab2   : > { %v2743_v22 = vadd.f32 %v2742_v4, %v2647_v3  ;;  %v2744_v41 = vpop.f32.mrb[15].mxu1  ;;  %5719 = vmatprep.mubr.msk.f32.mxu0 %vm2773_vm10, %v2756_v51 }
 0xab4   : > { %v2757_v5 = vmax.f32 %v2743_v22, 0.0 }
 0xab5   : > { %v2747_v10 = vpop.f32.mrb[16].mxu1 }
 0xab6   : > { %v2748_v11 = vadd.f32 %v2747_v10, %v2652_v9  ;;  %v2749_v30 = vpop.f32.mrb[17].mxu1  ;;  %5720 = vmatmul.mubr.msk.f32.vlgmr.msra.gmra.mrb[10].mxu0 %vm2773_vm10, %v2757_v5 }
 0xab8   : > { %v2758_v29 = vmax.f32 %v2748_v11, 0.0 }
 0xab9   : > { %v2752_v31 = vpop.f32.mrb[18].mxu1 }
 0xaba   : > { %v2753_v33 = vadd.f32 %v2752_v31, %v2657_v44  ;;  %v2754_v53 = vpop.f32.mrb[19].mxu1  ;;  %5722 = vmatprep.mubr.msk.f32.mxu0 %vm2773_vm10, %v2758_v29 }
 0xabc   : > { %v2759_v15 = vmax.f32 %v2753_v33, 0.0 }
 0xabe   : > { %5723 = vmatmul.mubr.msk.f32.gmra.mrb[12].mxu0 %vm2773_vm10, %v2759_v15 }
 0xabf   : > { %5733 = vmatprep.mubr.msk.f32.mxu0 %vm3037_vm14, %v3003_v28 }
 0xb89   : > { %v5721_v60 = vpop.f32.mrb[10].mxu0 }
 0xb8a   : > { %v2856_v16 = vpop.f32.mrb[11].mxu0 }
 0xb8b   : > { %v7229_v17 = vpack.i.bf16 %v5721_v60, %v2856_v16  ;;  %v3006_v16 = vld [vmem:[%s9445_s13 + $0x28] sm:$0xff] }
 0xb8d   : > { %7230 = vrot.lane.b32.xlu1 %v7229_v17, %s9510_s30 }
 0xb91   : > { %v5724_v19 = vpop.f32.mrb[12].mxu0 }
 0xb92   : > { %v2866_v21 = vpop.f32.mrb[13].mxu0 }
 0xb93   : > { %v7234_v40 = vpack.i.bf16 %v5724_v19, %v2866_v21 }
 0xb95   : > { %7235 = vrot.lane.b32.xlu0 %v7234_v40, %s9510_s30 }
 0xbff   : > { %v7231_v12 = vpop.permute.xlu1 %7230 }
 0xc00   : > { %v7233_v23 = vunpack.i.h.bf16 %v7231_v12  ;;  %v7232_v39 = vunpack.i.l.bf16 %v7231_v12  ;;  %v3009_v12 = vld [vmem:[%s9445_s13 + $0x40] sm:$0xff] }
 0xc02   : > { %v8712_v50 = vsel %vm2891_vm11, 0.0, %v7233_v23  ;;  %v8715_v24 = vsel %vm2891_vm11, 0.0, %v7232_v39 }
 0xc03   : > { %v2898_v26 = vsel %vm2896_vm13, %v8712_v50, 0.0  ;;  %v2897_v27 = vsel %vm2896_vm13, %v8715_v24, 0.0  ;;  %v6171_v38 = vpack.c.bf16 %v8712_v50, %v8715_v24 }
 0xc04   : > { %v7239_v54 = vpack.i.bf16 %v2898_v26, %v2897_v27  ;;  %v3012_v26 = vld [vmem:[%s9445_s13 + $0x58] sm:$0xff] }
 0xc06   : > { %7240 = vrot.lane.b32.xlu1 %v7239_v54, %s9502_s11 }
 0xc07   : > { %v7236_v25 = vpop.permute.xlu0 %7235 }
 0xc08   : > { %v7238_v34 = vunpack.i.h.bf16 %v7236_v25  ;;  %v7237_v35 = vunpack.i.l.bf16 %v7236_v25 }
 0xc0a   : > { %v8729_v37 = vsel %vm2891_vm11, 0.0, %v7238_v34  ;;  %v8732_v42 = vsel %vm2891_vm11, 0.0, %v7237_v35  ;;  %7250 = vrot.lane.b32.xlu1 %v7239_v54, %s9506_s2 }
 0xc0b   : > { %v2900_v18 = vsel %vm2896_vm13, %v8729_v37, 0.0  ;;  %v2899_v14 = vsel %vm2896_vm13, %v8732_v42, 0.0  ;;  %v6176_v2 = vpack.c.bf16 %v8729_v37, %v8732_v42 }
 0xc0c   : > { %v7244_v47 = vpack.i.bf16 %v2900_v18, %v2899_v14 }
 0xc0e   : > { %7260 = vrot.lane.b32.xlu1 %v7239_v54, %s9504_s10  ;;  %7245 = vrot.lane.b32.xlu0 %v7244_v47, %s9502_s11  ;;  %s9513_s11 = smov 122  }
 0xc12   : > { %7270 = vrot.lane.b32.xlu1 %v7244_v47, %s9504_s10  ;;  %7255 = vrot.lane.b32.xlu0 %v7244_v47, %s9506_s2  ;;  %s9567_s2 = smov 122  }
 0xc16   : > { %7275 = vrot.lane.b32.xlu1 %v7239_v54, %s9560_s0  ;;  %7265 = vrot.lane.b32.xlu0 %v7239_v54, %s9545_s28 }
 0xc1a   : > { %7290 = vrot.lane.b32.xlu1 %v7244_v47, %s9560_s0  ;;  %7280 = vrot.lane.b32.xlu0 %v7244_v47, %s9545_s28 }
 0xc1e   : > { %7295 = vrot.lane.b32.xlu1 %v7239_v54, %s9508_s7  ;;  %7285 = vrot.lane.b32.xlu0 %v7239_v54, %s9538_s29 }
 0xc22   : > { %7310 = vrot.lane.b32.xlu1 %v7244_v47, %s9508_s7  ;;  %7300 = vrot.lane.b32.xlu0 %v7244_v47, %s9538_s29 }
 0xc26   : > { %3019 = vperm.xlu1 %7007, %v3013_v48   ;;  %7305 = vrot.lane.b32.xlu0 %v7239_v54, %s9513_s11 }
 0xc2a   : > { %3309 = vperm.xlu1 %7007, %v3303_v57   ;;  %7315 = vrot.lane.b32.xlu0 %v7244_v47, %s9513_s11  ;;  %s9564_s11 = smov 121  }
 0xc2e   : > { %3029 = vperm.xlu1 %7007, %v3015_v13   ;;  %3024 = vperm.xlu0 %7008, %v3014_v55  }
 0xc32   : > { %3319 = vperm.xlu1 %7007, %v3305_v20   ;;  %3314 = vperm.xlu0 %7008, %v3304_v59  }
 0xc36   : > { %3034 = vperm.xlu0 %7008, %v3016_v52  }
 0xc3a   : > { %3324 = vperm.xlu0 %7008, %v3306_v62  }
 0xc78   : > { %v7241_v63 = vpop.permute.xlu1 %7240 }
 0xc79   : > { %v7243_v0 = vunpack.i.h.bf16 %v7241_v63  ;;  %v7242_v36 = vunpack.i.l.bf16 %v7241_v63 }
 0xc7b   : > { %v6203_v51 = vpack.c.bf16 %v7243_v0, %v7242_v36 }
 0xc7c   : > { %v7251_v3 = vpop.permute.xlu1 %7250 }
 0xc7d   : > { %v7253_v4 = vunpack.i.h.bf16 %v7251_v3  ;;  %v7252_v22 = vunpack.i.l.bf16 %v7251_v3  ;;  %6204 = vmatprep.subr.bf16.mxu0 %v6203_v51 }
 0xc7e   : > { %6206 = vmatpush3.bf16.msra.mxu0 %v6203_v51 }
 0xc7f   : > { %v6169_v41 = vpack.c.bf16 %v7253_v4, %v7252_v22 }
 0xc80   : > { %v7261_v9 = vpop.permute.xlu1 %7260  ;;  %v7246_v10 = vpop.permute.xlu0 %7245 }
 0xc81   : > { %v7248_v11 = vunpack.i.h.bf16 %v7246_v10  ;;  %v7247_v30 = vunpack.i.l.bf16 %v7246_v10  ;;  %6170 = vmatprep.subr.bf16.mxu1 %v6169_v41  ;;  %v7263_v44 = vunpack.i.h.bf16 %v7261_v9  ;;  %v7262_v31 = vunpack.i.l.bf16 %v7261_v9 }
 0xc82   : > { %6173 = vmatpush3.bf16.msk.msra.mxu1 %vm8784_vm15, %v6171_v38 }
 0xc83   : > { %v6207_v29 = vpack.c.bf16 %v7248_v11, %v7247_v30  ;;  %v6179_v40 = vpack.c.bf16 %v7263_v44, %v7262_v31  ;;  %v3004_v11 = vld [vmem:[%s9445_s13 + $0x18] sm:$0xff]  ;;  %v3011_v30 = vld [vmem:[%s9445_s13 + $0x50] sm:$0xff]  ;;  %v3220_v44 = vld [vmem:[%s9447_s15] sm:$0xff] }
 0xc84   : > { %v7271_v33 = vpop.permute.xlu1 %7270  ;;  %v7256_v53 = vpop.permute.xlu0 %7255 }
 0xc85   : > { %v7258_v15 = vunpack.i.h.bf16 %v7256_v53  ;;  %v7257_v60 = vunpack.i.l.bf16 %v7256_v53  ;;  %6208 = vmatprep.subr.bf16.mxu0 %v6207_v29  ;;  %v7273_v23 = vunpack.i.h.bf16 %v7271_v33  ;;  %v7272_v39 = vunpack.i.l.bf16 %v7271_v33 }
 0xc86   : > { %6210 = vmatpush3.bf16.msra.mxu0 %v6207_v29  ;;  %v3010_v29 = vld [vmem:[%s9445_s13 + $0x48] sm:$0xff] }
 0xc87   : > { %v6174_v17 = vpack.c.bf16 %v7258_v15, %v7257_v60  ;;  %6212 = vmatprep.subr.bf16.mxu0 %v8614_v1  ;;  %v6183_v34 = vpack.c.bf16 %v7273_v23, %v7272_v39  ;;  %v3223_v23 = vld [vmem:[%s9447_s15 + $0x18] sm:$0xff] }
 0xc88   : > { %v7276_v19 = vpop.permute.xlu1 %7275  ;;  %v7266_v21 = vpop.permute.xlu0 %7265 }
 0xc89   : > { %v7268_v50 = vunpack.i.h.bf16 %v7266_v21  ;;  %v7267_v24 = vunpack.i.l.bf16 %v7266_v21  ;;  %6175 = vmatprep.subr.bf16.mxu1 %v6174_v17  ;;  %5734 = vmatmul.mubr.msk.f32.vlgmr.msra.gmra.mrb[14].mxu0 %vm3037_vm14, %v3006_v16  ;;  %v7278_v38 = vunpack.i.h.bf16 %v7276_v19  ;;  %v7277_v54 = vunpack.i.l.bf16 %v7276_v19  ;;  %v3221_v17 = vld [vmem:[%s9447_s15 + $0x8] sm:$0xff]  ;;  %v3222_v21 = vld [vmem:[%s9447_s15 + $0x10] sm:$0xff] }
 0xc8a   : > { %6178 = vmatpush3.bf16.msk.msra.mxu1 %vm8784_vm15, %v6176_v2  ;;  %6214 = vmatpush3.bf16.msra.mxu0 %v8614_v1 }
 0xc8b   : > { %v6181_v27 = vpack.c.bf16 %v7268_v50, %v7267_v24  ;;  %6180 = vmatprep.subr.bf16.mxu1 %v6179_v40  ;;  %5736 = vmatprep.mubr.msk.f32.mxu0 %vm3037_vm14, %v3009_v12  ;;  %v6187_v42 = vpack.c.bf16 %v7278_v38, %v7277_v54 }
 0xc8c   : > { %v7291_v25 = vpop.permute.xlu1 %7290  ;;  %v7281_v28 = vpop.permute.xlu0 %7280  ;;  %6216 = vmatprep.subr.bf16.mxu0 %v8619_v6 }
 0xc8d   : > { %v7283_v35 = vunpack.i.h.bf16 %v7281_v28  ;;  %v7282_v37 = vunpack.i.l.bf16 %v7281_v28  ;;  %5737 = vmatmul.mubr.msk.f32.gmra.mrb[16].mxu0 %vm3037_vm14, %v3012_v26  ;;  %v7293_v2 = vunpack.i.h.bf16 %v7291_v25  ;;  %v7292_v47 = vunpack.i.l.bf16 %v7291_v25 }
 0xc8e   : > { %6182 = vmatpush3.bf16.msra.mxu1 %v6181_v27  ;;  %6218 = vmatpush3.bf16.msra.mxu0 %v8619_v6 }
 0xc8f   : > { %v6185_v1 = vpack.c.bf16 %v7283_v35, %v7282_v37  ;;  %5765 = vmatprep.mubr.msk.f32.mxu0 %vm2773_vm10, %v8566_v45  ;;  %6184 = vmatprep.subr.bf16.mxu1 %v6183_v34  ;;  %v6191_v55 = vpack.c.bf16 %v7293_v2, %v7292_v47 }
 0xc90   : > { %v7296_v18 = vpop.permute.xlu1 %7295  ;;  %v7286_v14 = vpop.permute.xlu0 %7285  ;;  %6220 = vmatprep.subr.bf16.mxu0 %v8630_v7 }
 0xc91   : > { %v7288_v48 = vunpack.i.h.bf16 %v7286_v14  ;;  %v7287_v56 = vunpack.i.l.bf16 %v7286_v14  ;;  %v7298_v6 = vunpack.i.h.bf16 %v7296_v18  ;;  %v7297_v13 = vunpack.i.l.bf16 %v7296_v18 }
 0xc92   : > { %6186 = vmatpush3.bf16.msra.mxu1 %v6185_v1  ;;  %6222 = vmatpush3.bf16.msra.mxu0 %v8630_v7 }
 0xc93   : > { %v6189_v57 = vpack.c.bf16 %v7288_v48, %v7287_v56  ;;  %6188 = vmatprep.subr.bf16.mxu1 %v6187_v42  ;;  %6224 = vmatprep.subr.bf16.mxu0 %v8640_v8  ;;  %v6195_v63 = vpack.c.bf16 %v7298_v6, %v7297_v13  ;;  %v5186_v13 = vld [vmem:[%s9449_s17] ss:$0 sm:$0xff] }
 0xc94   : > { %v7301_v45 = vpop.permute.xlu0 %7300  ;;  %v7311_v52 = vpop.permute.xlu1 %7310 }
 0xc95   : > { %v7303_v20 = vunpack.i.h.bf16 %v7301_v45  ;;  %v7302_v59 = vunpack.i.l.bf16 %v7301_v45  ;;  %v7313_v0 = vunpack.i.h.bf16 %v7311_v52  ;;  %v7312_v36 = vunpack.i.l.bf16 %v7311_v52 }
 0xc96   : > { %6190 = vmatpush3.bf16.msra.mxu1 %v6189_v57  ;;  %6226 = vmatpush3.bf16.msra.mxu0 %v8640_v8 }
 0xc97   : > { %v6193_v62 = vpack.c.bf16 %v7303_v20, %v7302_v59  ;;  %6192 = vmatprep.subr.bf16.mxu1 %v6191_v55  ;;  %6228 = vmatprep.subr.bf16.mxu0 %v8650_v58  ;;  %v6199_v41 = vpack.c.bf16 %v7313_v0, %v7312_v36 }
 0xc98   : > { %v7306_v7 = vpop.permute.xlu0 %7305 }
 0xc99   : > { %v7308_v51 = vunpack.i.h.bf16 %v7306_v7  ;;  %v7307_v3 = vunpack.i.l.bf16 %v7306_v7 }
 0xc9a   : > { %6194 = vmatpush3.bf16.msra.mxu1 %v6193_v62  ;;  %6230 = vmatpush3.bf16.msra.mxu0 %v8650_v58  ;;  %v3001_v58 = vld [vmem:[%s9445_s13] sm:$0xff] }
 0xc9b   : > { %v6197_v4 = vpack.c.bf16 %v7308_v51, %v7307_v3  ;;  %6196 = vmatprep.subr.bf16.mxu1 %v6195_v63  ;;  %6232 = vmatprep.subr.bf16.mxu0 %v8692_v32 }
 0xc9c   : > { %v7316_v22 = vpop.permute.xlu0 %7315 }
 0xc9d   : > { %v7318_v8 = vunpack.i.h.bf16 %v7316_v22  ;;  %v7317_v9 = vunpack.i.l.bf16 %v7316_v22 }
 0xc9e   : > { %6198 = vmatpush3.bf16.msra.mxu1 %v6197_v4  ;;  %6234 = vmatpush3.bf16.msra.mxu0 %v8692_v32  ;;  %v3005_v32 = vld [vmem:[%s9445_s13 + $0x20] sm:$0xff] }
 0xc9f   : > { %v6201_v10 = vpack.c.bf16 %v7318_v8, %v7317_v9  ;;  %6200 = vmatprep.subr.bf16.mxu1 %v6199_v41  ;;  %5763 = vmatprep.subr.msk.mxu0 %vm2786_vm9, %v8699_v61 }
 0xca2   : > { %6202 = vmatpush3.bf16.msra.mxu1 %v6201_v10  ;;  %5764 = vmatpush3.msk.msra.mxu0 %vm2786_vm9, %v8699_v61  ;;  %v3008_v61 = vld [vmem:[%s9445_s13 + $0x38] sm:$0xff] }
 0xca3   : > { %5766 = vmatmul.mubr.msk.f32.vlgmr.msra.gmra.mrb[18].mxu0 %vm2773_vm10, %v8569_v43  ;;  %v3007_v43 = vld [vmem:[%s9445_s13 + $0x30] sm:$0xff] }
 0xca4   : > { %5772 = vmatprep.mubr.msk.f32.mxu0 %vm2307_vm7, %v3220_v44 }
 0xca5   : > { %3115 = vmatmul.mubr.f32.vlgmr.msra.gmra.mrb[20].mxu1 %v3001_v58  ;;  %v3020_v25 = vpop.permute.xlu1 %3019 }
 0xca6   : > { %3119 = vmatprep.mubr.f32.mxu1 %v3005_v32 }
 0xca9   : > { %3120 = vmatmul.mubr.f32.gmra.mrb[22].mxu1 %v3004_v11  ;;  %v3310_v34 = vpop.permute.xlu1 %3309 }
 0xcaa   : > { %3124 = vmatprep.mubr.f32.mxu1 %v3008_v61 }
 0xcad   : > { %3125 = vmatmul.mubr.f32.gmra.mrb[24].mxu1 %v3007_v43  ;;  %v3025_v54 = vpop.permute.xlu0 %3024  ;;  %v3030_v42 = vpop.permute.xlu1 %3029 }
 0xcae   : > { %3129 = vmatprep.mubr.f32.mxu1 %v3011_v30 }
 0xcb1   : > { %3130 = vmatmul.mubr.f32.gmra.mrb[26].mxu1 %v3010_v29  ;;  %v3315_v28 = vpop.permute.xlu0 %3314  ;;  %v3320_v55 = vpop.permute.xlu1 %3319 }
 0xcb5   : > { %v3035_v37 = vpop.permute.xlu0 %3034 }
 0xcb9   : > { %v3325_v6 = vpop.permute.xlu0 %3324 }
 0xd76   : > { %v5767_v31 = vpop.f32.mrb[18].mxu0 }
 0xd77   : > { %v3294_v33 = vpop.f32.mrb[19].mxu0 }
 0xd78   : > { %v6235_v53 = vpack.c.bf16 %v5767_v31, %v3294_v33  ;;  %v5382_v15 = vpop.f32.mrb[20].mxu1 }
 0xd79   : > { %v5383_v60 = vpop.f32.mrb[21].mxu1 }
 0xd7a   : > { %v5384_v16 = vadd.f32 %v5383_v60, %v5382_v15  ;;  %6236 = vmatprep.subr.bf16.mxu0 %v6235_v53 }
 0xd7b   : > { %6238 = vmatpush3.bf16.msra.mxu0 %v6235_v53 }
 0xd7c   : > { %v5385_v19 = vpop.f32.mrb[22].mxu1  ;;  %v3117_v1 = vadd.f32 %v5384_v16, %v3020_v25  ;;  %v3598_v25 = vld [vmem:[%s9452_s20 + $0x38] sm:$0xff] }
 0xd7d   : > { %v5386_v40 = vpop.f32.mrb[23].mxu1 }
 0xd7e   : > { %v5387_v12 = vadd.f32 %v5386_v40, %v5385_v19  ;;  %5773 = vmatmul.mubr.msk.f32.vlgmr.msra.gmra.mrb[14].mxu0 %vm2307_vm7, %v3221_v17  ;;  %v6403_v48 = vadd.f32 %v3310_v34, %v3117_v1 }
 0xd7f   : > { %5775 = vmatprep.mubr.msk.f32.mxu0 %vm2307_vm7, %v3222_v21 }
 0xd80   : > { %v5388_v39 = vpop.f32.mrb[24].mxu1  ;;  %v3122_v35 = vadd.f32 %v5387_v12, %v3025_v54  ;;  %v3568_v12 = vld [vmem:[%s9451_s19 + $0x8] sm:$0xff] }
 0xd81   : > { %v5389_v50 = vpop.f32.mrb[25].mxu1  ;;  %3727 = vmatprep.mubr.f32.mxu1 %v3568_v12  ;;  %v3596_v54 = vld [vmem:[%s9452_s20 + $0x28] sm:$0xff] }
 0xd82   : > { %v5390_v24 = vadd.f32 %v5389_v50, %v5388_v39  ;;  %5776 = vmatmul.mubr.msk.f32.gmra.mrb[16].mxu0 %vm2307_vm7, %v3223_v23  ;;  %v6401_v14 = vadd.f32 %v3315_v28, %v3122_v35  ;;  %v3569_v23 = vld [vmem:[%s9451_s19 + $0x10] sm:$0xff]  ;;  %v3591_v39 = vld [vmem:[%s9452_s20] sm:$0xff] }
 0xd83   : > { %5786 = vmatprep.mubr.msk.f32.mxu0 %vm3037_vm14, %v3569_v23  ;;  %v3593_v50 = vld [vmem:[%s9452_s20 + $0x10] sm:$0xff] }
 0xd84   : > { %v5391_v26 = vpop.f32.mrb[26].mxu1  ;;  %v3127_v2 = vadd.f32 %v5390_v24, %v3030_v42  ;;  %v3592_v24 = vld [vmem:[%s9452_s20 + $0x8] sm:$0xff] }
 0xd85   : > { %v5392_v27 = vpop.f32.mrb[27].mxu1 }
 0xd86   : > { %v5393_v38 = vadd.f32 %v5392_v27, %v5391_v26  ;;  %v6407_v63 = vadd.f32 %v3320_v55, %v3127_v2  ;;  %v3595_v26 = vld [vmem:[%s9452_s20 + $0x20] sm:$0xff]  ;;  %v3594_v27 = vld [vmem:[%s9452_s20 + $0x18] sm:$0xff] }
 0xd88   : > { %v3132_v18 = vadd.f32 %v5393_v38, %v3035_v37  ;;  %v3597_v38 = vld [vmem:[%s9452_s20 + $0x30] sm:$0xff] }
 0xd8a   : > { %v6405_v59 = vadd.f32 %v3325_v6, %v3132_v18 }
 0xe51   : > { %v5774_v47 = vpop.f32.mrb[14].mxu0 }
 0xe52   : > { %v6402_v56 = vadd.f32 %v6401_v14, %v5774_v47  ;;  %v3405_v57 = vpop.f32.mrb[15].mxu0 }
 0xe53   : > { %v6404_v45 = vadd.f32 %v6403_v48, %v3405_v57 }
 0xe54   : > { %v3429_v20 = vmax.f32 %v6402_v56, 0.0 }
 0xe55   : > { %v3428_v52 = vmax.f32 %v6404_v45, 0.0  ;;  %v5777_v62 = vpop.f32.mrb[16].mxu0 }
 0xe56   : > { %v8870_v7 = vmul.f32 %v5186_v13, %v3429_v20  ;;  %v6406_v0 = vadd.f32 %v6405_v59, %v5777_v62  ;;  %v3415_v36 = vpop.f32.mrb[17].mxu0 }
 0xe57   : > { %v8872_v51 = vmul.f32 %v5186_v13, %v3428_v52  ;;  %v6408_v3 = vadd.f32 %v6407_v63, %v3415_v36 }
 0xe58   : > { %v3431_v4 = vmax.f32 %v6406_v0, 0.0 }
 0xe59   : > { %v7319_v22 = vpack.i.bf16 %v8870_v7, %v8872_v51  ;;  %v3430_v41 = vmax.f32 %v6408_v3, 0.0 }
 0xe5a   : > { %v8876_v8 = vmul.f32 %v5186_v13, %v3431_v4 }
 0xe5b   : > { %v8878_v9 = vmul.f32 %v5186_v13, %v3430_v41  ;;  %7320 = vrot.lane.b32.xlu1 %v7319_v22, %s9563_s3 }
 0xe5d   : > { %v7324_v10 = vpack.i.bf16 %v8876_v8, %v8878_v9 }
 0xe5f   : > { %7325 = vrot.lane.b32.xlu0 %v7324_v10, %s9563_s3  ;;  %s7629_s3 = smov 123  }
 0xecd   : > { %v7321_v58 = vpop.permute.xlu1 %7320 }
 0xece   : > { %v7323_v32 = vunpack.i.h.bf16 %v7321_v58  ;;  %v7322_v11 = vunpack.i.l.bf16 %v7321_v58 }
 0xed0   : > { %v8885_v61 = vsel %vm2891_vm11, 0.0, %v7323_v32  ;;  %v3459_v43 = vsel %vm2891_vm11, 0.0, %v7322_v11 }
 0xed1   : > { %v3464_v30 = vsel %vm2896_vm13, %v8885_v61, 0.0  ;;  %v3463_v29 = vsel %vm2896_vm13, %v3459_v43, 0.0  ;;  %v6241_v44 = vpack.c.bf16 %v8885_v61, %v3459_v43  ;;  %v7326_v31 = vpop.permute.xlu0 %7325 }
 0xed2   : > { %v7328_v33 = vunpack.i.h.bf16 %v7326_v31  ;;  %v7327_v53 = vunpack.i.l.bf16 %v7326_v31  ;;  %v7329_v15 = vpack.i.bf16 %v3464_v30, %v3463_v29 }
 0xed4   : > { %v8893_v60 = vsel %vm2891_vm11, 0.0, %v7328_v33  ;;  %v8896_v16 = vsel %vm2891_vm11, 0.0, %v7327_v53  ;;  %7330 = vrot.lane.b32.xlu1 %v7329_v15, %s9564_s11 }
 0xed5   : > { %v3466_v17 = vsel %vm2896_vm13, %v8893_v60, 0.0  ;;  %v3465_v19 = vsel %vm2896_vm13, %v8896_v16, 0.0  ;;  %v6246_v21 = vpack.c.bf16 %v8893_v60, %v8896_v16 }
 0xed6   : > { %v7334_v40 = vpack.i.bf16 %v3466_v17, %v3465_v19 }
 0xed8   : > { %7340 = vrot.lane.b32.xlu1 %v7329_v15, %s9565_s8  ;;  %7335 = vrot.lane.b32.xlu0 %v7334_v40, %s9564_s11  ;;  %s7630_s11 = smov 119  }
 0xedc   : > { %7350 = vrot.lane.b32.xlu1 %v7334_v40, %s9565_s8  ;;  %7345 = vrot.lane.b32.xlu0 %v7329_v15, %s9545_s28 }
 0xee0   : > { %7355 = vrot.lane.b32.xlu1 %v7329_v15, %s9560_s0  ;;  %7360 = vrot.lane.b32.xlu0 %v7334_v40, %s9545_s28 }
 0xee4   : > { %7370 = vrot.lane.b32.xlu1 %v7334_v40, %s9560_s0  ;;  %7365 = vrot.lane.b32.xlu0 %v7329_v15, %s9538_s29  ;;  %s9568_s0 = smov 114  }
 0xee8   : > { %7375 = vrot.lane.b32.xlu1 %v7329_v15, %s9566_s1  ;;  %7380 = vrot.lane.b32.xlu0 %v7334_v40, %s9538_s29 }
 0xeec   : > { %7390 = vrot.lane.b32.xlu1 %v7334_v40, %s9566_s1  ;;  %7385 = vrot.lane.b32.xlu0 %v7329_v15, %s9567_s2 }
 0xef0   : > { %7400 = vrot.lane.b32.xlu1 %v7329_v15, %s9568_s0  ;;  %7395 = vrot.lane.b32.xlu0 %v7334_v40, %s9567_s2 }
 0xef4   : > { %3601 = vperm.xlu1 %7007, %v3591_v39   ;;  %7405 = vrot.lane.b32.xlu0 %v7334_v40, %s9568_s0  ;;  %s7628_s0 = smov 5  }
 0xef8   : > { %3611 = vperm.xlu1 %7007, %v3593_v50   ;;  %3606 = vperm.xlu0 %7008, %v3592_v24  }
 0xefc   : > { %3621 = vperm.xlu1 %7007, %v3595_v26   ;;  %3616 = vperm.xlu0 %7008, %v3594_v27  }
 0xf00   : > { %3631 = vperm.xlu1 %7007, %v3597_v38   ;;  %3626 = vperm.xlu0 %7008, %v3596_v54  }
 0xf04   : > { %3636 = vperm.xlu0 %7008, %v3598_v25  }
 0xf46   : > { %v7331_v28 = vpop.permute.xlu1 %7330 }
 0xf47   : > { %v7333_v34 = vunpack.i.h.bf16 %v7331_v28  ;;  %v7332_v35 = vunpack.i.l.bf16 %v7331_v28 }
 0xf49   : > { %v6239_v37 = vpack.c.bf16 %v7333_v34, %v7332_v35 }
 0xf4a   : > { %v7341_v1 = vpop.permute.xlu1 %7340  ;;  %v7336_v42 = vpop.permute.xlu0 %7335 }
 0xf4b   : > { %v7343_v18 = vunpack.i.h.bf16 %v7341_v1  ;;  %v7342_v14 = vunpack.i.l.bf16 %v7341_v1  ;;  %v7338_v2 = vunpack.i.h.bf16 %v7336_v42  ;;  %v7337_v47 = vunpack.i.l.bf16 %v7336_v42  ;;  %6240 = vmatprep.subr.bf16.mxu1 %v6239_v37  ;;  %v3567_v42 = vld [vmem:[%s9451_s19] sm:$0xff] }
 0xf4c   : > { %6243 = vmatpush3.bf16.msk.msra.mxu1 %vm8784_vm15, %v6241_v44 }
 0xf4d   : > { %v6244_v48 = vpack.c.bf16 %v7338_v2, %v7337_v47  ;;  %v6249_v56 = vpack.c.bf16 %v7343_v18, %v7342_v14  ;;  %v3571_v14 = vld [vmem:[%s9451_s19 + $0x20] sm:$0xff]  ;;  %v3570_v2 = vld [vmem:[%s9451_s19 + $0x18] sm:$0xff]  ;;  %v3572_v47 = vld [vmem:[%s9451_s19 + $0x28] sm:$0xff] }
 0xf4e   : > { %v7351_v57 = vpop.permute.xlu1 %7350  ;;  %v7346_v6 = vpop.permute.xlu0 %7345 }
 0xf4f   : > { %v7353_v13 = vunpack.i.h.bf16 %v7351_v57  ;;  %v7352_v45 = vunpack.i.l.bf16 %v7351_v57  ;;  %v7348_v55 = vunpack.i.h.bf16 %v7346_v6  ;;  %v7347_v20 = vunpack.i.l.bf16 %v7346_v6  ;;  %6245 = vmatprep.subr.bf16.mxu1 %v6244_v48  ;;  %v3574_v48 = vld [vmem:[%s9451_s19 + $0x38] sm:$0xff]  ;;  %v3573_v57 = vld [vmem:[%s9451_s19 + $0x30] sm:$0xff] }
 0xf50   : > { %6248 = vmatpush3.bf16.msk.msra.mxu1 %vm8784_vm15, %v6246_v21  ;;  %v3578_v6 = vld [vmem:[%s9451_s19 + $0x58] sm:$0xff] }
 0xf51   : > { %v6251_v59 = vpack.c.bf16 %v7348_v55, %v7347_v20  ;;  %6250 = vmatprep.subr.bf16.mxu1 %v6249_v56  ;;  %v6253_v52 = vpack.c.bf16 %v7353_v13, %v7352_v45  ;;  %v3575_v56 = vld [vmem:[%s9451_s19 + $0x40] sm:$0xff]  ;;  %v3577_v13 = vld [vmem:[%s9451_s19 + $0x50] sm:$0xff]  ;;  %v3576_v55 = vld [vmem:[%s9451_s19 + $0x48] sm:$0xff] }
 0xf52   : > { %v7356_v62 = vpop.permute.xlu1 %7355  ;;  %v7361_v63 = vpop.permute.xlu0 %7360  ;;  %v3581_v45 = vld [vmem:[%s9451_s19 + $0x70] sm:$0xff]  ;;  %v3584_v20 = vld [vmem:[%s9451_s19 + $0x88] sm:$0xff] }
 0xf53   : > { %v7358_v0 = vunpack.i.h.bf16 %v7356_v62  ;;  %v7357_v36 = vunpack.i.l.bf16 %v7356_v62  ;;  %v7363_v3 = vunpack.i.h.bf16 %v7361_v63  ;;  %v7362_v4 = vunpack.i.l.bf16 %v7361_v63  ;;  %v3579_v62 = vld [vmem:[%s9451_s19 + $0x60] sm:$0xff]  ;;  %v3590_v63 = vld [vmem:[%s9451_s19 + $0xb8] sm:$0xff] }
 0xf54   : > { %6252 = vmatpush3.bf16.msra.mxu1 %v6251_v59  ;;  %v3580_v59 = vld [vmem:[%s9451_s19 + $0x68] sm:$0xff] }
 0xf55   : > { %v6255_v22 = vpack.c.bf16 %v7363_v3, %v7362_v4  ;;  %6254 = vmatprep.subr.bf16.mxu1 %v6253_v52  ;;  %v6257_v41 = vpack.c.bf16 %v7358_v0, %v7357_v36  ;;  %v3587_v52 = vld [vmem:[%s9451_s19 + $0xa0] sm:$0xff]  ;;  %v3582_v36 = vld [vmem:[%s9451_s19 + $0x78] sm:$0xff]  ;;  %v3585_v4 = vld [vmem:[%s9451_s19 + $0x90] sm:$0xff] }
 0xf56   : > { %v7371_v10 = vpop.permute.xlu1 %7370  ;;  %v7366_v58 = vpop.permute.xlu0 %7365  ;;  %v3583_v0 = vld [vmem:[%s9451_s19 + $0x80] sm:$0xff]  ;;  %v3586_v3 = vld [vmem:[%s9451_s19 + $0x98] sm:$0xff] }
 0xf57   : > { %v7373_v32 = vunpack.i.h.bf16 %v7371_v10  ;;  %v7372_v11 = vunpack.i.l.bf16 %v7371_v10  ;;  %v7368_v61 = vunpack.i.h.bf16 %v7366_v58  ;;  %v7367_v5 = vunpack.i.l.bf16 %v7366_v58  ;;  %v3881_v10 = vld [vmem:[%s9450_s18] sm:$0xff]  ;;  %v3882_v58 = vld [vmem:[%s9450_s18 + $0x8] sm:$0xff] }
 0xf58   : > { %6256 = vmatpush3.bf16.msra.mxu1 %v6255_v22  ;;  %v3589_v22 = vld [vmem:[%s9451_s19 + $0xb0] sm:$0xff] }
 0xf59   : > { %v6259_v43 = vpack.c.bf16 %v7368_v61, %v7367_v5  ;;  %6258 = vmatprep.subr.bf16.mxu1 %v6257_v41  ;;  %v6261_v30 = vpack.c.bf16 %v7373_v32, %v7372_v11  ;;  %v3588_v41 = vld [vmem:[%s9451_s19 + $0xa8] sm:$0xff]  ;;  %v9034_v32 = vpack.c.bf16 %v3882_v58, %v3881_v10  ;;  %v3883_v11 = vld [vmem:[%s9450_s18 + $0x10] sm:$0xff]  ;;  %v3884_v61 = vld [vmem:[%s9450_s18 + $0x18] sm:$0xff] }
 0xf5a   : > { %v7376_v29 = vpop.permute.xlu1 %7375  ;;  %v7381_v44 = vpop.permute.xlu0 %7380  ;;  %v9044_v5 = vpack.c.bf16 %v3884_v61, %v3883_v11 }
 0xf5b   : > { %v7378_v31 = vunpack.i.h.bf16 %v7376_v29  ;;  %v7377_v33 = vunpack.i.l.bf16 %v7376_v29  ;;  %v7383_v53 = vunpack.i.h.bf16 %v7381_v44  ;;  %v7382_v15 = vunpack.i.l.bf16 %v7381_v44 }
 0xf5c   : > { %6260 = vmatpush3.bf16.msra.mxu1 %v6259_v43  ;;  %v9049_v43 = vld [vmem:[%s9450_s18 + $0x20] sm:$0xf] }
 0xf5d   : > { %v6263_v60 = vpack.c.bf16 %v7383_v53, %v7382_v15  ;;  %6262 = vmatprep.subr.bf16.mxu1 %v6261_v30  ;;  %v6265_v16 = vpack.c.bf16 %v7378_v31, %v7377_v33 }
 0xf5e   : > { %v7391_v17 = vpop.permute.xlu1 %7390  ;;  %v7386_v19 = vpop.permute.xlu0 %7385 }
 0xf5f   : > { %v7393_v21 = vunpack.i.h.bf16 %v7391_v17  ;;  %v7392_v40 = vunpack.i.l.bf16 %v7391_v17  ;;  %v7388_v12 = vunpack.i.h.bf16 %v7386_v19  ;;  %v7387_v23 = vunpack.i.l.bf16 %v7386_v19 }
 0xf60   : > { %6264 = vmatpush3.bf16.msra.mxu1 %v6263_v60 }
 0xf61   : > { %v6267_v39 = vpack.c.bf16 %v7388_v12, %v7387_v23  ;;  %6266 = vmatprep.subr.bf16.mxu1 %v6265_v16  ;;  %v6269_v50 = vpack.c.bf16 %v7393_v21, %v7392_v40 }
 0xf62   : > { %v7401_v24 = vpop.permute.xlu1 %7400  ;;  %v7396_v26 = vpop.permute.xlu0 %7395 }
 0xf63   : > { %v7403_v27 = vunpack.i.h.bf16 %v7401_v24  ;;  %v7402_v38 = vunpack.i.l.bf16 %v7401_v24  ;;  %v7398_v54 = vunpack.i.h.bf16 %v7396_v26  ;;  %v7397_v25 = vunpack.i.l.bf16 %v7396_v26 }
 0xf64   : > { %6268 = vmatpush3.bf16.msra.mxu1 %v6267_v39 }
 0xf65   : > { %v6273_v28 = vpack.c.bf16 %v7403_v27, %v7402_v38  ;;  %v6271_v34 = vpack.c.bf16 %v7398_v54, %v7397_v25  ;;  %6270 = vmatprep.subr.bf16.mxu1 %v6269_v50 }
 0xf66   : > { %v7406_v35 = vpop.permute.xlu0 %7405 }
 0xf67   : > { %v7408_v37 = vunpack.i.h.bf16 %v7406_v35  ;;  %v7407_v1 = vunpack.i.l.bf16 %v7406_v35  ;;  %6274 = vmatprep.subr.bf16.mxu0 %v6273_v28 }
 0xf68   : > { %6272 = vmatpush3.bf16.msra.mxu1 %v6271_v34  ;;  %6276 = vmatpush3.bf16.msra.mxu0 %v6273_v28 }
 0xf69   : > { %v6277_v18 = vpack.c.bf16 %v7408_v37, %v7407_v1 }
 0xf6b   : > { %3728 = vmatmul.mubr.f32.vlgmr.msra.gmra.mrb[28].mxu1 %v3567_v42  ;;  %6278 = vmatprep.subr.bf16.mxu0 %v6277_v18 }
 0xf6c   : > { %6280 = vmatpush3.bf16.msra.mxu0 %v6277_v18  ;;  %3732 = vmatprep.mubr.f32.mxu1 %v3571_v14 }
 0xf6d   : > { %6282 = vmatprep.subr.bf16.mxu0 %v9034_v32 }
 0xf6f   : > { %3733 = vmatmul.mubr.f32.gmra.mrb[30].mxu1 %v3570_v2  ;;  %5787 = vmatmul.mubr.msk.f32.vlgmr.msra.gmra.mrb[20].mxu0 %vm3037_vm14, %v3572_v47 }
 0xf70   : > { %3737 = vmatprep.mubr.f32.mxu1 %v3574_v48  ;;  %5789 = vmatprep.mubr.msk.f32.mxu0 %vm3037_vm14, %v3575_v56 }
 0xf71   : > { %6284 = vmatpush3.bf16.msra.mxu0 %v9034_v32 }
 0xf72   : > { %6286 = vmatprep.subr.bf16.mxu0 %v9044_v5 }
 0xf73   : > { %3738 = vmatmul.mubr.f32.gmra.mrb[32].mxu1 %v3573_v57  ;;  %5790 = vmatmul.mubr.msk.f32.gmra.mrb[22].mxu0 %vm3037_vm14, %v3578_v6  ;;  %v3602_v31 = vpop.permute.xlu1 %3601 }
 0xf74   : > { %3742 = vmatprep.mubr.f32.mxu1 %v3577_v13  ;;  %5792 = vmatprep.mubr.msk.f32.mxu0 %vm3037_vm14, %v3581_v45 }
 0xf75   : > { %6288 = vmatpush3.bf16.msra.mxu0 %v9044_v5 }
 0xf76   : > { %5806 = vmatprep.subr.msk.mxu0 %vm2786_vm9, %v9049_v43 }
 0xf77   : > { %3743 = vmatmul.mubr.f32.gmra.mrb[34].mxu1 %v3576_v55  ;;  %5793 = vmatmul.mubr.msk.f32.gmra.mrb[24].mxu0 %vm3037_vm14, %v3584_v20  ;;  %v3607_v21 = vpop.permute.xlu0 %3606  ;;  %v3612_v38 = vpop.permute.xlu1 %3611 }
 0xf78   : > { %3747 = vmatprep.mubr.f32.mxu1 %v3580_v59  ;;  %5795 = vmatprep.mubr.msk.f32.mxu0 %vm3037_vm14, %v3587_v52 }
 0xf79   : > { %5807 = vmatpush3.msk.msra.mxu0 %vm2786_vm9, %v9049_v43 }
 0xf7b   : > { %3748 = vmatmul.mubr.f32.gmra.mrb[36].mxu1 %v3579_v62  ;;  %5796 = vmatmul.mubr.msk.f32.gmra.mrb[26].mxu0 %vm3037_vm14, %v3590_v63  ;;  %v3617_v18 = vpop.permute.xlu0 %3616  ;;  %v3622_v45 = vpop.permute.xlu1 %3621 }
 0xf7c   : > { %3752 = vmatprep.mubr.f32.mxu1 %v3583_v0 }
 0xf7f   : > { %3753 = vmatmul.mubr.f32.gmra.mrb[38].mxu1 %v3582_v36  ;;  %v3627_v0 = vpop.permute.xlu0 %3626  ;;  %v3632_v58 = vpop.permute.xlu1 %3631 }
 0xf80   : > { %3757 = vmatprep.mubr.f32.mxu1 %v3586_v3 }
 0xf83   : > { %3758 = vmatmul.mubr.f32.gmra.mrb[40].mxu1 %v3585_v4 }
 0xf84   : > { %3762 = vmatprep.mubr.f32.mxu1 %v3589_v22 }
 0xf87   : > { %3763 = vmatmul.mubr.f32.gmra.mrb[42].mxu1 %v3588_v41 }
0x103e   : > { %v5455_v30 = vpop.f32.mrb[28].mxu1 }
0x103f   : > { %v5456_v29 = vpop.f32.mrb[29].mxu1 }
0x1040   : > { %v5457_v44 = vadd.f32 %v5456_v29, %v5455_v30 }
0x1042   : > { %v5458_v33 = vpop.f32.mrb[30].mxu1  ;;  %v5788_v53 = vpop.f32.mrb[20].mxu0  ;;  %v3730_v15 = vadd.f32 %v5457_v44, %v3602_v31 }
0x1043   : > { %v5459_v60 = vpop.f32.mrb[31].mxu1  ;;  %v3834_v16 = vpop.f32.mrb[21].mxu0 }
0x1044   : > { %v5460_v17 = vadd.f32 %v5459_v60, %v5458_v33  ;;  %v3835_v19 = vadd.f32 %v3834_v16, %v3730_v15  ;;  %v3637_v33 = vpop.permute.xlu0 %3636 }
0x1046   : > { %v3735_v40 = vadd.f32 %v5460_v17, %v3607_v21  ;;  %v3873_v12 = vmax.f32 %v3835_v19, 0.0  ;;  %v5461_v23 = vpop.f32.mrb[32].mxu1  ;;  %v5791_v39 = vpop.f32.mrb[22].mxu0 }
0x1047   : > { %v5462_v50 = vpop.f32.mrb[33].mxu1  ;;  %v3844_v24 = vpop.f32.mrb[23].mxu0 }
0x1048   : > { %v3840_v26 = vadd.f32 %v5788_v53, %v3735_v40  ;;  %v5463_v27 = vadd.f32 %v5462_v50, %v5461_v23  ;;  %5808 = vmatprep.mubr.msk.f32.mxu0 %vm3886_vm0, %v3873_v12 }
0x104a   : > { %v3874_v54 = vmax.f32 %v3840_v26, 0.0  ;;  %v5464_v25 = vpop.f32.mrb[34].mxu1  ;;  %v3740_v28 = vadd.f32 %v5463_v27, %v3612_v38  ;;  %v5794_v34 = vpop.f32.mrb[24].mxu0 }
0x104b   : > { %v5465_v35 = vpop.f32.mrb[35].mxu1  ;;  %v3854_v37 = vpop.f32.mrb[25].mxu0 }
0x104c   : > { %v5466_v1 = vadd.f32 %v5465_v35, %v5464_v25  ;;  %v3845_v42 = vadd.f32 %v3844_v24, %v3740_v28  ;;  %5809 = vmatmul.mubr.msk.f32.vlgmr.msra.gmra.mrb[28].mxu0 %vm3886_vm0, %v3874_v54 }
0x104e   : > { %v3745_v14 = vadd.f32 %v5466_v1, %v3617_v18  ;;  %v3875_v2 = vmax.f32 %v3845_v42, 0.0  ;;  %v5467_v47 = vpop.f32.mrb[36].mxu1  ;;  %v5797_v48 = vpop.f32.mrb[26].mxu0 }
0x104f   : > { %v5468_v56 = vpop.f32.mrb[37].mxu1  ;;  %v3864_v57 = vpop.f32.mrb[27].mxu0 }
0x1050   : > { %v3850_v6 = vadd.f32 %v5791_v39, %v3745_v14  ;;  %v5469_v13 = vadd.f32 %v5468_v56, %v5467_v47  ;;  %5811 = vmatprep.mubr.msk.f32.mxu0 %vm3886_vm0, %v3875_v2 }
0x1052   : > { %v3876_v55 = vmax.f32 %v3850_v6, 0.0  ;;  %v5470_v20 = vpop.f32.mrb[38].mxu1  ;;  %v3750_v59 = vadd.f32 %v5469_v13, %v3622_v45 }
0x1053   : > { %v5471_v52 = vpop.f32.mrb[39].mxu1 }
0x1054   : > { %v5472_v62 = vadd.f32 %v5471_v52, %v5470_v20  ;;  %v3855_v63 = vadd.f32 %v3854_v37, %v3750_v59  ;;  %5812 = vmatmul.mubr.msk.f32.gmra.mrb[30].mxu0 %vm3886_vm0, %v3876_v55 }
0x1056   : > { %v3755_v36 = vadd.f32 %v5472_v62, %v3627_v0  ;;  %v3877_v3 = vmax.f32 %v3855_v63, 0.0  ;;  %v5473_v4 = vpop.f32.mrb[40].mxu1 }
0x1057   : > { %v5474_v22 = vpop.f32.mrb[41].mxu1 }
0x1058   : > { %v3860_v41 = vadd.f32 %v5794_v34, %v3755_v36  ;;  %v5475_v10 = vadd.f32 %v5474_v22, %v5473_v4  ;;  %5814 = vmatprep.mubr.msk.f32.mxu0 %vm3886_vm0, %v3877_v3 }
0x105a   : > { %v3878_v11 = vmax.f32 %v3860_v41, 0.0  ;;  %v5476_v61 = vpop.f32.mrb[42].mxu1  ;;  %v3760_v30 = vadd.f32 %v5475_v10, %v3632_v58 }
0x105b   : > { %v5477_v29 = vpop.f32.mrb[43].mxu1 }
0x105c   : > { %v5478_v44 = vadd.f32 %v5477_v29, %v5476_v61  ;;  %v3865_v31 = vadd.f32 %v3864_v57, %v3760_v30  ;;  %5815 = vmatmul.mubr.msk.f32.gmra.mrb[32].mxu0 %vm3886_vm0, %v3878_v11 }
0x105e   : > { %v3765_v53 = vadd.f32 %v5478_v44, %v3637_v33  ;;  %v3879_v15 = vmax.f32 %v3865_v31, 0.0  ;;  %v4272_v44 = vld [vmem:[%s9453_s21 + $0x18] sm:$0xff]  ;;  %v4270_v31 = vld [vmem:[%s9453_s21 + $0x8] sm:$0xff] }
0x105f   : > { %4446 = vmatprep.mubr.f32.mxu1 %v4270_v31  ;;  %v4310_v33 = vld [vmem:[%s9454_s22 + $0x8] sm:$0xff] }
0x1060   : > { %v3870_v60 = vadd.f32 %v5797_v48, %v3765_v53  ;;  %5817 = vmatprep.mubr.msk.f32.mxu0 %vm3886_vm0, %v3879_v15  ;;  %v4309_v53 = vld [vmem:[%s9454_s22] sm:$0xff]  ;;  %v4312_v15 = vld [vmem:[%s9454_s22 + $0x18] sm:$0xff] }
0x1062   : > { %v3880_v16 = vmax.f32 %v3870_v60, 0.0  ;;  %v4311_v60 = vld [vmem:[%s9454_s22 + $0x10] sm:$0xff] }
0x1064   : > { %5818 = vmatmul.mubr.msk.f32.gmra.mrb[34].mxu0 %vm3886_vm0, %v3880_v16  ;;  %v4799_v16 = vld [vmem:[%s9456_s24 + $0x8] sm:$0xff] }
0x1065   : > { %4551 = vmatprep.mubr.f32.mxu0 %v4272_v44 }
0x111f   : > { %v5810_v17 = vpop.f32.mrb[28].mxu0 }
0x1120   : > { %v3980_v19 = vpop.f32.mrb[29].mxu0 }
0x1121   : > { %v7409_v21 = vpack.i.bf16 %v5810_v17, %v3980_v19  ;;  %v4798_v17 = vld [vmem:[%s9456_s24] sm:$0xff]  ;;  %v4314_v19 = vld [vmem:[%s9454_s22 + $0x28] sm:$0xff] }
0x1123   : > { %7410 = vrot.lane.b32.xlu1 %v7409_v21, %s7628_s0  ;;  %v4313_v21 = vld [vmem:[%s9454_s22 + $0x20] sm:$0xff] }
0x1127   : > { %v5813_v40 = vpop.f32.mrb[30].mxu0 }
0x1128   : > { %v3990_v12 = vpop.f32.mrb[31].mxu0 }
0x1129   : > { %v7414_v23 = vpack.i.bf16 %v5813_v40, %v3990_v12  ;;  %v4801_v40 = vld [vmem:[%s9456_s24 + $0x18] sm:$0xff]  ;;  %v4800_v12 = vld [vmem:[%s9456_s24 + $0x10] sm:$0xff] }
0x112b   : > { %7415 = vrot.lane.b32.xlu0 %v7414_v23, %s7628_s0  ;;  %v4316_v23 = vld [vmem:[%s9454_s22 + $0x38] sm:$0xff] }
0x112f   : > { %v5816_v39 = vpop.f32.mrb[32].mxu0 }
0x1130   : > { %v4000_v50 = vpop.f32.mrb[33].mxu0 }
0x1131   : > { %v7419_v24 = vpack.i.bf16 %v5816_v39, %v4000_v50  ;;  %v4315_v39 = vld [vmem:[%s9454_s22 + $0x30] sm:$0xff]  ;;  %v4803_v50 = vld [vmem:[%s9456_s24 + $0x28] sm:$0xff] }
0x1133   : > { %7420 = vrot.lane.b32.xlu1 %v7419_v24, %s7628_s0  ;;  %v4802_v24 = vld [vmem:[%s9456_s24 + $0x20] sm:$0xff] }
0x1137   : > { %v5819_v26 = vpop.f32.mrb[34].mxu0 }
0x1138   : > { %v4010_v27 = vpop.f32.mrb[35].mxu0 }
0x1139   : > { %v7424_v38 = vpack.i.bf16 %v5819_v26, %v4010_v27  ;;  %v4805_v26 = vld [vmem:[%s9456_s24 + $0x38] sm:$0xff]  ;;  %v4804_v27 = vld [vmem:[%s9456_s24 + $0x30] sm:$0xff] }
0x113b   : > { %7425 = vrot.lane.b32.xlu0 %v7424_v38, %s7628_s0 }
0x1195   : > { %v7411_v54 = vpop.permute.xlu1 %7410 }
0x1196   : > { %v7413_v25 = vunpack.i.h.bf16 %v7411_v54  ;;  %v7412_v28 = vunpack.i.l.bf16 %v7411_v54 }
0x1198   : > { %v9066_v34 = vsel %vm4051_vm1, 0.0, %v7413_v25  ;;  %v9069_v35 = vsel %vm4051_vm1, 0.0, %v7412_v28 }
0x1199   : > { %v4062_v37 = vsel %vm4060_vm4, %v9066_v34, 0.0  ;;  %v4061_v1 = vsel %vm4060_vm4, %v9069_v35, 0.0  ;;  %v6291_v42 = vpack.c.bf16 %v9066_v34, %v9069_v35 }
0x119a   : > { %v9077_v18 = vpack.i.bf16 %v4062_v37, %v4061_v1 }
0x119c   : > { %7430 = vrot.lane.b32.xlu1 %v9077_v18, %s9565_s8  ;;  %7435 = vrot.lane.b32.xlu0 %v9077_v18, %s7629_s3 }
0x119d   : > { %v7416_v14 = vpop.permute.xlu0 %7415 }
0x119e   : > { %v7418_v2 = vunpack.i.h.bf16 %v7416_v14  ;;  %v7417_v47 = vunpack.i.l.bf16 %v7416_v14 }
0x11a0   : > { %v9084_v48 = vsel %vm4051_vm1, 0.0, %v7418_v2  ;;  %v9087_v56 = vsel %vm4051_vm1, 0.0, %v7417_v47 }
0x11a1   : > { %v4064_v57 = vsel %vm4060_vm4, %v9084_v48, 0.0  ;;  %v4063_v6 = vsel %vm4060_vm4, %v9087_v56, 0.0  ;;  %v6296_v13 = vpack.c.bf16 %v9084_v48, %v9087_v56 }
0x11a2   : > { %v7439_v45 = vpack.i.bf16 %v4064_v57, %v4063_v6 }
0x11a4   : > { %7440 = vrot.lane.b32.xlu1 %v7439_v45, %s9565_s8  ;;  %7445 = vrot.lane.b32.xlu0 %v7439_v45, %s7629_s3 }
0x11a5   : > { %v7421_v55 = vpop.permute.xlu1 %7420 }
0x11a6   : > { %v7423_v20 = vunpack.i.h.bf16 %v7421_v55  ;;  %v7422_v59 = vunpack.i.l.bf16 %v7421_v55 }
0x11a8   : > { %v9098_v52 = vsel %vm4051_vm1, 0.0, %v7423_v20  ;;  %v9101_v62 = vsel %vm4051_vm1, 0.0, %v7422_v59 }
0x11a9   : > { %v4066_v63 = vsel %vm4060_vm4, %v9098_v52, 0.0  ;;  %v4065_v0 = vsel %vm4060_vm4, %v9101_v62, 0.0  ;;  %v6301_v36 = vpack.c.bf16 %v9098_v52, %v9101_v62 }
0x11aa   : > { %v7449_v3 = vpack.i.bf16 %v4066_v63, %v4065_v0 }
0x11ac   : > { %7450 = vrot.lane.b32.xlu1 %v7449_v3, %s9565_s8  ;;  %7455 = vrot.lane.b32.xlu0 %v7449_v3, %s7629_s3 }
0x11ad   : > { %v7426_v4 = vpop.permute.xlu0 %7425 }
0x11ae   : > { %v7428_v22 = vunpack.i.h.bf16 %v7426_v4  ;;  %v7427_v41 = vunpack.i.l.bf16 %v7426_v4 }
0x11b0   : > { %v9112_v10 = vsel %vm4051_vm1, 0.0, %v7428_v22  ;;  %v9115_v58 = vsel %vm4051_vm1, 0.0, %v7427_v41 }
0x11b1   : > { %v4068_v11 = vsel %vm4060_vm4, %v9112_v10, 0.0  ;;  %v4067_v61 = vsel %vm4060_vm4, %v9115_v58, 0.0  ;;  %v6306_v30 = vpack.c.bf16 %v9112_v10, %v9115_v58  ;;  %v4296_v58 = vld [vmem:[%s9453_s21 + $0xd8] sm:$0xff] }
0x11b2   : > { %v7469_v29 = vpack.i.bf16 %v4068_v11, %v4067_v61 }
0x11b4   : > { %7470 = vrot.lane.b32.xlu0 %v7469_v29, %s7629_s3  ;;  %7460 = vrot.lane.b32.xlu1 %v7469_v29, %s9565_s8  ;;  %s7631_s8 = smov 124  }
0x11b8   : > { %7475 = vrot.lane.b32.xlu0 %v9077_v18, %s9567_s2  ;;  %7465 = vrot.lane.b32.xlu1 %v9077_v18, %s7630_s11 }
0x11bc   : > { %7485 = vrot.lane.b32.xlu0 %v7439_v45, %s9567_s2  ;;  %7480 = vrot.lane.b32.xlu1 %v7439_v45, %s7630_s11 }
0x11c0   : > { %7495 = vrot.lane.b32.xlu0 %v7449_v3, %s9567_s2  ;;  %7490 = vrot.lane.b32.xlu1 %v7449_v3, %s7630_s11 }
0x11c4   : > { %7505 = vrot.lane.b32.xlu0 %v7469_v29, %s9567_s2  ;;  %7500 = vrot.lane.b32.xlu1 %v7469_v29, %s7630_s11  ;;  %s5147_s11 = sshll.u32 %s9576_s5, 3 }
0x11c8   : > { %7515 = vrot.lane.b32.xlu0 %v7439_v45, %s9538_s29  ;;  %7510 = vrot.lane.b32.xlu1 %v9077_v18, %s9538_s29 }
0x11cc   : > { %7525 = vrot.lane.b32.xlu0 %v7469_v29, %s9538_s29  ;;  %7520 = vrot.lane.b32.xlu1 %v7449_v3, %s9538_s29  ;;  %s9573_s29 = sld [smem:[#allocation18_spill]] }
0x11d0   : > { %7535 = vrot.lane.b32.xlu0 %v9077_v18, %s9545_s28  ;;  %7530 = vrot.lane.b32.xlu1 %v9077_v18, %s7631_s8 }
0x11d2   : > { %s843_s12 = scalar_lea.vmem %s9573_s29, %s5147_s11 }
0x11d4   : > { %7545 = vrot.lane.b32.xlu0 %v7439_v45, %s9545_s28  ;;  %7540 = vrot.lane.b32.xlu1 %v7439_v45, %s7631_s8 }
0x11d8   : > { %7555 = vrot.lane.b32.xlu0 %v7449_v3, %s9545_s28  ;;  %7550 = vrot.lane.b32.xlu1 %v7449_v3, %s7631_s8 }
0x11dc   : > { %7565 = vrot.lane.b32.xlu0 %v7469_v29, %s9545_s28  ;;  %7560 = vrot.lane.b32.xlu1 %v7469_v29, %s7631_s8  ;;  %s9572_s8 = sld [smem:[#allocation17_spill]] }
0x11e0   : > { %7575 = vrot.lane.b32.xlu0 %v7439_v45, %s9552_s6  ;;  %7570 = vrot.lane.b32.xlu1 %v9077_v18, %s9552_s6 }
0x11e4   : > { %7585 = vrot.lane.b32.xlu0 %v7469_v29, %s9552_s6  ;;  %7580 = vrot.lane.b32.xlu1 %v7449_v3, %s9552_s6  ;;  %s9571_s6 = sld [smem:[#allocation16_spill]] }
0x11e8   : > { %4324 = vperm.xlu0 %7008, %v4310_v33   ;;  %4319 = vperm.xlu1 %7007, %v4309_v53  }
0x11ec   : > { %4334 = vperm.xlu0 %7008, %v4312_v15   ;;  %4329 = vperm.xlu1 %7007, %v4311_v60  }
0x11f0   : > { %4813 = vperm.xlu0 %7008, %v4799_v16   ;;  %4808 = vperm.xlu1 %7007, %v4798_v17  }
0x11f4   : > { %4344 = vperm.xlu0 %7008, %v4314_v19   ;;  %4339 = vperm.xlu1 %7007, %v4313_v21  }
0x11f8   : > { %4823 = vperm.xlu0 %7008, %v4801_v40   ;;  %4818 = vperm.xlu1 %7007, %v4800_v12  }
0x11fc   : > { %4354 = vperm.xlu0 %7008, %v4316_v23   ;;  %4349 = vperm.xlu1 %7007, %v4315_v39  }
0x1200   : > { %4833 = vperm.xlu0 %7008, %v4803_v50   ;;  %4828 = vperm.xlu1 %7007, %v4802_v24  }
0x1204   : > { %4843 = vperm.xlu0 %7008, %v4805_v26   ;;  %4838 = vperm.xlu1 %7007, %v4804_v27  }
0x120e   : > { %v7431_v38 = vpop.permute.xlu1 %7430  ;;  %v7436_v54 = vpop.permute.xlu0 %7435 }
0x120f   : > { %v7433_v25 = vunpack.i.h.bf16 %v7431_v38  ;;  %v7432_v28 = vunpack.i.l.bf16 %v7431_v38  ;;  %v7438_v37 = vunpack.i.h.bf16 %v7436_v54  ;;  %v7437_v1 = vunpack.i.l.bf16 %v7436_v54 }
0x1211   : > { %v6325_v18 = vpack.c.bf16 %v7433_v25, %v7432_v28  ;;  %v6327_v14 = vpack.c.bf16 %v7438_v37, %v7437_v1 }
0x1213   : > { %6326 = vmatprep.subr.bf16.mxu0 %v6325_v18 }
0x1214   : > { %6328 = vmatpush3.bf16.msra.mxu0 %v6327_v14 }
0x1216   : > { %v7441_v2 = vpop.permute.xlu1 %7440  ;;  %v7446_v47 = vpop.permute.xlu0 %7445 }
0x1217   : > { %v7443_v57 = vunpack.i.h.bf16 %v7441_v2  ;;  %v7442_v6 = vunpack.i.l.bf16 %v7441_v2  ;;  %v7448_v45 = vunpack.i.h.bf16 %v7446_v47  ;;  %v7447_v55 = vunpack.i.l.bf16 %v7446_v47 }
0x1219   : > { %v6329_v20 = vpack.c.bf16 %v7443_v57, %v7442_v6  ;;  %v6331_v59 = vpack.c.bf16 %v7448_v45, %v7447_v55 }
0x121b   : > { %6330 = vmatprep.subr.bf16.mxu0 %v6329_v20 }
0x121c   : > { %6332 = vmatpush3.bf16.msra.mxu0 %v6331_v59 }
0x121e   : > { %v7451_v63 = vpop.permute.xlu1 %7450  ;;  %v7456_v0 = vpop.permute.xlu0 %7455 }
0x121f   : > { %v7453_v3 = vunpack.i.h.bf16 %v7451_v63  ;;  %v7452_v4 = vunpack.i.l.bf16 %v7451_v63  ;;  %v7458_v22 = vunpack.i.h.bf16 %v7456_v0  ;;  %v7457_v41 = vunpack.i.l.bf16 %v7456_v0 }
0x1221   : > { %v6333_v11 = vpack.c.bf16 %v7453_v3, %v7452_v4  ;;  %v6335_v61 = vpack.c.bf16 %v7458_v22, %v7457_v41 }
0x1223   : > { %6334 = vmatprep.subr.bf16.mxu0 %v6333_v11 }
0x1224   : > { %6336 = vmatpush3.bf16.msra.mxu0 %v6335_v61 }
0x1226   : > { %v7471_v29 = vpop.permute.xlu0 %7470  ;;  %v7461_v44 = vpop.permute.xlu1 %7460 }
0x1227   : > { %v7473_v31 = vunpack.i.h.bf16 %v7471_v29  ;;  %v7472_v33 = vunpack.i.l.bf16 %v7471_v29  ;;  %v7463_v53 = vunpack.i.h.bf16 %v7461_v44  ;;  %v7462_v15 = vunpack.i.l.bf16 %v7461_v44 }
0x1229   : > { %v6339_v60 = vpack.c.bf16 %v7473_v31, %v7472_v33  ;;  %v6337_v16 = vpack.c.bf16 %v7463_v53, %v7462_v15  ;;  %v4271_v33 = vld [vmem:[%s9453_s21 + $0x10] sm:$0xff]  ;;  %v4306_v15 = vld [vmem:[%s9453_s21 + $0x128] sm:$0xff] }
0x122a   : > { %v7476_v17 = vpop.permute.xlu0 %7475  ;;  %v7466_v19 = vpop.permute.xlu1 %7465 }
0x122b   : > { %v7478_v21 = vunpack.i.h.bf16 %v7476_v17  ;;  %v7477_v40 = vunpack.i.l.bf16 %v7476_v17  ;;  %v7468_v12 = vunpack.i.h.bf16 %v7466_v19  ;;  %v7467_v23 = vunpack.i.l.bf16 %v7466_v19  ;;  %6338 = vmatprep.subr.bf16.mxu0 %v6337_v16 }
0x122c   : > { %6340 = vmatpush3.bf16.msra.mxu0 %v6339_v60  ;;  %v4277_v60 = vld [vmem:[%s9453_s21 + $0x40] sm:$0xff] }
0x122d   : > { %v6343_v39 = vpack.c.bf16 %v7478_v21, %v7477_v40  ;;  %v6341_v50 = vpack.c.bf16 %v7468_v12, %v7467_v23  ;;  %v4276_v12 = vld [vmem:[%s9453_s21 + $0x38] sm:$0xff]  ;;  %v4282_v23 = vld [vmem:[%s9453_s21 + $0x68] sm:$0xff] }
0x122e   : > { %v7486_v24 = vpop.permute.xlu0 %7485  ;;  %v7481_v26 = vpop.permute.xlu1 %7480 }
0x122f   : > { %v7488_v27 = vunpack.i.h.bf16 %v7486_v24  ;;  %v7487_v38 = vunpack.i.l.bf16 %v7486_v24  ;;  %v7483_v54 = vunpack.i.h.bf16 %v7481_v26  ;;  %v7482_v25 = vunpack.i.l.bf16 %v7481_v26  ;;  %6342 = vmatprep.subr.bf16.mxu0 %v6341_v50 }
0x1230   : > { %6344 = vmatpush3.bf16.msra.mxu0 %v6343_v39 }
0x1231   : > { %v6347_v28 = vpack.c.bf16 %v7488_v27, %v7487_v38  ;;  %v6345_v37 = vpack.c.bf16 %v7483_v54, %v7482_v25  ;;  %v4292_v38 = vld [vmem:[%s9453_s21 + $0xb8] sm:$0xff] }
0x1232   : > { %v7496_v1 = vpop.permute.xlu0 %7495  ;;  %v7491_v18 = vpop.permute.xlu1 %7490 }
0x1233   : > { %v7498_v14 = vunpack.i.h.bf16 %v7496_v1  ;;  %v7497_v2 = vunpack.i.l.bf16 %v7496_v1  ;;  %v7493_v47 = vunpack.i.h.bf16 %v7491_v18  ;;  %v7492_v57 = vunpack.i.l.bf16 %v7491_v18  ;;  %6346 = vmatprep.subr.bf16.mxu0 %v6345_v37  ;;  %v4297_v1 = vld [vmem:[%s9453_s21 + $0xe0] sm:$0xff] }
0x1234   : > { %6348 = vmatpush3.bf16.msra.mxu0 %v6347_v28 }
0x1235   : > { %v6351_v6 = vpack.c.bf16 %v7498_v14, %v7497_v2  ;;  %v6349_v45 = vpack.c.bf16 %v7493_v47, %v7492_v57 }
0x1236   : > { %v7506_v55 = vpop.permute.xlu0 %7505  ;;  %v7501_v20 = vpop.permute.xlu1 %7500 }
0x1237   : > { %v7508_v59 = vunpack.i.h.bf16 %v7506_v55  ;;  %v7507_v63 = vunpack.i.l.bf16 %v7506_v55  ;;  %v7503_v0 = vunpack.i.h.bf16 %v7501_v20  ;;  %v7502_v3 = vunpack.i.l.bf16 %v7501_v20  ;;  %6350 = vmatprep.subr.bf16.mxu0 %v6349_v45 }
0x1238   : > { %6352 = vmatpush3.bf16.msra.mxu0 %v6351_v6 }
0x1239   : > { %v6355_v4 = vpack.c.bf16 %v7508_v59, %v7507_v63  ;;  %v6353_v22 = vpack.c.bf16 %v7503_v0, %v7502_v3 }
0x123a   : > { %v7516_v41 = vpop.permute.xlu0 %7515  ;;  %v7511_v11 = vpop.permute.xlu1 %7510 }
0x123b   : > { %v7518_v61 = vunpack.i.h.bf16 %v7516_v41  ;;  %v7517_v29 = vunpack.i.l.bf16 %v7516_v41  ;;  %v7513_v44 = vunpack.i.h.bf16 %v7511_v11  ;;  %v7512_v31 = vunpack.i.l.bf16 %v7511_v11  ;;  %6354 = vmatprep.subr.bf16.mxu0 %v6353_v22  ;;  %v4301_v22 = vld [vmem:[%s9453_s21 + $0x100] sm:$0xff]  ;;  %v4307_v41 = vld [vmem:[%s9453_s21 + $0x130] sm:$0xff] }
0x123c   : > { %6356 = vmatpush3.bf16.msra.mxu0 %v6355_v4 }
0x123d   : > { %v6289_v53 = vpack.c.bf16 %v7513_v44, %v7512_v31  ;;  %6374 = vmatprep.subr.bf16.mxu0 %v9034_v32  ;;  %v6294_v19 = vpack.c.bf16 %v7518_v61, %v7517_v29 }
0x123e   : > { %v7526_v16 = vpop.permute.xlu0 %7525  ;;  %v7521_v17 = vpop.permute.xlu1 %7520 }
0x123f   : > { %v7523_v21 = vunpack.i.h.bf16 %v7521_v17  ;;  %v7522_v40 = vunpack.i.l.bf16 %v7521_v17  ;;  %6290 = vmatprep.subr.bf16.mxu1 %v6289_v53  ;;  %4552 = vmatmul.mubr.f32.vlgmr.msra.gmra.mrb[36].mxu0 %v4271_v33  ;;  %v7528_v34 = vunpack.i.h.bf16 %v7526_v16  ;;  %v7527_v35 = vunpack.i.l.bf16 %v7526_v16 }
0x1240   : > { %6293 = vmatpush3.bf16.msk.msra.mxu1 %vm9206_vm8, %v6291_v42  ;;  %4556 = vmatprep.mubr.f32.mxu0 %v4277_v60  ;;  %v4281_v42 = vld [vmem:[%s9453_s21 + $0x60] sm:$0xff] }
0x1241   : > { %6295 = vmatprep.subr.bf16.mxu1 %v6294_v19  ;;  %6376 = vmatpush3.bf16.msra.mxu0 %v9034_v32  ;;  %v6299_v24 = vpack.c.bf16 %v7523_v21, %v7522_v40  ;;  %v4287_v32 = vld [vmem:[%s9453_s21 + $0x90] sm:$0xff]  ;;  %v6304_v48 = vpack.c.bf16 %v7528_v34, %v7527_v35  ;;  %v4269_v40 = vld [vmem:[%s9453_s21] sm:$0xff]  ;;  %v4280_v35 = vld [vmem:[%s9453_s21 + $0x58] sm:$0xff] }
0x1242   : > { %v7536_v39 = vpop.permute.xlu0 %7535  ;;  %v7531_v50 = vpop.permute.xlu1 %7530  ;;  %6378 = vmatprep.subr.bf16.mxu0 %v9044_v5 }
0x1243   : > { %4557 = vmatmul.mubr.f32.gmra.mrb[38].mxu0 %v4276_v12  ;;  %v7533_v56 = vunpack.i.h.bf16 %v7531_v50  ;;  %v7538_v54 = vunpack.i.h.bf16 %v7536_v39  ;;  %v7537_v25 = vunpack.i.l.bf16 %v7536_v39  ;;  %v4275_v12 = vld [vmem:[%s9453_s21 + $0x30] sm:$0xff] }
0x1244   : > { %6298 = vmatpush3.bf16.msk.msra.mxu1 %vm9206_vm8, %v6296_v13  ;;  %4561 = vmatprep.mubr.f32.mxu0 %v4282_v23  ;;  %v7532_v13 = vunpack.i.l.bf16 %v7531_v50 }
0x1245   : > { %6300 = vmatprep.subr.bf16.mxu1 %v6299_v24  ;;  %6380 = vmatpush3.bf16.msra.mxu0 %v9044_v5  ;;  %v4286_v5 = vld [vmem:[%s9453_s21 + $0x88] sm:$0xff]  ;;  %v6311_v18 = vpack.c.bf16 %v7538_v54, %v7537_v25  ;;  %v4305_v54 = vld [vmem:[%s9453_s21 + $0x120] sm:$0xff]  ;;  %v4304_v25 = vld [vmem:[%s9453_s21 + $0x118] sm:$0xff] }
0x1246   : > { %v7546_v26 = vpop.permute.xlu0 %7545  ;;  %v7541_v27 = vpop.permute.xlu1 %7540  ;;  %5856 = vmatprep.subr.msk.mxu0 %vm2786_vm9, %v9049_v43  ;;  %v6309_v52 = vpack.c.bf16 %v7533_v56, %v7532_v13  ;;  %v4295_v56 = vld [vmem:[%s9453_s21 + $0xd0] sm:$0xff]  ;;  %v4294_v13 = vld [vmem:[%s9453_s21 + $0xc8] sm:$0xff] }
0x1247   : > { %4562 = vmatmul.mubr.f32.gmra.mrb[40].mxu0 %v4281_v42  ;;  %v7543_v62 = vunpack.i.h.bf16 %v7541_v27  ;;  %v7548_v14 = vunpack.i.h.bf16 %v7546_v26  ;;  %v7547_v2 = vunpack.i.l.bf16 %v7546_v26 }
0x1248   : > { %6303 = vmatpush3.bf16.msk.msra.mxu1 %vm9206_vm8, %v6301_v36  ;;  %4566 = vmatprep.mubr.f32.mxu0 %v4287_v32  ;;  %v7542_v36 = vunpack.i.l.bf16 %v7541_v27  ;;  %v4284_v27 = vld [vmem:[%s9453_s21 + $0x78] sm:$0xff] }
0x1249   : > { %6305 = vmatprep.subr.bf16.mxu1 %v6304_v48  ;;  %5857 = vmatpush3.msk.msra.mxu0 %vm2786_vm9, %v9049_v43  ;;  %v4291_v43 = vld [vmem:[%s9453_s21 + $0xb0] sm:$0xff]  ;;  %v6315_v45 = vpack.c.bf16 %v7548_v14, %v7547_v2  ;;  %v4289_v48 = vld [vmem:[%s9453_s21 + $0xa0] sm:$0xff] }
0x124a   : > { %v7551_v28 = vpop.permute.xlu1 %7550  ;;  %6389 = vmatprep.subr.bf16.mxu0 %v7617_v49  ;;  %v7556_v37 = vpop.permute.xlu0 %7555  ;;  %v6313_v57 = vpack.c.bf16 %v7543_v62, %v7542_v36  ;;  %v4283_v62 = vld [vmem:[%s9453_s21 + $0x70] sm:$0xff]  ;;  %v4288_v36 = vld [vmem:[%s9453_s21 + $0x98] sm:$0xff]  ;;  %v4697_v14 = vld [vmem:[%s9455_s23] sm:$0xff] }
0x124b   : > { %4567 = vmatmul.mubr.f32.gmra.mrb[42].mxu0 %v4286_v5  ;;  %v7553_v6 = vunpack.i.h.bf16 %v7551_v28  ;;  %v7552_v10 = vunpack.i.l.bf16 %v7551_v28  ;;  %v7558_v55 = vunpack.i.h.bf16 %v7556_v37  ;;  %v7557_v20 = vunpack.i.l.bf16 %v7556_v37  ;;  %v4300_v5 = vld [vmem:[%s9453_s21 + $0xf8] sm:$0xff]  ;;  %v4273_v28 = vld [vmem:[%s9453_s21 + $0x20] sm:$0xff] }
0x124c   : > { %6308 = vmatpush3.bf16.msk.msra.mxu1 %vm9206_vm8, %v6306_v30  ;;  %4571 = vmatprep.mubr.f32.mxu0 %v4292_v38  ;;  %v4302_v30 = vld [vmem:[%s9453_s21 + $0x108] sm:$0xff]  ;;  %v4299_v38 = vld [vmem:[%s9453_s21 + $0xf0] sm:$0xff]  ;;  %v4293_v37 = vld [vmem:[%s9453_s21 + $0xc0] sm:$0xff] }
0x124d   : > { %6310 = vmatprep.subr.bf16.mxu1 %v6309_v52  ;;  %v6317_v63 = vpack.c.bf16 %v7553_v6, %v7552_v10  ;;  %v6319_v11 = vpack.c.bf16 %v7558_v55, %v7557_v20  ;;  %v4278_v52 = vld [vmem:[%s9453_s21 + $0x48] sm:$0xff] }
0x124e   : > { %v7561_v47 = vpop.permute.xlu1 %7560  ;;  %v7566_v59 = vpop.permute.xlu0 %7565 }
0x124f   : > { %4572 = vmatmul.mubr.f32.gmra.mrb[44].mxu0 %v4291_v43  ;;  %v7563_v0 = vunpack.i.h.bf16 %v7561_v47  ;;  %v7562_v3 = vunpack.i.l.bf16 %v7561_v47  ;;  %v7568_v61 = vunpack.i.h.bf16 %v7566_v59  ;;  %v7567_v29 = vunpack.i.l.bf16 %v7566_v59  ;;  %v4298_v43 = vld [vmem:[%s9453_s21 + $0xe8] sm:$0xff] }
0x1250   : > { %6312 = vmatpush3.bf16.msra.mxu1 %v6311_v18  ;;  %4576 = vmatprep.mubr.f32.mxu0 %v4297_v1  ;;  %v4303_v1 = vld [vmem:[%s9453_s21 + $0x110] sm:$0xff]  ;;  %v4308_v18 = vld [vmem:[%s9453_s21 + $0x138] sm:$0xff] }
0x1251   : > { %6314 = vmatprep.subr.bf16.mxu1 %v6313_v57  ;;  %v6321_v44 = vpack.c.bf16 %v7563_v0, %v7562_v3  ;;  %v6323_v60 = vpack.c.bf16 %v7568_v61, %v7567_v29 }
0x1252   : > { %v7571_v4 = vpop.permute.xlu1 %7570  ;;  %v7576_v53 = vpop.permute.xlu0 %7575 }
0x1253   : > { %4577 = vmatmul.mubr.f32.gmra.mrb[46].mxu0 %v4296_v58  ;;  %v7573_v31 = vunpack.i.h.bf16 %v7571_v4  ;;  %v7572_v33 = vunpack.i.l.bf16 %v7571_v4  ;;  %v7578_v16 = vunpack.i.h.bf16 %v7576_v53  ;;  %v7577_v17 = vunpack.i.l.bf16 %v7576_v53 }
0x1254   : > { %6316 = vmatpush3.bf16.msra.mxu1 %v6315_v45  ;;  %4581 = vmatprep.mubr.f32.mxu0 %v4302_v30 }
0x1255   : > { %6318 = vmatprep.subr.bf16.mxu1 %v6317_v63  ;;  %v6357_v19 = vpack.c.bf16 %v7573_v31, %v7572_v33  ;;  %v6361_v23 = vpack.c.bf16 %v7578_v16, %v7577_v17 }
0x1256   : > { %v7581_v21 = vpop.permute.xlu1 %7580  ;;  %v7586_v34 = vpop.permute.xlu0 %7585 }
0x1257   : > { %4582 = vmatmul.mubr.f32.gmra.mrb[48].mxu0 %v4301_v22  ;;  %v7583_v39 = vunpack.i.h.bf16 %v7581_v21  ;;  %v7582_v50 = vunpack.i.l.bf16 %v7581_v21  ;;  %v7588_v24 = vunpack.i.h.bf16 %v7586_v34  ;;  %v7587_v42 = vunpack.i.l.bf16 %v7586_v34 }
0x1258   : > { %6320 = vmatpush3.bf16.msra.mxu1 %v6319_v11  ;;  %4586 = vmatprep.mubr.f32.mxu0 %v4307_v41 }
0x1259   : > { %6322 = vmatprep.subr.bf16.mxu1 %v6321_v44  ;;  %v6365_v32 = vpack.c.bf16 %v7583_v39, %v7582_v50  ;;  %v6369_v26 = vpack.c.bf16 %v7588_v24, %v7587_v42 }
0x125b   : > { %4587 = vmatmul.mubr.f32.gmra.mrb[50].mxu0 %v4306_v15 }
0x125c   : > { %6324 = vmatpush3.bf16.msra.mxu1 %v6323_v60  ;;  %5858 = vmatprep.mubr.msk.f32.mxu0 %vm3886_vm0, %v8872_v51  ;;  %v4274_v51 = vld [vmem:[%s9453_s21 + $0x28] sm:$0xff] }
0x125d   : > { %6358 = vmatprep.subr.bf16.mxu1 %v6357_v19 }
0x125f   : > { %4447 = vmatmul.mubr.f32.vlgmr.msra.gmra.mrb[44].mxu1 %v4269_v40  ;;  %5859 = vmatmul.mubr.msk.f32.vlgmr.msra.gmra.mrb[52].mxu0 %vm3886_vm0, %v8870_v7  ;;  %v4279_v7 = vld [vmem:[%s9453_s21 + $0x50] sm:$0xff] }
0x1260   : > { %6360 = vmatpush3.bf16.msra.mxu1 %v6357_v19  ;;  %5861 = vmatprep.mubr.msk.f32.mxu0 %vm3886_vm0, %v8878_v9  ;;  %v4285_v9 = vld [vmem:[%s9453_s21 + $0x80] sm:$0xff] }
0x1261   : > { %6362 = vmatprep.subr.bf16.mxu1 %v6361_v23  ;;  %4451 = vmatprep.mubr.f32.mxu1 %v4275_v12 }
0x1263   : > { %4452 = vmatmul.mubr.f32.gmra.mrb[46].mxu1 %v4274_v51  ;;  %5862 = vmatmul.mubr.msk.f32.gmra.mrb[54].mxu0 %vm3886_vm0, %v8876_v8  ;;  %v4290_v8 = vld [vmem:[%s9453_s21 + $0xa8] sm:$0xff] }
0x1264   : > { %6364 = vmatpush3.bf16.msra.mxu1 %v6361_v23  ;;  %4456 = vmatprep.mubr.f32.mxu1 %v4280_v35 }
0x1265   : > { %6366 = vmatprep.subr.bf16.mxu1 %v6365_v32  ;;  %5900 = vmatprep.mubr.msk.f32.mxu0 %vm7632_vm2, %v7615_v46 }
0x1267   : > { %4457 = vmatmul.mubr.f32.gmra.mrb[48].mxu1 %v4279_v7  ;;  %v4320_v33 = vpop.permute.xlu1 %4319  ;;  %v4325_v60 = vpop.permute.xlu0 %4324 }
0x1268   : > { %6368 = vmatpush3.bf16.msra.mxu1 %v6365_v32  ;;  %4461 = vmatprep.mubr.f32.mxu1 %v4285_v9 }
0x1269   : > { %6370 = vmatprep.subr.bf16.mxu1 %v6369_v26 }
0x126b   : > { %4462 = vmatmul.mubr.f32.gmra.mrb[50].mxu1 %v4284_v27  ;;  %v4330_v23 = vpop.permute.xlu1 %4329  ;;  %v4335_v7 = vpop.permute.xlu0 %4334 }
0x126c   : > { %6372 = vmatpush3.bf16.msra.mxu1 %v6369_v26  ;;  %4466 = vmatprep.mubr.f32.mxu1 %v4290_v8 }
0x126f   : > { %4467 = vmatmul.mubr.f32.gmra.mrb[52].mxu1 %v4289_v48  ;;  %v4809_v27 = vpop.permute.xlu1 %4808  ;;  %v4698_v48 = vld [vmem:[%s9455_s23 + $0x8] sm:$0xff] }
0x1270   : > { %4471 = vmatprep.mubr.f32.mxu1 %v4295_v56 }
0x1273   : > { %4472 = vmatmul.mubr.f32.gmra.mrb[54].mxu1 %v4294_v13  ;;  %v4699_v13 = vld [vmem:[%s9455_s23 + $0x10] sm:$0xff] }
0x1274   : > { %4476 = vmatprep.mubr.f32.mxu1 %v4300_v5 }
0x1277   : > { %4477 = vmatmul.mubr.f32.gmra.mrb[56].mxu1 %v4299_v38 }
0x1278   : > { %4481 = vmatprep.mubr.f32.mxu1 %v4305_v54 }
0x127b   : > { %4482 = vmatmul.mubr.f32.gmra.mrb[58].mxu1 %v4304_v25  ;;  %v4814_v25 = vpop.permute.xlu0 %4813 }
0x127c   : > { %5836 = vmatprep.mubr.msk.f32.mxu1 %vm4357_vm12, %v4273_v28 }
0x127f   : > { %5837 = vmatmul.mubr.msk.f32.vlgmr.msra.gmra.mrb[60].mxu1 %vm4357_vm12, %v4278_v52  ;;  %v4700_v52 = vld [vmem:[%s9455_s23 + $0x18] sm:$0xff] }
0x1280   : > { %5839 = vmatprep.mubr.msk.f32.mxu1 %vm4357_vm12, %v4283_v62 }
0x1283   : > { %5840 = vmatmul.mubr.msk.f32.gmra.mrb[62].mxu1 %vm4357_vm12, %v4288_v36  ;;  %v4701_v36 = vld [vmem:[%s9455_s23 + $0x20] sm:$0xff] }
0x1284   : > { %5842 = vmatprep.mubr.msk.f32.mxu1 %vm4357_vm12, %v4293_v37 }
0x1287   : > { %5843 = vmatmul.mubr.msk.f32.gmra.mrb[64].mxu1 %vm4357_vm12, %v4298_v43  ;;  %v4340_v43 = vpop.permute.xlu1 %4339 }
0x1288   : > { %5845 = vmatprep.mubr.msk.f32.mxu1 %vm4357_vm12, %v4303_v1 }
0x128b   : > { %5846 = vmatmul.mubr.msk.f32.gmra.mrb[66].mxu1 %vm4357_vm12, %v4308_v18 }
0x128c   : > { %5872 = vmatprep.mubr.msk.f32.mxu1 %vm3037_vm14, %v4697_v14 }
0x1312   : > { %v5592_v2 = vpop.f32.mrb[36].mxu0 }
0x1313   : > { %v5593_v47 = vpop.f32.mrb[37].mxu0 }
0x1314   : > { %v5594_v57 = vadd.f32 %v5593_v47, %v5592_v2  ;;  %v4702_v2 = vld [vmem:[%s9455_s23 + $0x28] sm:$0xff] }
0x1316   : > { %v5595_v6 = vpop.f32.mrb[38].mxu0 }
0x1317   : > { %v5596_v10 = vpop.f32.mrb[39].mxu0 }
0x1318   : > { %v5597_v58 = vadd.f32 %v5596_v10, %v5595_v6  ;;  %v4345_v10 = vpop.permute.xlu0 %4344 }
0x131a   : > { %v5598_v30 = vpop.f32.mrb[40].mxu0 }
0x131b   : > { %v5599_v45 = vpop.f32.mrb[41].mxu0 }
0x131c   : > { %v5600_v55 = vadd.f32 %v5599_v45, %v5598_v30  ;;  %v4819_v45 = vpop.permute.xlu1 %4818 }
0x131e   : > { %v5601_v20 = vpop.f32.mrb[42].mxu0 }
0x131f   : > { %v5602_v59 = vpop.f32.mrb[43].mxu0 }
0x1320   : > { %v5603_v63 = vadd.f32 %v5602_v59, %v5601_v20  ;;  %v4704_v20 = vld [vmem:[%s9455_s23 + $0x38] sm:$0xff] }
0x1322   : > { %v5604_v0 = vpop.f32.mrb[44].mxu0 }
0x1323   : > { %v5605_v3 = vpop.f32.mrb[45].mxu0 }
0x1324   : > { %v9370_v4 = vadd.f32 %v5605_v3, %v5604_v0 }
0x1326   : > { %v5607_v22 = vpop.f32.mrb[46].mxu0 }
0x1327   : > { %v5608_v41 = vpop.f32.mrb[47].mxu0 }
0x1328   : > { %v9372_v11 = vadd.f32 %v5608_v41, %v5607_v22 }
0x132a   : > { %v5610_v61 = vpop.f32.mrb[48].mxu0 }
0x132b   : > { %v5611_v29 = vpop.f32.mrb[49].mxu0 }
0x132c   : > { %v9374_v44 = vadd.f32 %v5611_v29, %v5610_v61 }
0x132e   : > { %v5613_v31 = vpop.f32.mrb[50].mxu0 }
0x132f   : > { %v5614_v53 = vpop.f32.mrb[51].mxu0 }
0x1330   : > { %v9376_v15 = vadd.f32 %v5614_v53, %v5613_v31  ;;  %v4350_v31 = vpop.permute.xlu1 %4349 }
0x1332   : > { %v5536_v16 = vpop.f32.mrb[44].mxu1  ;;  %v5860_v17 = vpop.f32.mrb[52].mxu0 }
0x1333   : > { %v5537_v19 = vpop.f32.mrb[45].mxu1  ;;  %v4779_v21 = vpop.f32.mrb[53].mxu0 }
0x1334   : > { %v5538_v40 = vadd.f32 %v5537_v19, %v5536_v16  ;;  %v6381_v12 = vpack.c.bf16 %v5860_v17, %v4779_v21 }
0x1336   : > { %v4449_v39 = vadd.f32 %v5538_v40, %v4320_v33  ;;  %v5539_v50 = vpop.f32.mrb[46].mxu1  ;;  %v5863_v34 = vpop.f32.mrb[54].mxu0  ;;  %6382 = vmatprep.subr.bf16.mxu1 %v6381_v12 }
0x1337   : > { %v5540_v51 = vpop.f32.mrb[47].mxu1  ;;  %v4789_v35 = vpop.f32.mrb[55].mxu0  ;;  %6384 = vmatpush3.bf16.msra.mxu1 %v6381_v12 }
0x1338   : > { %v5541_v24 = vadd.f32 %v5540_v51, %v5539_v50  ;;  %v6385_v42 = vpack.c.bf16 %v5863_v34, %v4789_v35  ;;  %v4554_v32 = vadd.f32 %v5594_v57, %v4449_v39  ;;  %v4703_v57 = vld [vmem:[%s9455_s23 + $0x30] sm:$0xff] }
0x133a   : > { %v4454_v9 = vadd.f32 %v5541_v24, %v4325_v60  ;;  %v5542_v26 = vpop.f32.mrb[48].mxu1  ;;  %6386 = vmatprep.subr.bf16.mxu1 %v6385_v42 }
0x133b   : > { %v5543_v8 = vpop.f32.mrb[49].mxu1  ;;  %6388 = vmatpush3.bf16.msra.mxu1 %v6385_v42 }
0x133c   : > { %v5544_v56 = vadd.f32 %v5543_v8, %v5542_v26  ;;  %v4559_v5 = vadd.f32 %v5597_v58, %v4454_v9 }
0x133e   : > { %v4459_v38 = vadd.f32 %v5544_v56, %v4330_v23  ;;  %v5545_v54 = vpop.f32.mrb[50].mxu1  ;;  %5873 = vmatmul.mubr.msk.f32.vlgmr.msra.gmra.mrb[60].mxu1 %vm3037_vm14, %v4698_v48  ;;  %v6409_v40 = vadd.f32 %v4814_v25, %v4559_v5  ;;  %v6411_v23 = vadd.f32 %v4809_v27, %v4554_v32 }
0x133f   : > { %v5546_v28 = vpop.f32.mrb[51].mxu1  ;;  %5875 = vmatprep.mubr.msk.f32.mxu1 %vm3037_vm14, %v4699_v13 }
0x1340   : > { %v5547_v62 = vadd.f32 %v5546_v28, %v5545_v54  ;;  %v4564_v37 = vadd.f32 %v5600_v55, %v4459_v38 }
0x1342   : > { %v4464_v1 = vadd.f32 %v5547_v62, %v4335_v7  ;;  %v5548_v18 = vpop.f32.mrb[52].mxu1  ;;  %5876 = vmatmul.mubr.msk.f32.gmra.mrb[62].mxu1 %vm3037_vm14, %v4700_v52  ;;  %v6415_v7 = vadd.f32 %v4819_v45, %v4564_v37 }
0x1343   : > { %v5549_v14 = vpop.f32.mrb[53].mxu1  ;;  %5878 = vmatprep.mubr.msk.f32.mxu1 %vm3037_vm14, %v4701_v36 }
0x1344   : > { %v5550_v47 = vadd.f32 %v5549_v14, %v5548_v18  ;;  %v4569_v6 = vadd.f32 %v5603_v63, %v4464_v1  ;;  %v4824_v63 = vpop.permute.xlu0 %4823 }
0x1346   : > { %v4469_v58 = vadd.f32 %v5550_v47, %v4340_v43  ;;  %v5551_v30 = vpop.f32.mrb[54].mxu1  ;;  %5879 = vmatmul.mubr.msk.f32.gmra.mrb[64].mxu1 %vm3037_vm14, %v4702_v2  ;;  %v6413_v35 = vadd.f32 %v4824_v63, %v4569_v6 }
0x1347   : > { %v5552_v55 = vpop.f32.mrb[55].mxu1  ;;  %5881 = vmatprep.mubr.msk.f32.mxu1 %vm3037_vm14, %v4703_v57 }
0x1348   : > { %v5553_v59 = vadd.f32 %v5552_v55, %v5551_v30  ;;  %v4574_v0 = vadd.f32 %v9370_v4, %v4469_v58  ;;  %v4355_v19 = vpop.permute.xlu0 %4354 }
0x134a   : > { %v4474_v3 = vadd.f32 %v5553_v59, %v4345_v10  ;;  %v5554_v22 = vpop.f32.mrb[56].mxu1  ;;  %5882 = vmatmul.mubr.msk.f32.gmra.mrb[66].mxu1 %vm3037_vm14, %v4704_v20 }
0x134b   : > { %v5555_v41 = vpop.f32.mrb[57].mxu1 }
0x134c   : > { %v5556_v61 = vadd.f32 %v5555_v41, %v5554_v22  ;;  %v4579_v29 = vadd.f32 %v9372_v11, %v4474_v3  ;;  %v5237_v11 = vld [vmem:[%s9457_s25] ss:$0 sm:$0xff] }
0x134d   : > { %v5006_v22 = vld [vmem:[%s9571_s6] sm:$0xff] }
0x134e   : > { %v4479_v33 = vadd.f32 %v5556_v61, %v4350_v31  ;;  %v5557_v53 = vpop.f32.mrb[58].mxu1 }
0x134f   : > { %v5558_v60 = vpop.f32.mrb[59].mxu1 }
0x1350   : > { %v5559_v16 = vadd.f32 %v5558_v60, %v5557_v53  ;;  %v4584_v17 = vadd.f32 %v9374_v44, %v4479_v33  ;;  %v4834_v44 = vpop.permute.xlu0 %4833 }
0x1351   : > { %v6417_v27 = vadd.f32 %v4834_v44, %v4579_v29  ;;  %v5084_v29 = vld [vmem:[%s9572_s8] sm:$0xff] }
0x1352   : > { %v4484_v21 = vadd.f32 %v5559_v16, %v4355_v19 }
0x1354   : > { %v4589_v4 = vadd.f32 %v9376_v15, %v4484_v21  ;;  %v4829_v15 = vpop.permute.xlu1 %4828  ;;  %v4844_v52 = vpop.permute.xlu0 %4843 }
0x1355   : > { %v6419_v38 = vadd.f32 %v4829_v15, %v4574_v0 }
0x1356   : > { %v6421_v1 = vadd.f32 %v4844_v52, %v4589_v4 }
0x1358   : > { %v4839_v37 = vpop.permute.xlu1 %4838 }
0x1359   : > { %v6423_v47 = vadd.f32 %v4839_v37, %v4584_v17 }
0x1411   : > { %v5874_v12 = vpop.f32.mrb[60].mxu1 }
0x1412   : > { %v6410_v39 = vadd.f32 %v6409_v40, %v5874_v12  ;;  %v4936_v50 = vpop.f32.mrb[61].mxu1 }
0x1413   : > { %v6412_v34 = vadd.f32 %v6411_v23, %v4936_v50 }
0x1414   : > { %v4984_v51 = vmax.f32 %v6410_v39, 0.0 }
0x1415   : > { %v4983_v24 = vmax.f32 %v6412_v34, 0.0  ;;  %v5877_v42 = vpop.f32.mrb[62].mxu1 }
0x1416   : > { %v4999_v9 = vmul.f32 %v5237_v11, %v4984_v51  ;;  %v6414_v26 = vadd.f32 %v6413_v35, %v5877_v42  ;;  %v4946_v46 = vpop.f32.mrb[63].mxu1 }
0x1417   : > { %v4998_v8 = vmul.f32 %v5237_v11, %v4983_v24  ;;  %v6416_v48 = vadd.f32 %v6415_v7, %v4946_v46 }
0x1418   : > { %v4986_v32 = vmax.f32 %v6414_v26, 0.0 }
0x1419   : > { %v6390_v56 = vpack.c.bf16 %v4999_v9, %v4998_v8  ;;  %v4985_v13 = vmax.f32 %v6416_v48, 0.0  ;;  %v5880_v5 = vpop.f32.mrb[64].mxu1 }
0x141a   : > { %v5001_v54 = vmul.f32 %v5237_v11, %v4986_v32  ;;  %v6418_v25 = vadd.f32 %v6417_v27, %v5880_v5  ;;  %v4956_v28 = vpop.f32.mrb[65].mxu1 }
0x141b   : > { %v5000_v62 = vmul.f32 %v5237_v11, %v4985_v13  ;;  %v6420_v36 = vadd.f32 %v6419_v38, %v4956_v28  ;;  %6391 = vmatpush3.bf16.msra.mxu0 %v6390_v56 }
0x141c   : > { %v4988_v43 = vmax.f32 %v6418_v25, 0.0  ;;  %6392 = vmatprep.subr.bf16.mxu0 %v7617_v49 }
0x141d   : > { %v6393_v18 = vpack.c.bf16 %v5001_v54, %v5000_v62  ;;  %v4987_v14 = vmax.f32 %v6420_v36, 0.0  ;;  %v5883_v2 = vpop.f32.mrb[66].mxu1 }
0x141e   : > { %v5003_v57 = vmul.f32 %v5237_v11, %v4988_v43  ;;  %v6422_v6 = vadd.f32 %v6421_v1, %v5883_v2  ;;  %v4966_v10 = vpop.f32.mrb[67].mxu1 }
0x141f   : > { %v5002_v58 = vmul.f32 %v5237_v11, %v4987_v14  ;;  %v6424_v30 = vadd.f32 %v6423_v47, %v4966_v10  ;;  %6394 = vmatpush3.bf16.msra.mxu0 %v6393_v18 }
0x1420   : > { %v4990_v45 = vmax.f32 %v6422_v6, 0.0  ;;  %6395 = vmatprep.subr.bf16.mxu0 %v7617_v49 }
0x1421   : > { %v6396_v55 = vpack.c.bf16 %v5003_v57, %v5002_v58  ;;  %v4989_v20 = vmax.f32 %v6424_v30, 0.0 }
0x1422   : > { %v5005_v59 = vmul.f32 %v5237_v11, %v4990_v45 }
0x1423   : > { %v5004_v0 = vmul.f32 %v5237_v11, %v4989_v20  ;;  %6397 = vmatpush3.bf16.msra.mxu0 %v6396_v55 }
0x1424   : > { %6398 = vmatprep.subr.bf16.mxu0 %v7617_v49 }
0x1425   : > { %v6399_v3 = vpack.c.bf16 %v5005_v59, %v5004_v0 }
0x1427   : > { %6400 = vmatpush3.bf16.msra.mxu0 %v6399_v3 }
0x142a   : > { %5901 = vmatmul.mubr.msk.f32.vlgmr.msra.gmra.mrb[56].mxu0 %vm4357_vm12, %v5006_v22 }
0x14fd   : > { %v5076_v63 = vpop.f32.mrb[56].mxu0 }
0x14fe   : > { %v5080_v41 = vsel %vm2307_vm7, %v5076_v63, 0.0  ;;  %v5902_v61 = vpop.f32.mrb[57].mxu0 }
0x14ff   : > { %5081 = vadd.xlane.f32.xlu1 %v5080_v41 }
0x158c   : > { %v5082_v31 = vpop.xlane.xlu1 %5081 }
0x158d   : > { %v5083_v49 = vmul.f32 0.25, %v5082_v31 }
0x158f   : > { %v5085_v33 = vadd.f32 %v5084_v29, %v5083_v49 }
0x1591   : > { %5087 = vst.msk [vmem:[%s843_s12] sm:$0xff] %vm5086_vm3, %v5085_v33 }
0x1592 PF: > { %s9574_s28 = sld [smem:[#allocation2_spill]] }
0x1598   : > { %s38_s8 = sadd.s32 1, %s9574_s28  }
0x1599   : > { %p35_p4 = scmp.ge.s32.totalorder %s38_s8, 4  }
0x159b   :  { %37 = sbr.rel (!%p35_p4) target bundleno = 17 (0x11), region = 162 }

</bundles_post_ra>
